<compile_context>
chip_gen: v6e
topology: v6e:2x2x1
jax: 0.10.0
libtpu: 0.0.40
codegen_flags: <defaults>
</compile_context>

<pallas_src>
import functools

import jax
import jax.numpy as jnp
from jax.experimental import pallas as pl
from jax.experimental.pallas import tpu as pltpu


# --------------------------------------------------------------------------
# Kernels (all operate on a squeezed (H, W, C) tile per grid step, NHWC)
# --------------------------------------------------------------------------

def _stem_kernel(x_ref, w_ref, s_ref, c_ref, o0_ref, o1_ref, *, hw, cmid):
    # x_ref : (H, W, 896) bf16     w_ref : (896, 256) bf16
    # s_ref, c_ref : (1, 256) f32  (folded BN scale / bias for both 1x1 convs)
    # o0_ref, o1_ref : (H, W, 128) bf16  (branch0, branch1-stem)
    x = x_ref[...].reshape(hw, x_ref.shape[-1])
    acc = jnp.dot(x, w_ref[...], preferred_element_type=jnp.float32)   # (HW, 256)
    y = jnp.maximum(acc * s_ref[...] + c_ref[...], 0.0)
    h, w, _ = o0_ref.shape
    o0_ref[...] = y[:, :cmid].reshape(h, w, cmid).astype(o0_ref.dtype)
    o1_ref[...] = y[:, cmid:].reshape(h, w, cmid).astype(o1_ref.dtype)


def _conv_tap_kernel(x_ref, w_ref, s_ref, c_ref, o_ref, *, h, w, c, k, axis):
    # x_ref : padded tile (axis==1 -> (H, W+k-1, C), axis==0 -> (H+k-1, W, C)) bf16
    # w_ref : (k*C, Cout) im2col weight bf16
    # Read each tap window straight from the ref, concat along lanes -> one matmul.
    if axis == 1:
        taps = [x_ref[:, t:t + w, :] for t in range(k)]
    else:
        taps = [x_ref[t:t + h, :, :] for t in range(k)]
    patch = jnp.concatenate([tp.reshape(h * w, c) for tp in taps], axis=-1)  # (HW, k*C)
    acc = jnp.dot(patch, w_ref[...], preferred_element_type=jnp.float32)
    y = jnp.maximum(acc * s_ref[...] + c_ref[...], 0.0)
    cout = o_ref.shape[-1]
    o_ref[...] = y.reshape(h, w, cout).astype(o_ref.dtype)


def _final_kernel(b0_ref, b1_ref, xr_ref, w_ref, c_ref, o_ref, *, hw):
    # cat(b0, b1) @ W_fc (scale already folded) + bias + residual, ReLU.
    # Computed as two K=128 dots against static weight slices (no concat buffer).
    cmid = b0_ref.shape[-1]
    h, w, cout = o_ref.shape
    acc = jnp.dot(b0_ref[...].reshape(hw, cmid), w_ref[:cmid, :],
                  preferred_element_type=jnp.float32)                  # (HW, 896)
    acc = acc + jnp.dot(b1_ref[...].reshape(hw, cmid), w_ref[cmid:, :],
                        preferred_element_type=jnp.float32)
    y = acc + c_ref[...] + xr_ref[...].reshape(hw, cout)
    o_ref[...] = jnp.maximum(y, 0.0).reshape(h, w, cout).astype(o_ref.dtype)


# --------------------------------------------------------------------------
# pallas_call wrappers
# --------------------------------------------------------------------------

def _stem_call(x_bf, w2d, s, c):
    n, h, w, cin = x_bf.shape
    co2 = w2d.shape[1]
    cmid = co2 // 2
    kern = functools.partial(_stem_kernel, hw=h * w, cmid=cmid)
    return pl.pallas_call(
        kern,
        out_shape=(jax.ShapeDtypeStruct((n, h, w, cmid), jnp.bfloat16),
                   jax.ShapeDtypeStruct((n, h, w, cmid), jnp.bfloat16)),
        grid_spec=pltpu.PrefetchScalarGridSpec(
            num_scalar_prefetch=0,
            grid=(n,),
            in_specs=[
                pl.BlockSpec((None, h, w, cin), lambda i: (i, 0, 0, 0)),
                pl.BlockSpec((cin, co2), lambda i: (0, 0)),
                pl.BlockSpec((1, co2), lambda i: (0, 0)),
                pl.BlockSpec((1, co2), lambda i: (0, 0)),
            ],
            out_specs=(
                pl.BlockSpec((None, h, w, cmid), lambda i: (i, 0, 0, 0)),
                pl.BlockSpec((None, h, w, cmid), lambda i: (i, 0, 0, 0)),
            ),
        ),
        compiler_params=pltpu.CompilerParams(dimension_semantics=("parallel",)),
    )(x_bf, w2d, s, c)


def _conv_tap_call(xp_bf, w2d, s, c, *, k, axis, out_hw):
    n = xp_bf.shape[0]
    h, w = out_hw
    cin = xp_bf.shape[-1]
    cout = w2d.shape[1]
    kern = functools.partial(_conv_tap_kernel, h=h, w=w, c=cin, k=k, axis=axis)
    blk_in = (None,) + xp_bf.shape[1:]
    return pl.pallas_call(
        kern,
        out_shape=jax.ShapeDtypeStruct((n, h, w, cout), jnp.bfloat16),
        grid_spec=pltpu.PrefetchScalarGridSpec(
            num_scalar_prefetch=0,
            grid=(n,),
            in_specs=[
                pl.BlockSpec(blk_in, lambda i: (i, 0, 0, 0)),
                pl.BlockSpec(w2d.shape, lambda i: (0, 0)),
                pl.BlockSpec((1, cout), lambda i: (0, 0)),
                pl.BlockSpec((1, cout), lambda i: (0, 0)),
            ],
            out_specs=pl.BlockSpec((None, h, w, cout), lambda i: (i, 0, 0, 0)),
        ),
        compiler_params=pltpu.CompilerParams(dimension_semantics=("parallel",)),
    )(xp_bf, w2d, s, c)


def _final_call(b0, b1, x_res, w2d, c):
    n, h, w, cmid = b0.shape
    cout = w2d.shape[1]
    kern = functools.partial(_final_kernel, hw=h * w)
    return pl.pallas_call(
        kern,
        out_shape=jax.ShapeDtypeStruct((n, h, w, cout), jnp.float32),
        grid_spec=pltpu.PrefetchScalarGridSpec(
            num_scalar_prefetch=0,
            grid=(n,),
            in_specs=[
                pl.BlockSpec((None, h, w, cmid), lambda i: (i, 0, 0, 0)),
                pl.BlockSpec((None, h, w, cmid), lambda i: (i, 0, 0, 0)),
                pl.BlockSpec((None, h, w, cout), lambda i: (i, 0, 0, 0)),
                pl.BlockSpec((2 * cmid, cout), lambda i: (0, 0)),
                pl.BlockSpec((1, cout), lambda i: (0, 0)),
            ],
            out_specs=pl.BlockSpec((None, h, w, cout), lambda i: (i, 0, 0, 0)),
        ),
        compiler_params=pltpu.CompilerParams(dimension_semantics=("parallel",)),
    )(b0, b1, x_res, w2d, c)


# --------------------------------------------------------------------------
# Block17 forward (PyTorch NCHW in/out)
# --------------------------------------------------------------------------

def _fold_bn(gamma, beta, mean, var, eps):
    s = gamma / jnp.sqrt(var + eps)
    b = beta - mean * s
    return s.astype(jnp.float32), b.astype(jnp.float32)


def block17_forward(x_nchw, p, *, scale=1.0, eps=1e-3):
    n, cin, h, w = x_nchw.shape
    cmid = 128
    assert cin == 896

    # layout glue (once per Block17 call, not per conv)
    x_nhwc = jnp.transpose(x_nchw, (0, 2, 3, 1)).astype(jnp.float32)   # residual (f32)
    x_bf = x_nhwc.astype(jnp.bfloat16)

    # --- fold BN + build 2D (im2col) weights, cast to bf16 ---
    s0, c0 = _fold_bn(p["b0_gamma"], p["b0_beta"], p["b0_mean"], p["b0_var"], eps)
    s1a, c1a = _fold_bn(p["b1a_gamma"], p["b1a_beta"], p["b1a_mean"], p["b1a_var"], eps)
    s1b, c1b = _fold_bn(p["b1b_gamma"], p["b1b_beta"], p["b1b_mean"], p["b1b_var"], eps)
    s1c, c1c = _fold_bn(p["b1c_gamma"], p["b1c_beta"], p["b1c_mean"], p["b1c_var"], eps)

    # fused stem: both 896->128 1x1 convs as one 896->256 matmul
    w_stem = jnp.concatenate(
        [p["b0_w"].reshape(cmid, cin).T, p["b1a_w"].reshape(cmid, cin).T],
        axis=1).astype(jnp.bfloat16)                                   # (896, 256)
    s_stem = jnp.concatenate([s0, s1a]).reshape(1, 2 * cmid)
    c_stem = jnp.concatenate([c0, c1a]).reshape(1, 2 * cmid)

    # (1,7) and (7,1) convs: OIHW -> HWIO -> (7*128, 128) im2col weights
    w_17 = jnp.transpose(p["b1b_w"], (2, 3, 1, 0)).reshape(7 * cmid, cmid).astype(jnp.bfloat16)
    w_71 = jnp.transpose(p["b1c_w"], (2, 3, 1, 0)).reshape(7 * cmid, cmid).astype(jnp.bfloat16)

    # final 1x1 conv (with bias); residual scale folded into weight + bias
    w_fc = (p["fc_w"].reshape(cin, 2 * cmid).T * scale).astype(jnp.bfloat16)   # (256, 896)
    c_fc = (p["fc_b"] * scale).reshape(1, cin).astype(jnp.float32)

    # --- kernels ---
    b0_out, b1_out = _stem_call(x_bf, w_stem, s_stem, c_stem)          # (N,H,W,128) x2

    b1p = jnp.pad(b1_out, ((0, 0), (0, 0), (3, 3), (0, 0)))            # pad W for (1,7)
    b1_out = _conv_tap_call(b1p, w_17, s1b.reshape(1, cmid), c1b.reshape(1, cmid),
                            k=7, axis=1, out_hw=(h, w))

    b1p = jnp.pad(b1_out, ((0, 0), (3, 3), (0, 0), (0, 0)))            # pad H for (7,1)
    b1_out = _conv_tap_call(b1p, w_71, s1c.reshape(1, cmid), c1c.reshape(1, cmid),
                            k=7, axis=0, out_hw=(h, w))

    out_nhwc = _final_call(b0_out, b1_out, x_nhwc, w_fc, c_fc)         # (N,H,W,896) f32
    return jnp.transpose(out_nhwc, (0, 3, 1, 2))


# --------------------------------------------------------------------------
# Pure-JAX reference (f32, lax convs) for correctness checking
# --------------------------------------------------------------------------

def _ref_bcr(x, w, gamma, beta, mean, var, padding, eps):
    y = jax.lax.conv_general_dilated(
        x, w, (1, 1), [(padding[0], padding[0]), (padding[1], padding[1])],
        dimension_numbers=("NCHW", "OIHW", "NCHW"))
    s = gamma / jnp.sqrt(var + eps)
    b = beta - mean * s
    return jnp.maximum(y * s[None, :, None, None] + b[None, :, None, None], 0.0)


def _ref_block17(x, p, scale, eps):
    x0 = _ref_bcr(x, p["b0_w"], p["b0_gamma"], p["b0_beta"], p["b0_mean"], p["b0_var"], (0, 0), eps)
    x1 = _ref_bcr(x, p["b1a_w"], p["b1a_gamma"], p["b1a_beta"], p["b1a_mean"], p["b1a_var"], (0, 0), eps)
    x1 = _ref_bcr(x1, p["b1b_w"], p["b1b_gamma"], p["b1b_beta"], p["b1b_mean"], p["b1b_var"], (0, 3), eps)
    x1 = _ref_bcr(x1, p["b1c_w"], p["b1c_gamma"], p["b1c_beta"], p["b1c_mean"], p["b1c_var"], (3, 0), eps)
    out = jnp.concatenate([x0, x1], axis=1)
    out = jax.lax.conv_general_dilated(out, p["fc_w"], (1, 1), [(0, 0), (0, 0)],
                                       dimension_numbers=("NCHW", "OIHW", "NCHW"))
    out = out + p["fc_b"][None, :, None, None]
    out = out * scale + x
    return jnp.maximum(out, 0.0)


# --------------------------------------------------------------------------
if __name__ == "__main__":
    N, H, W = 2, 8, 8          # small spatial; channel counts fixed by Block17 spec
    CIN, CMID = 896, 128
    SCALE = 0.17
    EPS = 1e-3

    key = jax.random.PRNGKey(0)
    keys = iter(jax.random.split(key, 24))

    def conv_w(k, shape):
        fan_in = shape[1] * shape[2] * shape[3]
        return jax.random.normal(k, shape, jnp.float32) / jnp.sqrt(float(fan_in))

    def bn_params(c):
        gamma = 1.0 + 0.1 * jax.random.normal(next(keys), (c,), jnp.float32)
        beta = 0.1 * jax.random.normal(next(keys), (c,), jnp.float32)
        mean = 0.1 * jax.random.normal(next(keys), (c,), jnp.float32)
        var = jnp.abs(1.0 + 0.1 * jax.random.normal(next(keys), (c,), jnp.float32))
        return gamma, beta, mean, var

    x = jax.random.normal(next(keys), (N, CIN, H, W), jnp.float32)

    p = {}
    p["b0_w"] = conv_w(next(keys), (CMID, CIN, 1, 1))
    p["b0_gamma"], p["b0_beta"], p["b0_mean"], p["b0_var"] = bn_params(CMID)
    p["b1a_w"] = conv_w(next(keys), (CMID, CIN, 1, 1))
    p["b1a_gamma"], p["b1a_beta"], p["b1a_mean"], p["b1a_var"] = bn_params(CMID)
    p["b1b_w"] = conv_w(next(keys), (CMID, CMID, 1, 7))
    p["b1b_gamma"], p["b1b_beta"], p["b1b_mean"], p["b1b_var"] = bn_params(CMID)
    p["b1c_w"] = conv_w(next(keys), (CMID, CMID, 7, 1))
    p["b1c_gamma"], p["b1c_beta"], p["b1c_mean"], p["b1c_var"] = bn_params(CMID)
    p["fc_w"] = conv_w(next(keys), (CIN, 2 * CMID, 1, 1))
    p["fc_b"] = 0.1 * jax.random.normal(next(keys), (CIN,), jnp.float32)

    fwd = jax.jit(functools.partial(block17_forward, scale=SCALE, eps=EPS))
    out = jax.block_until_ready(fwd(x, p))

    ref = _ref_block17(x, p, SCALE, EPS)
    assert out.shape == ref.shape == (N, CIN, H, W)
    max_err = float(jnp.max(jnp.abs(out - ref)))
    # bf16 MXU inputs with f32 accumulation -> loosen tolerance vs the f32 reference
    assert jnp.allclose(out, ref, atol=3e-2, rtol=3e-2), f"mismatch vs reference, max abs err={max_err}"

    print("KERNEL_OK")
</pallas_src>

<mosaic_0001>
module attributes {stable_mosaic.version = 11 : i64} {
  func.func @_stem_kernel(%arg0: i32, %arg1: memref<1x8x8x896xbf16, #tpu.memory_space<vmem>>, %arg2: memref<896x256xbf16, #tpu.memory_space<vmem>>, %arg3: memref<1x256xf32, #tpu.memory_space<vmem>>, %arg4: memref<1x256xf32, #tpu.memory_space<vmem>>, %arg5: memref<1x8x8x128xbf16, #tpu.memory_space<vmem>>, %arg6: memref<1x8x8x128xbf16, #tpu.memory_space<vmem>>) attributes {dimension_semantics = [#tpu.dimension_semantics<parallel>], iteration_bounds = array<i64: 2>, scalar_prefetch = 0 : i64, scratch_operands = 0 : i64, tpu.core_type = #tpu.core_type<tc>, window_params = [{transform_indices = @transform_0, window_bounds = array<i64: 1, 8, 8, 896>}, {pipeline_mode = #tpu.pipeline_mode<synchronous>, transform_indices = @transform_1, window_bounds = array<i64: 896, 256>}, {pipeline_mode = #tpu.pipeline_mode<synchronous>, transform_indices = @transform_2, window_bounds = array<i64: 1, 256>}, {pipeline_mode = #tpu.pipeline_mode<synchronous>, transform_indices = @transform_3, window_bounds = array<i64: 1, 256>}, {transform_indices = @transform_4, window_bounds = array<i64: 1, 8, 8, 128>}, {transform_indices = @transform_5, window_bounds = array<i64: 1, 8, 8, 128>}]} {
    %c0 = arith.constant 0 : index
    %c0_0 = arith.constant 0 : index
    %c0_1 = arith.constant 0 : index
    %c0_2 = arith.constant 0 : index
    %0 = vector.load %arg1[%c0, %c0_0, %c0_1, %c0_2] : memref<1x8x8x896xbf16, #tpu.memory_space<vmem>>, vector<1x8x8x896xbf16>
    %1 = vector.shape_cast %0 : vector<1x8x8x896xbf16> to vector<8x8x896xbf16>
    %2 = vector.shape_cast %1 : vector<8x8x896xbf16> to vector<64x896xbf16>
    %c0_3 = arith.constant 0 : index
    %c0_4 = arith.constant 0 : index
    %3 = vector.load %arg2[%c0_3, %c0_4] : memref<896x256xbf16, #tpu.memory_space<vmem>>, vector<896x256xbf16>
    %cst = arith.constant dense<0.000000e+00> : vector<64x256xf32>
    %4 = tpu.matmul %2, %3, %cst {dimension_numbers = #tpu.dot_dimension_numbers<[1], [0], [0], [1], [0, 0, 1, 1], [], []>} : vector<64x896xbf16>, vector<896x256xbf16>, vector<64x256xf32> -> vector<64x256xf32>
    %c0_5 = arith.constant 0 : index
    %c0_6 = arith.constant 0 : index
    %5 = vector.load %arg3[%c0_5, %c0_6] : memref<1x256xf32, #tpu.memory_space<vmem>>, vector<1x256xf32>
    %6 = vector.broadcast %5 : vector<1x256xf32> to vector<64x256xf32>
    %7 = arith.mulf %4, %6 : vector<64x256xf32>
    %c0_7 = arith.constant 0 : index
    %c0_8 = arith.constant 0 : index
    %8 = vector.load %arg4[%c0_7, %c0_8] : memref<1x256xf32, #tpu.memory_space<vmem>>, vector<1x256xf32>
    %9 = vector.broadcast %8 : vector<1x256xf32> to vector<64x256xf32>
    %10 = arith.addf %7, %9 : vector<64x256xf32>
    %cst_9 = arith.constant 0.000000e+00 : f32
    %11 = vector.broadcast %cst_9 : f32 to vector<64x256xf32>
    %12 = arith.maximumf %10, %11 : vector<64x256xf32>
    %13 = vector.extract_strided_slice %12 {offsets = [0, 0], sizes = [64, 128], strides = [1, 1]} : vector<64x256xf32> to vector<64x128xf32>
    %14 = vector.shape_cast %13 : vector<64x128xf32> to vector<8x8x128xf32>
    %15 = arith.truncf %14 : vector<8x8x128xf32> to vector<8x8x128xbf16>
    %c0_10 = arith.constant 0 : index
    %c0_11 = arith.constant 0 : index
    %c0_12 = arith.constant 0 : index
    %c0_13 = arith.constant 0 : index
    %16 = vector.load %arg5[%c0_10, %c0_11, %c0_12, %c0_13] : memref<1x8x8x128xbf16, #tpu.memory_space<vmem>>, vector<1x8x8x128xbf16>
    %17 = vector.shape_cast %16 : vector<1x8x8x128xbf16> to vector<8x8x128xbf16>
    %18 = vector.shape_cast %15 : vector<8x8x128xbf16> to vector<1x8x8x128xbf16>
    tpu.vector_store %arg5[%c0_10, %c0_11, %c0_12, %c0_13], %18 {strides = array<i32>} : memref<1x8x8x128xbf16, #tpu.memory_space<vmem>>, vector<1x8x8x128xbf16>,
    %19 = vector.extract_strided_slice %12 {offsets = [0, 128], sizes = [64, 128], strides = [1, 1]} : vector<64x256xf32> to vector<64x128xf32>
    %20 = vector.shape_cast %19 : vector<64x128xf32> to vector<8x8x128xf32>
    %21 = arith.truncf %20 : vector<8x8x128xf32> to vector<8x8x128xbf16>
    %c0_14 = arith.constant 0 : index
    %c0_15 = arith.constant 0 : index
    %c0_16 = arith.constant 0 : index
    %c0_17 = arith.constant 0 : index
    %22 = vector.load %arg6[%c0_14, %c0_15, %c0_16, %c0_17] : memref<1x8x8x128xbf16, #tpu.memory_space<vmem>>, vector<1x8x8x128xbf16>
    %23 = vector.shape_cast %22 : vector<1x8x8x128xbf16> to vector<8x8x128xbf16>
    %24 = vector.shape_cast %21 : vector<8x8x128xbf16> to vector<1x8x8x128xbf16>
    tpu.vector_store %arg6[%c0_14, %c0_15, %c0_16, %c0_17], %24 {strides = array<i32>} : memref<1x8x8x128xbf16, #tpu.memory_space<vmem>>, vector<1x8x8x128xbf16>,
    return
  }
  func.func @transform_0(%arg0: i32) -> (i32, i32, i32, i32) {
    %c0_i32 = arith.constant 0 : i32
    %c0_i32_0 = arith.constant 0 : i32
    %c0_i32_1 = arith.constant 0 : i32
    %c0_i32_2 = arith.constant 0 : i32
    return %arg0, %c0_i32, %c0_i32_0, %c0_i32_1 : i32, i32, i32, i32
  }
  func.func @transform_1(%arg0: i32) -> (i32, i32) {
    %c0_i32 = arith.constant 0 : i32
    %c0_i32_0 = arith.constant 0 : i32
    %c0_i32_1 = arith.constant 0 : i32
    return %c0_i32, %c0_i32_0 : i32, i32
  }
  func.func @transform_2(%arg0: i32) -> (i32, i32) {
    %c0_i32 = arith.constant 0 : i32
    %c0_i32_0 = arith.constant 0 : i32
    %c0_i32_1 = arith.constant 0 : i32
    return %c0_i32, %c0_i32_0 : i32, i32
  }
  func.func @transform_3(%arg0: i32) -> (i32, i32) {
    %c0_i32 = arith.constant 0 : i32
    %c0_i32_0 = arith.constant 0 : i32
    %c0_i32_1 = arith.constant 0 : i32
    return %c0_i32, %c0_i32_0 : i32, i32
  }
  func.func @transform_4(%arg0: i32) -> (i32, i32, i32, i32) {
    %c0_i32 = arith.constant 0 : i32
    %c0_i32_0 = arith.constant 0 : i32
    %c0_i32_1 = arith.constant 0 : i32
    %c0_i32_2 = arith.constant 0 : i32
    return %arg0, %c0_i32, %c0_i32_0, %c0_i32_1 : i32, i32, i32, i32
  }
  func.func @transform_5(%arg0: i32) -> (i32, i32, i32, i32) {
    %c0_i32 = arith.constant 0 : i32
    %c0_i32_0 = arith.constant 0 : i32
    %c0_i32_1 = arith.constant 0 : i32
    %c0_i32_2 = arith.constant 0 : i32
    return %arg0, %c0_i32, %c0_i32_0, %c0_i32_1 : i32, i32, i32, i32
  }
}

module attributes {stable_mosaic.version = 11 : i64} {
  func.func @_conv_tap_kernel(%arg0: i32, %arg1: memref<1x8x14x128xbf16, #tpu.memory_space<vmem>>, %arg2: memref<896x128xbf16, #tpu.memory_space<vmem>>, %arg3: memref<1x128xf32, #tpu.memory_space<vmem>>, %arg4: memref<1x128xf32, #tpu.memory_space<vmem>>, %arg5: memref<1x8x8x128xbf16, #tpu.memory_space<vmem>>) attributes {dimension_semantics = [#tpu.dimension_semantics<parallel>], iteration_bounds = array<i64: 2>, scalar_prefetch = 0 : i64, scratch_operands = 0 : i64, tpu.core_type = #tpu.core_type<tc>, window_params = [{transform_indices = @transform_0, window_bounds = array<i64: 1, 8, 14, 128>}, {pipeline_mode = #tpu.pipeline_mode<synchronous>, transform_indices = @transform_1, window_bounds = array<i64: 896, 128>}, {pipeline_mode = #tpu.pipeline_mode<synchronous>, transform_indices = @transform_2, window_bounds = array<i64: 1, 128>}, {pipeline_mode = #tpu.pipeline_mode<synchronous>, transform_indices = @transform_3, window_bounds = array<i64: 1, 128>}, {transform_indices = @transform_4, window_bounds = array<i64: 1, 8, 8, 128>}]} {
    %c0 = arith.constant 0 : index
    %c0_0 = arith.constant 0 : index
    %c0_1 = arith.constant 0 : index
    %c0_2 = arith.constant 0 : index
    %0 = vector.load %arg1[%c0, %c0_0, %c0_1, %c0_2] : memref<1x8x14x128xbf16, #tpu.memory_space<vmem>>, vector<1x8x8x128xbf16>
    %1 = vector.shape_cast %0 : vector<1x8x8x128xbf16> to vector<8x8x128xbf16>
    %c0_3 = arith.constant 0 : index
    %c0_4 = arith.constant 0 : index
    %c1 = arith.constant 1 : index
    %c0_5 = arith.constant 0 : index
    %2 = vector.load %arg1[%c0_3, %c0_4, %c1, %c0_5] : memref<1x8x14x128xbf16, #tpu.memory_space<vmem>>, vector<1x8x8x128xbf16>
    %3 = vector.shape_cast %2 : vector<1x8x8x128xbf16> to vector<8x8x128xbf16>
    %c0_6 = arith.constant 0 : index
    %c0_7 = arith.constant 0 : index
    %c2 = arith.constant 2 : index
    %c0_8 = arith.constant 0 : index
    %4 = vector.load %arg1[%c0_6, %c0_7, %c2, %c0_8] : memref<1x8x14x128xbf16, #tpu.memory_space<vmem>>, vector<1x8x8x128xbf16>
    %5 = vector.shape_cast %4 : vector<1x8x8x128xbf16> to vector<8x8x128xbf16>
    %c0_9 = arith.constant 0 : index
    %c0_10 = arith.constant 0 : index
    %c3 = arith.constant 3 : index
    %c0_11 = arith.constant 0 : index
    %6 = vector.load %arg1[%c0_9, %c0_10, %c3, %c0_11] : memref<1x8x14x128xbf16, #tpu.memory_space<vmem>>, vector<1x8x8x128xbf16>
    %7 = vector.shape_cast %6 : vector<1x8x8x128xbf16> to vector<8x8x128xbf16>
    %c0_12 = arith.constant 0 : index
    %c0_13 = arith.constant 0 : index
    %c4 = arith.constant 4 : index
    %c0_14 = arith.constant 0 : index
    %8 = vector.load %arg1[%c0_12, %c0_13, %c4, %c0_14] : memref<1x8x14x128xbf16, #tpu.memory_space<vmem>>, vector<1x8x8x128xbf16>
    %9 = vector.shape_cast %8 : vector<1x8x8x128xbf16> to vector<8x8x128xbf16>
    %c0_15 = arith.constant 0 : index
    %c0_16 = arith.constant 0 : index
    %c5 = arith.constant 5 : index
    %c0_17 = arith.constant 0 : index
    %10 = vector.load %arg1[%c0_15, %c0_16, %c5, %c0_17] : memref<1x8x14x128xbf16, #tpu.memory_space<vmem>>, vector<1x8x8x128xbf16>
    %11 = vector.shape_cast %10 : vector<1x8x8x128xbf16> to vector<8x8x128xbf16>
    %c0_18 = arith.constant 0 : index
    %c0_19 = arith.constant 0 : index
    %c6 = arith.constant 6 : index
    %c0_20 = arith.constant 0 : index
    %12 = vector.load %arg1[%c0_18, %c0_19, %c6, %c0_20] : memref<1x8x14x128xbf16, #tpu.memory_space<vmem>>, vector<1x8x8x128xbf16>
    %13 = vector.shape_cast %12 : vector<1x8x8x128xbf16> to vector<8x8x128xbf16>
    %14 = vector.shape_cast %1 : vector<8x8x128xbf16> to vector<64x128xbf16>
    %15 = vector.shape_cast %3 : vector<8x8x128xbf16> to vector<64x128xbf16>
    %16 = vector.shape_cast %5 : vector<8x8x128xbf16> to vector<64x128xbf16>
    %17 = vector.shape_cast %7 : vector<8x8x128xbf16> to vector<64x128xbf16>
    %18 = vector.shape_cast %9 : vector<8x8x128xbf16> to vector<64x128xbf16>
    %19 = vector.shape_cast %11 : vector<8x8x128xbf16> to vector<64x128xbf16>
    %20 = vector.shape_cast %13 : vector<8x8x128xbf16> to vector<64x128xbf16>
    %21 = tpu.concatenate %14, %15, %16, %17, %18, %19, %20 in 1 : vector<64x128xbf16>, vector<64x128xbf16>, vector<64x128xbf16>, vector<64x128xbf16>, vector<64x128xbf16>, vector<64x128xbf16>, vector<64x128xbf16> -> vector<64x896xbf16>
    %c0_21 = arith.constant 0 : index
    %c0_22 = arith.constant 0 : index
    %22 = vector.load %arg2[%c0_21, %c0_22] : memref<896x128xbf16, #tpu.memory_space<vmem>>, vector<896x128xbf16>
    %cst = arith.constant dense<0.000000e+00> : vector<64x128xf32>
    %23 = tpu.matmul %21, %22, %cst {dimension_numbers = #tpu.dot_dimension_numbers<[1], [0], [0], [1], [0, 0, 1, 1], [], []>} : vector<64x896xbf16>, vector<896x128xbf16>, vector<64x128xf32> -> vector<64x128xf32>
    %c0_23 = arith.constant 0 : index
    %c0_24 = arith.constant 0 : index
    %24 = vector.load %arg3[%c0_23, %c0_24] : memref<1x128xf32, #tpu.memory_space<vmem>>, vector<1x128xf32>
    %25 = vector.broadcast %24 : vector<1x128xf32> to vector<64x128xf32>
    %26 = arith.mulf %23, %25 : vector<64x128xf32>
    %c0_25 = arith.constant 0 : index
    %c0_26 = arith.constant 0 : index
    %27 = vector.load %arg4[%c0_25, %c0_26] : memref<1x128xf32, #tpu.memory_space<vmem>>, vector<1x128xf32>
    %28 = vector.broadcast %27 : vector<1x128xf32> to vector<64x128xf32>
    %29 = arith.addf %26, %28 : vector<64x128xf32>
    %cst_27 = arith.constant 0.000000e+00 : f32
    %30 = vector.broadcast %cst_27 : f32 to vector<64x128xf32>
    %31 = arith.maximumf %29, %30 : vector<64x128xf32>
    %32 = vector.shape_cast %31 : vector<64x128xf32> to vector<8x8x128xf32>
    %33 = arith.truncf %32 : vector<8x8x128xf32> to vector<8x8x128xbf16>
    %c0_28 = arith.constant 0 : index
    %c0_29 = arith.constant 0 : index
    %c0_30 = arith.constant 0 : index
    %c0_31 = arith.constant 0 : index
    %34 = vector.load %arg5[%c0_28, %c0_29, %c0_30, %c0_31] : memref<1x8x8x128xbf16, #tpu.memory_space<vmem>>, vector<1x8x8x128xbf16>
    %35 = vector.shape_cast %34 : vector<1x8x8x128xbf16> to vector<8x8x128xbf16>
    %36 = vector.shape_cast %33 : vector<8x8x128xbf16> to vector<1x8x8x128xbf16>
    tpu.vector_store %arg5[%c0_28, %c0_29, %c0_30, %c0_31], %36 {strides = array<i32>} : memref<1x8x8x128xbf16, #tpu.memory_space<vmem>>, vector<1x8x8x128xbf16>,
    return
  }
  func.func @transform_0(%arg0: i32) -> (i32, i32, i32, i32) {
    %c0_i32 = arith.constant 0 : i32
    %c0_i32_0 = arith.constant 0 : i32
    %c0_i32_1 = arith.constant 0 : i32
    %c0_i32_2 = arith.constant 0 : i32
    return %arg0, %c0_i32, %c0_i32_0, %c0_i32_1 : i32, i32, i32, i32
  }
  func.func @transform_1(%arg0: i32) -> (i32, i32) {
    %c0_i32 = arith.constant 0 : i32
    %c0_i32_0 = arith.constant 0 : i32
    %c0_i32_1 = arith.constant 0 : i32
    return %c0_i32, %c0_i32_0 : i32, i32
  }
  func.func @transform_2(%arg0: i32) -> (i32, i32) {
    %c0_i32 = arith.constant 0 : i32
    %c0_i32_0 = arith.constant 0 : i32
    %c0_i32_1 = arith.constant 0 : i32
    return %c0_i32, %c0_i32_0 : i32, i32
  }
  func.func @transform_3(%arg0: i32) -> (i32, i32) {
    %c0_i32 = arith.constant 0 : i32
    %c0_i32_0 = arith.constant 0 : i32
    %c0_i32_1 = arith.constant 0 : i32
    return %c0_i32, %c0_i32_0 : i32, i32
  }
  func.func @transform_4(%arg0: i32) -> (i32, i32, i32, i32) {
    %c0_i32 = arith.constant 0 : i32
    %c0_i32_0 = arith.constant 0 : i32
    %c0_i32_1 = arith.constant 0 : i32
    %c0_i32_2 = arith.constant 0 : i32
    return %arg0, %c0_i32, %c0_i32_0, %c0_i32_1 : i32, i32, i32, i32
  }
}

module attributes {stable_mosaic.version = 11 : i64} {
  func.func @_conv_tap_kernel(%arg0: i32, %arg1: memref<1x14x8x128xbf16, #tpu.memory_space<vmem>>, %arg2: memref<896x128xbf16, #tpu.memory_space<vmem>>, %arg3: memref<1x128xf32, #tpu.memory_space<vmem>>, %arg4: memref<1x128xf32, #tpu.memory_space<vmem>>, %arg5: memref<1x8x8x128xbf16, #tpu.memory_space<vmem>>) attributes {dimension_semantics = [#tpu.dimension_semantics<parallel>], iteration_bounds = array<i64: 2>, scalar_prefetch = 0 : i64, scratch_operands = 0 : i64, tpu.core_type = #tpu.core_type<tc>, window_params = [{transform_indices = @transform_0, window_bounds = array<i64: 1, 14, 8, 128>}, {pipeline_mode = #tpu.pipeline_mode<synchronous>, transform_indices = @transform_1, window_bounds = array<i64: 896, 128>}, {pipeline_mode = #tpu.pipeline_mode<synchronous>, transform_indices = @transform_2, window_bounds = array<i64: 1, 128>}, {pipeline_mode = #tpu.pipeline_mode<synchronous>, transform_indices = @transform_3, window_bounds = array<i64: 1, 128>}, {transform_indices = @transform_4, window_bounds = array<i64: 1, 8, 8, 128>}]} {
    %c0 = arith.constant 0 : index
    %c0_0 = arith.constant 0 : index
    %c0_1 = arith.constant 0 : index
    %c0_2 = arith.constant 0 : index
    %0 = vector.load %arg1[%c0, %c0_0, %c0_1, %c0_2] : memref<1x14x8x128xbf16, #tpu.memory_space<vmem>>, vector<1x8x8x128xbf16>
    %1 = vector.shape_cast %0 : vector<1x8x8x128xbf16> to vector<8x8x128xbf16>
    %c0_3 = arith.constant 0 : index
    %c1 = arith.constant 1 : index
    %c0_4 = arith.constant 0 : index
    %c0_5 = arith.constant 0 : index
    %2 = vector.load %arg1[%c0_3, %c1, %c0_4, %c0_5] : memref<1x14x8x128xbf16, #tpu.memory_space<vmem>>, vector<1x8x8x128xbf16>
    %3 = vector.shape_cast %2 : vector<1x8x8x128xbf16> to vector<8x8x128xbf16>
    %c0_6 = arith.constant 0 : index
    %c2 = arith.constant 2 : index
    %c0_7 = arith.constant 0 : index
    %c0_8 = arith.constant 0 : index
    %4 = vector.load %arg1[%c0_6, %c2, %c0_7, %c0_8] : memref<1x14x8x128xbf16, #tpu.memory_space<vmem>>, vector<1x8x8x128xbf16>
    %5 = vector.shape_cast %4 : vector<1x8x8x128xbf16> to vector<8x8x128xbf16>
    %c0_9 = arith.constant 0 : index
    %c3 = arith.constant 3 : index
    %c0_10 = arith.constant 0 : index
    %c0_11 = arith.constant 0 : index
    %6 = vector.load %arg1[%c0_9, %c3, %c0_10, %c0_11] : memref<1x14x8x128xbf16, #tpu.memory_space<vmem>>, vector<1x8x8x128xbf16>
    %7 = vector.shape_cast %6 : vector<1x8x8x128xbf16> to vector<8x8x128xbf16>
    %c0_12 = arith.constant 0 : index
    %c4 = arith.constant 4 : index
    %c0_13 = arith.constant 0 : index
    %c0_14 = arith.constant 0 : index
    %8 = vector.load %arg1[%c0_12, %c4, %c0_13, %c0_14] : memref<1x14x8x128xbf16, #tpu.memory_space<vmem>>, vector<1x8x8x128xbf16>
    %9 = vector.shape_cast %8 : vector<1x8x8x128xbf16> to vector<8x8x128xbf16>
    %c0_15 = arith.constant 0 : index
    %c5 = arith.constant 5 : index
    %c0_16 = arith.constant 0 : index
    %c0_17 = arith.constant 0 : index
    %10 = vector.load %arg1[%c0_15, %c5, %c0_16, %c0_17] : memref<1x14x8x128xbf16, #tpu.memory_space<vmem>>, vector<1x8x8x128xbf16>
    %11 = vector.shape_cast %10 : vector<1x8x8x128xbf16> to vector<8x8x128xbf16>
    %c0_18 = arith.constant 0 : index
    %c6 = arith.constant 6 : index
    %c0_19 = arith.constant 0 : index
    %c0_20 = arith.constant 0 : index
    %12 = vector.load %arg1[%c0_18, %c6, %c0_19, %c0_20] : memref<1x14x8x128xbf16, #tpu.memory_space<vmem>>, vector<1x8x8x128xbf16>
    %13 = vector.shape_cast %12 : vector<1x8x8x128xbf16> to vector<8x8x128xbf16>
    %14 = vector.shape_cast %1 : vector<8x8x128xbf16> to vector<64x128xbf16>
    %15 = vector.shape_cast %3 : vector<8x8x128xbf16> to vector<64x128xbf16>
    %16 = vector.shape_cast %5 : vector<8x8x128xbf16> to vector<64x128xbf16>
    %17 = vector.shape_cast %7 : vector<8x8x128xbf16> to vector<64x128xbf16>
    %18 = vector.shape_cast %9 : vector<8x8x128xbf16> to vector<64x128xbf16>
    %19 = vector.shape_cast %11 : vector<8x8x128xbf16> to vector<64x128xbf16>
    %20 = vector.shape_cast %13 : vector<8x8x128xbf16> to vector<64x128xbf16>
    %21 = tpu.concatenate %14, %15, %16, %17, %18, %19, %20 in 1 : vector<64x128xbf16>, vector<64x128xbf16>, vector<64x128xbf16>, vector<64x128xbf16>, vector<64x128xbf16>, vector<64x128xbf16>, vector<64x128xbf16> -> vector<64x896xbf16>
    %c0_21 = arith.constant 0 : index
    %c0_22 = arith.constant 0 : index
    %22 = vector.load %arg2[%c0_21, %c0_22] : memref<896x128xbf16, #tpu.memory_space<vmem>>, vector<896x128xbf16>
    %cst = arith.constant dense<0.000000e+00> : vector<64x128xf32>
    %23 = tpu.matmul %21, %22, %cst {dimension_numbers = #tpu.dot_dimension_numbers<[1], [0], [0], [1], [0, 0, 1, 1], [], []>} : vector<64x896xbf16>, vector<896x128xbf16>, vector<64x128xf32> -> vector<64x128xf32>
    %c0_23 = arith.constant 0 : index
    %c0_24 = arith.constant 0 : index
    %24 = vector.load %arg3[%c0_23, %c0_24] : memref<1x128xf32, #tpu.memory_space<vmem>>, vector<1x128xf32>
    %25 = vector.broadcast %24 : vector<1x128xf32> to vector<64x128xf32>
    %26 = arith.mulf %23, %25 : vector<64x128xf32>
    %c0_25 = arith.constant 0 : index
    %c0_26 = arith.constant 0 : index
    %27 = vector.load %arg4[%c0_25, %c0_26] : memref<1x128xf32, #tpu.memory_space<vmem>>, vector<1x128xf32>
    %28 = vector.broadcast %27 : vector<1x128xf32> to vector<64x128xf32>
    %29 = arith.addf %26, %28 : vector<64x128xf32>
    %cst_27 = arith.constant 0.000000e+00 : f32
    %30 = vector.broadcast %cst_27 : f32 to vector<64x128xf32>
    %31 = arith.maximumf %29, %30 : vector<64x128xf32>
    %32 = vector.shape_cast %31 : vector<64x128xf32> to vector<8x8x128xf32>
    %33 = arith.truncf %32 : vector<8x8x128xf32> to vector<8x8x128xbf16>
    %c0_28 = arith.constant 0 : index
    %c0_29 = arith.constant 0 : index
    %c0_30 = arith.constant 0 : index
    %c0_31 = arith.constant 0 : index
    %34 = vector.load %arg5[%c0_28, %c0_29, %c0_30, %c0_31] : memref<1x8x8x128xbf16, #tpu.memory_space<vmem>>, vector<1x8x8x128xbf16>
    %35 = vector.shape_cast %34 : vector<1x8x8x128xbf16> to vector<8x8x128xbf16>
    %36 = vector.shape_cast %33 : vector<8x8x128xbf16> to vector<1x8x8x128xbf16>
    tpu.vector_store %arg5[%c0_28, %c0_29, %c0_30, %c0_31], %36 {strides = array<i32>} : memref<1x8x8x128xbf16, #tpu.memory_space<vmem>>, vector<1x8x8x128xbf16>,
    return
  }
  func.func @transform_0(%arg0: i32) -> (i32, i32, i32, i32) {
    %c0_i32 = arith.constant 0 : i32
    %c0_i32_0 = arith.constant 0 : i32
    %c0_i32_1 = arith.constant 0 : i32
    %c0_i32_2 = arith.constant 0 : i32
    return %arg0, %c0_i32, %c0_i32_0, %c0_i32_1 : i32, i32, i32, i32
  }
  func.func @transform_1(%arg0: i32) -> (i32, i32) {
    %c0_i32 = arith.constant 0 : i32
    %c0_i32_0 = arith.constant 0 : i32
    %c0_i32_1 = arith.constant 0 : i32
    return %c0_i32, %c0_i32_0 : i32, i32
  }
  func.func @transform_2(%arg0: i32) -> (i32, i32) {
    %c0_i32 = arith.constant 0 : i32
    %c0_i32_0 = arith.constant 0 : i32
    %c0_i32_1 = arith.constant 0 : i32
    return %c0_i32, %c0_i32_0 : i32, i32
  }
  func.func @transform_3(%arg0: i32) -> (i32, i32) {
    %c0_i32 = arith.constant 0 : i32
    %c0_i32_0 = arith.constant 0 : i32
    %c0_i32_1 = arith.constant 0 : i32
    return %c0_i32, %c0_i32_0 : i32, i32
  }
  func.func @transform_4(%arg0: i32) -> (i32, i32, i32, i32) {
    %c0_i32 = arith.constant 0 : i32
    %c0_i32_0 = arith.constant 0 : i32
    %c0_i32_1 = arith.constant 0 : i32
    %c0_i32_2 = arith.constant 0 : i32
    return %arg0, %c0_i32, %c0_i32_0, %c0_i32_1 : i32, i32, i32, i32
  }
}

module attributes {stable_mosaic.version = 11 : i64} {
  func.func @_final_kernel(%arg0: i32, %arg1: memref<1x8x8x128xbf16, #tpu.memory_space<vmem>>, %arg2: memref<1x8x8x128xbf16, #tpu.memory_space<vmem>>, %arg3: memref<1x8x8x896xf32, #tpu.memory_space<vmem>>, %arg4: memref<256x896xbf16, #tpu.memory_space<vmem>>, %arg5: memref<1x896xf32, #tpu.memory_space<vmem>>, %arg6: memref<1x8x8x896xf32, #tpu.memory_space<vmem>>) attributes {dimension_semantics = [#tpu.dimension_semantics<parallel>], iteration_bounds = array<i64: 2>, scalar_prefetch = 0 : i64, scratch_operands = 0 : i64, tpu.core_type = #tpu.core_type<tc>, window_params = [{transform_indices = @transform_0, window_bounds = array<i64: 1, 8, 8, 128>}, {transform_indices = @transform_1, window_bounds = array<i64: 1, 8, 8, 128>}, {transform_indices = @transform_2, window_bounds = array<i64: 1, 8, 8, 896>}, {pipeline_mode = #tpu.pipeline_mode<synchronous>, transform_indices = @transform_3, window_bounds = array<i64: 256, 896>}, {pipeline_mode = #tpu.pipeline_mode<synchronous>, transform_indices = @transform_4, window_bounds = array<i64: 1, 896>}, {transform_indices = @transform_5, window_bounds = array<i64: 1, 8, 8, 896>}]} {
    %c0 = arith.constant 0 : index
    %c0_0 = arith.constant 0 : index
    %c0_1 = arith.constant 0 : index
    %c0_2 = arith.constant 0 : index
    %0 = vector.load %arg1[%c0, %c0_0, %c0_1, %c0_2] : memref<1x8x8x128xbf16, #tpu.memory_space<vmem>>, vector<1x8x8x128xbf16>
    %1 = vector.shape_cast %0 : vector<1x8x8x128xbf16> to vector<8x8x128xbf16>
    %2 = vector.shape_cast %1 : vector<8x8x128xbf16> to vector<64x128xbf16>
    %c0_3 = arith.constant 0 : index
    %c0_4 = arith.constant 0 : index
    %3 = vector.load %arg4[%c0_3, %c0_4] : memref<256x896xbf16, #tpu.memory_space<vmem>>, vector<128x896xbf16>
    %cst = arith.constant dense<0.000000e+00> : vector<64x896xf32>
    %4 = tpu.matmul %2, %3, %cst {dimension_numbers = #tpu.dot_dimension_numbers<[1], [0], [0], [1], [0, 0, 1, 1], [], []>} : vector<64x128xbf16>, vector<128x896xbf16>, vector<64x896xf32> -> vector<64x896xf32>
    %c0_5 = arith.constant 0 : index
    %c0_6 = arith.constant 0 : index
    %c0_7 = arith.constant 0 : index
    %c0_8 = arith.constant 0 : index
    %5 = vector.load %arg2[%c0_5, %c0_6, %c0_7, %c0_8] : memref<1x8x8x128xbf16, #tpu.memory_space<vmem>>, vector<1x8x8x128xbf16>
    %6 = vector.shape_cast %5 : vector<1x8x8x128xbf16> to vector<8x8x128xbf16>
    %7 = vector.shape_cast %6 : vector<8x8x128xbf16> to vector<64x128xbf16>
    %c128 = arith.constant 128 : index
    %c0_9 = arith.constant 0 : index
    %8 = vector.load %arg4[%c128, %c0_9] : memref<256x896xbf16, #tpu.memory_space<vmem>>, vector<128x896xbf16>
    %cst_10 = arith.constant dense<0.000000e+00> : vector<64x896xf32>
    %9 = tpu.matmul %7, %8, %cst_10 {dimension_numbers = #tpu.dot_dimension_numbers<[1], [0], [0], [1], [0, 0, 1, 1], [], []>} : vector<64x128xbf16>, vector<128x896xbf16>, vector<64x896xf32> -> vector<64x896xf32>
    %10 = arith.addf %4, %9 : vector<64x896xf32>
    %c0_11 = arith.constant 0 : index
    %c0_12 = arith.constant 0 : index
    %11 = vector.load %arg5[%c0_11, %c0_12] : memref<1x896xf32, #tpu.memory_space<vmem>>, vector<1x896xf32>
    %12 = vector.broadcast %11 : vector<1x896xf32> to vector<64x896xf32>
    %13 = arith.addf %10, %12 : vector<64x896xf32>
    %c0_13 = arith.constant 0 : index
    %c0_14 = arith.constant 0 : index
    %c0_15 = arith.constant 0 : index
    %c0_16 = arith.constant 0 : index
    %14 = vector.load %arg3[%c0_13, %c0_14, %c0_15, %c0_16] : memref<1x8x8x896xf32, #tpu.memory_space<vmem>>, vector<1x8x8x896xf32>
    %15 = vector.shape_cast %14 : vector<1x8x8x896xf32> to vector<8x8x896xf32>
    %16 = vector.shape_cast %15 : vector<8x8x896xf32> to vector<64x896xf32>
    %17 = arith.addf %13, %16 : vector<64x896xf32>
    %cst_17 = arith.constant 0.000000e+00 : f32
    %18 = vector.broadcast %cst_17 : f32 to vector<64x896xf32>
    %19 = arith.maximumf %17, %18 : vector<64x896xf32>
    %20 = vector.shape_cast %19 : vector<64x896xf32> to vector<8x8x896xf32>
    %c0_18 = arith.constant 0 : index
    %c0_19 = arith.constant 0 : index
    %c0_20 = arith.constant 0 : index
    %c0_21 = arith.constant 0 : index
    %21 = vector.load %arg6[%c0_18, %c0_19, %c0_20, %c0_21] : memref<1x8x8x896xf32, #tpu.memory_space<vmem>>, vector<1x8x8x896xf32>
    %22 = vector.shape_cast %21 : vector<1x8x8x896xf32> to vector<8x8x896xf32>
    %23 = vector.shape_cast %20 : vector<8x8x896xf32> to vector<1x8x8x896xf32>
    tpu.vector_store %arg6[%c0_18, %c0_19, %c0_20, %c0_21], %23 {strides = array<i32>} : memref<1x8x8x896xf32, #tpu.memory_space<vmem>>, vector<1x8x8x896xf32>,
    return
  }
  func.func @transform_0(%arg0: i32) -> (i32, i32, i32, i32) {
    %c0_i32 = arith.constant 0 : i32
    %c0_i32_0 = arith.constant 0 : i32
    %c0_i32_1 = arith.constant 0 : i32
    %c0_i32_2 = arith.constant 0 : i32
    return %arg0, %c0_i32, %c0_i32_0, %c0_i32_1 : i32, i32, i32, i32
  }
  func.func @transform_1(%arg0: i32) -> (i32, i32, i32, i32) {
    %c0_i32 = arith.constant 0 : i32
    %c0_i32_0 = arith.constant 0 : i32
    %c0_i32_1 = arith.constant 0 : i32
    %c0_i32_2 = arith.constant 0 : i32
    return %arg0, %c0_i32, %c0_i32_0, %c0_i32_1 : i32, i32, i32, i32
  }
  func.func @transform_2(%arg0: i32) -> (i32, i32, i32, i32) {
    %c0_i32 = arith.constant 0 : i32
    %c0_i32_0 = arith.constant 0 : i32
    %c0_i32_1 = arith.constant 0 : i32
    %c0_i32_2 = arith.constant 0 : i32
    return %arg0, %c0_i32, %c0_i32_0, %c0_i32_1 : i32, i32, i32, i32
  }
  func.func @transform_3(%arg0: i32) -> (i32, i32) {
    %c0_i32 = arith.constant 0 : i32
    %c0_i32_0 = arith.constant 0 : i32
    %c0_i32_1 = arith.constant 0 : i32
    return %c0_i32, %c0_i32_0 : i32, i32
  }
  func.func @transform_4(%arg0: i32) -> (i32, i32) {
    %c0_i32 = arith.constant 0 : i32
    %c0_i32_0 = arith.constant 0 : i32
    %c0_i32_1 = arith.constant 0 : i32
    return %c0_i32, %c0_i32_0 : i32, i32
  }
  func.func @transform_5(%arg0: i32) -> (i32, i32, i32, i32) {
    %c0_i32 = arith.constant 0 : i32
    %c0_i32_0 = arith.constant 0 : i32
    %c0_i32_1 = arith.constant 0 : i32
    %c0_i32_2 = arith.constant 0 : i32
    return %arg0, %c0_i32, %c0_i32_0, %c0_i32_1 : i32, i32, i32, i32
  }
}

</mosaic_0001>

<bundles_post_ra>
// kernel: block17_forward.4
= control target key start
LH: loop header
LB: loop body
LE: loop exit
PB: predicated region body
PF: predicated region fallthrough
CT: control target
= control target key end

     0   :  { %s2028_s18 = smov 0   ;;  %s2540_s0 = inlined_call_operand.vmem [shape: bf16[2,8,8,896], index: 0, kind: input, shape index: {}]   ;;  %s2541_s1 = inlined_call_operand.vmem [shape: bf16[896,256], index: 1, kind: input, shape index: {}]   ;;  %s2542_s2 = inlined_call_operand.vmem [shape: f32[1,256], index: 2, kind: input, shape index: {}]   ;;  %s2543_s3 = inlined_call_operand.vmem [shape: f32[1,256], index: 3, kind: input, shape index: {}]   ;;  %s2544_s4 = inlined_call_operand.vmem [shape: bf16[2,8,8,128], index: 4, kind: output, shape index: {0}]   ;;  %s2545_s5 = inlined_call_operand.vmem [shape: bf16[2,8,8,128], index: 5, kind: output, shape index: {1}]  }
   0x1 LB: > { %s1571_s19 = sadd.s32 4294967295, %s1995_s18   ;;  %p1575_p0 = scmp.ge.s32.totalorder %s1995_s18, 1  ;;  %s1995_s18 = sphi %s2028_s18, %s16_s18  }
   0x2   : > { %p190_p1 = scmp.lt.s32.totalorder %s1995_s18, 3 }
   0x4   : > { %p191_p2 = pnand %p1575_p0, %p190_p1 }
   0x5   : > { %p223_p3 = scmp.lt.s32.totalorder (!%p191_p2), %s1571_s19, 1 }
   0x6   : > { %194 = sbr.rel (%p191_p2) target bundleno = 376 (0x178), region = 36 }
   0xb   : > { %v1781_v0 = vld [vmem:[%s2541_s1 + $0x74] ss:$8 sps:$4 sm:$0xff]   ;;  %v1785_v2 = vld [vmem:[%s2541_s1 + $0x70] ss:$8 sps:$4 sm:$0xff]   ;;  %v1787_v4 = vld [vmem:[%s2541_s1 + $0x64] ss:$8 sps:$4 sm:$0xff]  }
   0xc   : > { %v1783_v1 = vld [vmem:[%s2541_s1 + $0x174] ss:$8 sps:$4 sm:$0xff]   ;;  %1087 = vmatprep.subr.bf16.mxu0 %v1781_v0  ;;  %v1786_v3 = vld [vmem:[%s2541_s1 + $0x170] ss:$8 sps:$4 sm:$0xff]   ;;  %v1789_v5 = vld [vmem:[%s2541_s1 + $0x164] ss:$8 sps:$4 sm:$0xff]  }
   0xd   : > { %1160 = vmatprep.subr.bf16.mxu1 %v1783_v1  ;;  %1088 = vmatpush1.bf16.msra.mxu0 %v1785_v2  ;;  %v1791_v6 = vld [vmem:[%s2541_s1 + $0x60] ss:$8 sps:$4 sm:$0xff]   ;;  %v1793_v8 = vld [vmem:[%s2541_s1 + $0x54] ss:$8 sps:$4 sm:$0xff]   ;;  %v1797_v10 = vld [vmem:[%s2541_s1 + $0x50] ss:$8 sps:$4 sm:$0xff]  }
   0xe   : > { %1161 = vmatpush1.bf16.msra.mxu1 %v1786_v3  ;;  %1089 = vmatprep.subr.bf16.mxu0 %v1787_v4  ;;  %v1792_v7 = vld [vmem:[%s2541_s1 + $0x160] ss:$8 sps:$4 sm:$0xff]   ;;  %v1795_v9 = vld [vmem:[%s2541_s1 + $0x154] ss:$8 sps:$4 sm:$0xff]   ;;  %v1798_v11 = vld [vmem:[%s2541_s1 + $0x150] ss:$8 sps:$4 sm:$0xff]  }
   0xf   : > { %1162 = vmatprep.subr.bf16.mxu1 %v1789_v5  ;;  %v1799_v12 = vld [vmem:[%s2541_s1 + $0x44] ss:$8 sps:$4 sm:$0xff]   ;;  %v1803_v14 = vld [vmem:[%s2541_s1 + $0x40] ss:$8 sps:$4 sm:$0xff]   ;;  %v1805_v16 = vld [vmem:[%s2541_s1 + $0x34] ss:$8 sps:$4 sm:$0xff]  }
  0x10   : > { %v1801_v13 = vld [vmem:[%s2541_s1 + $0x144] ss:$8 sps:$4 sm:$0xff]   ;;  %v1804_v15 = vld [vmem:[%s2541_s1 + $0x140] ss:$8 sps:$4 sm:$0xff]   ;;  %v1807_v17 = vld [vmem:[%s2541_s1 + $0x134] ss:$8 sps:$4 sm:$0xff]  }
  0x11   : > { %1090 = vmatpush1.bf16.msra.mxu0 %v1791_v6  ;;  %v1809_v18 = vld [vmem:[%s2541_s1 + $0x30] ss:$8 sps:$4 sm:$0xff]   ;;  %v1811_v20 = vld [vmem:[%s2541_s1 + $0x24] ss:$8 sps:$4 sm:$0xff]   ;;  %v1815_v22 = vld [vmem:[%s2541_s1 + $0x20] ss:$8 sps:$4 sm:$0xff]  }
  0x12   : > { %1163 = vmatpush1.bf16.msra.mxu1 %v1792_v7  ;;  %1091 = vmatprep.subr.bf16.mxu0 %v1793_v8  ;;  %v1810_v19 = vld [vmem:[%s2541_s1 + $0x130] ss:$8 sps:$4 sm:$0xff]   ;;  %v1813_v21 = vld [vmem:[%s2541_s1 + $0x124] ss:$8 sps:$4 sm:$0xff]   ;;  %v1816_v23 = vld [vmem:[%s2541_s1 + $0x120] ss:$8 sps:$4 sm:$0xff]  }
  0x13   : > { %1164 = vmatprep.subr.bf16.mxu1 %v1795_v9  ;;  %v1817_v24 = vld [vmem:[%s2541_s1 + $0x14] ss:$8 sps:$4 sm:$0xff]   ;;  %v1821_v26 = vld [vmem:[%s2541_s1 + $0x10] ss:$8 sps:$4 sm:$0xff]   ;;  %v1823_v28 = vld [vmem:[%s2541_s1 + $0x4] ss:$8 sps:$4 sm:$0xff]  }
  0x14   : > { %v1819_v25 = vld [vmem:[%s2541_s1 + $0x114] ss:$8 sps:$4 sm:$0xff]   ;;  %v1822_v27 = vld [vmem:[%s2541_s1 + $0x110] ss:$8 sps:$4 sm:$0xff]   ;;  %v1825_v29 = vld [vmem:[%s2541_s1 + $0x104] ss:$8 sps:$4 sm:$0xff]  }
  0x15   : > { %1092 = vmatpush1.bf16.msra.mxu0 %v1797_v10  ;;  %v1827_v30 = vld [vmem:[%s2541_s1] ss:$8 sps:$4 sm:$0xff]   ;;  %v1829_v32 = vld [vmem:[%s2541_s1 + $0xf4] ss:$8 sps:$4 sm:$0xff]   ;;  %v1833_v34 = vld [vmem:[%s2541_s1 + $0xf0] ss:$8 sps:$4 sm:$0xff]  }
  0x16   : > { %1165 = vmatpush1.bf16.msra.mxu1 %v1798_v11  ;;  %1093 = vmatprep.subr.bf16.mxu0 %v1799_v12  ;;  %v1828_v31 = vld [vmem:[%s2541_s1 + $0x100] ss:$8 sps:$4 sm:$0xff]   ;;  %v1831_v33 = vld [vmem:[%s2541_s1 + $0x1f4] ss:$8 sps:$4 sm:$0xff]   ;;  %v1834_v35 = vld [vmem:[%s2541_s1 + $0x1f0] ss:$8 sps:$4 sm:$0xff]  }
  0x17   : > { %1166 = vmatprep.subr.bf16.mxu1 %v1801_v13  ;;  %v1835_v36 = vld [vmem:[%s2541_s1 + $0xe4] ss:$8 sps:$4 sm:$0xff]   ;;  %s2547_s19 = smov (!%p223_p3, %s1571_s19), 1  ;;  %v1839_v38 = vld [vmem:[%s2541_s1 + $0xe0] ss:$8 sps:$4 sm:$0xff]  }
  0x18   : > { %v1837_v37 = vld [vmem:[%s2541_s1 + $0x1e4] ss:$8 sps:$4 sm:$0xff]   ;;  %v1840_v39 = vld [vmem:[%s2541_s1 + $0x1e0] ss:$8 sps:$4 sm:$0xff]   ;;  %v1841_v40 = vld [vmem:[%s2541_s1 + $0xd4] ss:$8 sps:$4 sm:$0xff]  }
  0x19   : > { %1094 = vmatpush1.bf16.msra.mxu0 %v1803_v14  ;;  %s1771_s8 = smul.u32 224, %s2547_s19  ;;  %v1843_v41 = vld [vmem:[%s2541_s1 + $0x1d4] ss:$8 sps:$4 sm:$0xff]   ;;  %v1845_v42 = vld [vmem:[%s2541_s1 + $0xd0] ss:$8 sps:$4 sm:$0xff]   ;;  %s1723_s27 = sshll.u32 %s2547_s19, 5 }
  0x1a   : > { %1167 = vmatpush1.bf16.msra.mxu1 %v1804_v15  ;;  %1095 = vmatprep.subr.bf16.mxu0 %v1805_v16  ;;  %v1846_v43 = vld [vmem:[%s2541_s1 + $0x1d0] ss:$8 sps:$4 sm:$0xff]   ;;  %v1847_v44 = vld [vmem:[%s2541_s1 + $0xc4] ss:$8 sps:$4 sm:$0xff]   ;;  %v1851_v46 = vld [vmem:[%s2541_s1 + $0xc0] ss:$8 sps:$4 sm:$0xff]   ;;  %s2484_s29 = scalar_lea.vmem %s2544_s4, %s1723_s27  ;;  %s2491_s7 = scalar_lea.vmem %s2545_s5, %s1723_s27 }
  0x1b   : > { %1168 = vmatprep.subr.bf16.mxu1 %v1807_v17  ;;  %s2181_s21 = scalar_lea.vmem %s2540_s0, %s1771_s8  ;;  %v1849_v45 = vld [vmem:[%s2541_s1 + $0x1c4] ss:$8 sps:$4 sm:$0xff]   ;;  %v1852_v47 = vld [vmem:[%s2541_s1 + $0x1c0] ss:$8 sps:$4 sm:$0xff]   ;;  %v1853_v48 = vld [vmem:[%s2541_s1 + $0xb4] ss:$8 sps:$4 sm:$0xff]  }
  0x1c   : > { %v1879_v49 = vld [vmem:[%s2181_s21 + $0x4] ss:$28 sps:$4 sm:$0xff]   ;;  %v1855_v50 = vld [vmem:[%s2541_s1 + $0x1b4] ss:$8 sps:$4 sm:$0xff]   ;;  %v1882_v51 = vld [vmem:[%s2181_s21 + $0xc] ss:$28 sps:$4 sm:$0xff]  }
  0x1d   : > { %1096 = vmatpush1.bf16.msra.mxu0 %v1809_v18  ;;  %1119 = vmatprep.mubr.bf16.mxu0 %v1879_v49  ;;  %v1857_v52 = vld [vmem:[%s2541_s1 + $0xb0] ss:$8 sps:$4 sm:$0xff]   ;;  %v1859_v54 = vld [vmem:[%s2541_s1 + $0xa4] ss:$8 sps:$4 sm:$0xff]   ;;  %v1863_v56 = vld [vmem:[%s2541_s1 + $0xa0] ss:$8 sps:$4 sm:$0xff]  }
  0x1e   : > { %1169 = vmatpush1.bf16.msra.mxu1 %v1810_v19  ;;  %1097 = vmatprep.subr.bf16.mxu0 %v1811_v20  ;;  %v1858_v53 = vld [vmem:[%s2541_s1 + $0x1b0] ss:$8 sps:$4 sm:$0xff]   ;;  %v1861_v55 = vld [vmem:[%s2541_s1 + $0x1a4] ss:$8 sps:$4 sm:$0xff]   ;;  %v1864_v57 = vld [vmem:[%s2541_s1 + $0x1a0] ss:$8 sps:$4 sm:$0xff]  }
  0x1f   : > { %1170 = vmatprep.subr.bf16.mxu1 %v1813_v21  ;;  %1192 = vmatprep.mubr.bf16.mxu1 %v1882_v51  ;;  %v1865_v58 = vld [vmem:[%s2541_s1 + $0x94] ss:$8 sps:$4 sm:$0xff]   ;;  %v1869_v60 = vld [vmem:[%s2541_s1 + $0x90] ss:$8 sps:$4 sm:$0xff]   ;;  %v1871_v62 = vld [vmem:[%s2541_s1 + $0x84] ss:$8 sps:$4 sm:$0xff]  }
  0x20   : > { %v1867_v59 = vld [vmem:[%s2541_s1 + $0x194] ss:$8 sps:$4 sm:$0xff]   ;;  %v1870_v61 = vld [vmem:[%s2541_s1 + $0x190] ss:$8 sps:$4 sm:$0xff]   ;;  %v1873_v63 = vld [vmem:[%s2541_s1 + $0x184] ss:$8 sps:$4 sm:$0xff]  }
  0x21   : > { %1098 = vmatpush1.bf16.msra.mxu0 %v1815_v22  ;;  %v1875_v0 = vld [vmem:[%s2541_s1 + $0x80] ss:$8 sps:$4 sm:$0xff]   ;;  %v1885_v2 = vld [vmem:[%s2541_s1 + $0x274] ss:$8 sps:$4 sm:$0xff]   ;;  %v1883_v6 = vld [vmem:[%s2541_s1 + $0x270] ss:$8 sps:$4 sm:$0xff]  }
  0x22   : > { %1171 = vmatpush1.bf16.msra.mxu1 %v1816_v23  ;;  %1099 = vmatprep.subr.bf16.mxu0 %v1817_v24  ;;  %v1876_v1 = vld [vmem:[%s2541_s1 + $0x180] ss:$8 sps:$4 sm:$0xff]   ;;  %v1909_v3 = vld [vmem:[%s2541_s1 + $0x374] ss:$8 sps:$4 sm:$0xff]   ;;  %v1888_v7 = vld [vmem:[%s2541_s1 + $0x264] ss:$8 sps:$4 sm:$0xff]  }
  0x23   : > { %1172 = vmatprep.subr.bf16.mxu1 %v1819_v25  ;;  %v1877_v4 = vld [vmem:[%s2181_s21] ss:$28 sps:$4 sm:$0xff]   ;;  %v1880_v5 = vld [vmem:[%s2181_s21 + $0x8] ss:$28 sps:$4 sm:$0xff]   ;;  %v1907_v8 = vld [vmem:[%s2541_s1 + $0x370] ss:$8 sps:$4 sm:$0xff]  }
  0x24   : > { %v1915_v9 = vld [vmem:[%s2541_s1 + $0x364] ss:$8 sps:$4 sm:$0xff]   ;;  %v1916_v10 = vld [vmem:[%s2181_s21 + $0x3c] ss:$28 sps:$4 sm:$0xff]   ;;  %v1886_v12 = vld [vmem:[%s2541_s1 + $0x260] ss:$8 sps:$4 sm:$0xff]  }
  0x25   : > { %1100 = vmatpush1.bf16.msra.mxu0 %v1821_v26  ;;  %v1918_v11 = vld [vmem:[%s2181_s21 + $0x44] ss:$28 sps:$4 sm:$0xff]   ;;  %v1891_v13 = vld [vmem:[%s2541_s1 + $0x254] ss:$8 sps:$4 sm:$0xff]   ;;  %v1889_v16 = vld [vmem:[%s2541_s1 + $0x250] ss:$8 sps:$4 sm:$0xff]  }
  0x26   : > { %1173 = vmatpush1.bf16.msra.mxu1 %v1822_v27  ;;  %1101 = vmatprep.subr.bf16.mxu0 %v1823_v28  ;;  %v1913_v14 = vld [vmem:[%s2541_s1 + $0x360] ss:$8 sps:$4 sm:$0xff]   ;;  %v1927_v15 = vld [vmem:[%s2541_s1 + $0x354] ss:$8 sps:$4 sm:$0xff]   ;;  %v1894_v17 = vld [vmem:[%s2541_s1 + $0x244] ss:$8 sps:$4 sm:$0xff]  }
  0x27   : > { %1174 = vmatprep.subr.bf16.mxu1 %v1825_v29  ;;  %v1920_v18 = vld [vmem:[%s2181_s21 + $0x38] ss:$28 sps:$4 sm:$0xff]   ;;  %v1921_v19 = vld [vmem:[%s2181_s21 + $0x40] ss:$28 sps:$4 sm:$0xff]   ;;  %v1933_v21 = vld [vmem:[%s2541_s1 + $0x344] ss:$8 sps:$4 sm:$0xff]  }
  0x28   : > { %v1925_v20 = vld [vmem:[%s2541_s1 + $0x350] ss:$8 sps:$4 sm:$0xff]   ;;  %v1892_v24 = vld [vmem:[%s2541_s1 + $0x240] ss:$8 sps:$4 sm:$0xff]   ;;  %v1897_v25 = vld [vmem:[%s2541_s1 + $0x234] ss:$8 sps:$4 sm:$0xff]  }
  0x29   : > { %1102 = vmatpush1.bf16.msra.mxu0 %v1827_v30  ;;  %v1934_v22 = vld [vmem:[%s2181_s21 + $0x74] ss:$28 sps:$4 sm:$0xff]   ;;  %v1936_v23 = vld [vmem:[%s2181_s21 + $0x7c] ss:$28 sps:$4 sm:$0xff]   ;;  %v1931_v26 = vld [vmem:[%s2541_s1 + $0x340] ss:$8 sps:$4 sm:$0xff]  }
  0x2a   : > { %1175 = vmatpush1.bf16.msra.mxu1 %v1828_v31  ;;  %1103 = vmatprep.subr.bf16.mxu0 %v1829_v32  ;;  %v1945_v27 = vld [vmem:[%s2541_s1 + $0x334] ss:$8 sps:$4 sm:$0xff]   ;;  %v1895_v28 = vld [vmem:[%s2541_s1 + $0x230] ss:$8 sps:$4 sm:$0xff]   ;;  %v1900_v29 = vld [vmem:[%s2541_s1 + $0x224] ss:$8 sps:$4 sm:$0xff]  }
  0x2b   : > { %1176 = vmatprep.subr.bf16.mxu1 %v1831_v33  ;;  %v1938_v30 = vld [vmem:[%s2181_s21 + $0x70] ss:$28 sps:$4 sm:$0xff]   ;;  %v1939_v31 = vld [vmem:[%s2181_s21 + $0x78] ss:$28 sps:$4 sm:$0xff]  }
  0x2c   : > { %v1943_v32 = vld [vmem:[%s2541_s1 + $0x330] ss:$8 sps:$4 sm:$0xff]   ;;  %v1951_v33 = vld [vmem:[%s2541_s1 + $0x324] ss:$8 sps:$4 sm:$0xff]   ;;  %v1912_v49 = vld [vmem:[%s2541_s1 + $0x2f4] ss:$8 sps:$4 sm:$0xff]  }
  0x2d   : > { %1104 = vmatpush2.bf16.msra.mxu0 %v1833_v34  ;;  %v1952_v34 = vld [vmem:[%s2181_s21 + $0xac] ss:$28 sps:$4 sm:$0xff]   ;;  %v1973_v51 = vld [vmem:[%s2181_s21 + $0x18] ss:$28 sps:$4 sm:$0xff]  }
  0x2e   : > { %1177 = vmatpush2.bf16.msra.mxu1 %v1834_v35  ;;  %1105 = vmatprep.subr.bf16.mxu0 %v1835_v36  ;;  %v1954_v35 = vld [vmem:[%s2181_s21 + $0xb4] ss:$28 sps:$4 sm:$0xff]   ;;  %v1898_v36 = vld [vmem:[%s2541_s1 + $0x220] ss:$8 sps:$4 sm:$0xff]  }
  0x2f   : > { %1178 = vmatprep.subr.bf16.mxu1 %v1837_v37  ;;  %v1903_v37 = vld [vmem:[%s2541_s1 + $0x214] ss:$8 sps:$4 sm:$0xff]  }
  0x31   : > { %1106 = vmatpush2.bf16.msra.mxu0 %v1839_v38  ;;  %v1949_v38 = vld [vmem:[%s2541_s1 + $0x320] ss:$8 sps:$4 sm:$0xff]  }
  0x32   : > { %1179 = vmatpush2.bf16.msra.mxu1 %v1840_v39  ;;  %1107 = vmatprep.subr.bf16.mxu0 %v1841_v40  ;;  %v1963_v39 = vld [vmem:[%s2541_s1 + $0x314] ss:$8 sps:$4 sm:$0xff]   ;;  %v1901_v40 = vld [vmem:[%s2541_s1 + $0x210] ss:$8 sps:$4 sm:$0xff]  }
  0x33   : > { %1180 = vmatprep.subr.bf16.mxu1 %v1843_v41  ;;  %v1956_v41 = vld [vmem:[%s2181_s21 + $0xa8] ss:$28 sps:$4 sm:$0xff]  }
  0x35   : > { %1108 = vmatpush2.bf16.msra.mxu0 %v1845_v42  ;;  %v1957_v42 = vld [vmem:[%s2181_s21 + $0xb0] ss:$28 sps:$4 sm:$0xff]  }
  0x36   : > { %1181 = vmatpush2.bf16.msra.mxu1 %v1846_v43  ;;  %1109 = vmatprep.subr.bf16.mxu0 %v1847_v44  ;;  %v1961_v43 = vld [vmem:[%s2541_s1 + $0x310] ss:$8 sps:$4 sm:$0xff]   ;;  %v1906_v44 = vld [vmem:[%s2541_s1 + $0x204] ss:$8 sps:$4 sm:$0xff]  }
  0x37   : > { %1182 = vmatprep.subr.bf16.mxu1 %v1849_v45  ;;  %v1969_v45 = vld [vmem:[%s2541_s1 + $0x304] ss:$8 sps:$4 sm:$0xff]  }
  0x39   : > { %1110 = vmatpush2.bf16.msra.mxu0 %v1851_v46  ;;  %v1976_v46 = vld [vmem:[%s2181_s21 + $0x14] ss:$28 sps:$4 sm:$0xff]  }
  0x3a   : > { %1183 = vmatpush2.bf16.msra.mxu1 %v1852_v47  ;;  %1111 = vmatprep.subr.bf16.mxu0 %v1853_v48  ;;  %v1904_v47 = vld [vmem:[%s2541_s1 + $0x200] ss:$8 sps:$4 sm:$0xff]  }
  0x3b   : > { %1184 = vmatprep.subr.bf16.mxu1 %v1855_v50  ;;  %v1967_v48 = vld [vmem:[%s2541_s1 + $0x300] ss:$8 sps:$4 sm:$0xff]   ;;  %v1997_v50 = vmov 0  }
  0x3d   : > { %1112 = vmatpush2.bf16.msra.mxu0 %v1857_v52  ;;  %v1910_v52 = vld [vmem:[%s2541_s1 + $0x2f0] ss:$8 sps:$4 sm:$0xff]  }
  0x3e   : > { %1185 = vmatpush2.bf16.msra.mxu1 %v1858_v53  ;;  %1113 = vmatprep.subr.bf16.mxu0 %v1859_v54  ;;  %v1924_v53 = vld [vmem:[%s2541_s1 + $0x2e4] ss:$8 sps:$4 sm:$0xff]   ;;  %v1922_v54 = vld [vmem:[%s2541_s1 + $0x2e0] ss:$8 sps:$4 sm:$0xff]  }
  0x3f   : > { %1186 = vmatprep.subr.bf16.mxu1 %v1861_v55  ;;  %v1930_v55 = vld [vmem:[%s2541_s1 + $0x2d4] ss:$8 sps:$4 sm:$0xff]  }
  0x41   : > { %1114 = vmatpush2.bf16.msra.mxu0 %v1863_v56  ;;  %v1977_v56 = vld [vmem:[%s2181_s21 + $0x50] ss:$28 sps:$4 sm:$0xff]  }
  0x42   : > { %1187 = vmatpush2.bf16.msra.mxu1 %v1864_v57  ;;  %1115 = vmatprep.subr.bf16.mxu0 %v1865_v58  ;;  %v1928_v57 = vld [vmem:[%s2541_s1 + $0x2d0] ss:$8 sps:$4 sm:$0xff]   ;;  %v1942_v58 = vld [vmem:[%s2541_s1 + $0x2c4] ss:$8 sps:$4 sm:$0xff]  }
  0x43   : > { %1188 = vmatprep.subr.bf16.mxu1 %v1867_v59  ;;  %v1940_v59 = vld [vmem:[%s2541_s1 + $0x2c0] ss:$8 sps:$4 sm:$0xff]  }
  0x45   : > { %1116 = vmatpush2.bf16.msra.mxu0 %v1869_v60  ;;  %v1948_v60 = vld [vmem:[%s2541_s1 + $0x2b4] ss:$8 sps:$4 sm:$0xff]  }
  0x46   : > { %1189 = vmatpush2.bf16.msra.mxu1 %v1870_v61  ;;  %1117 = vmatprep.subr.bf16.mxu0 %v1871_v62  ;;  %v1981_v61 = vld [vmem:[%s2181_s21 + $0x88] ss:$28 sps:$4 sm:$0xff]   ;;  %v1946_v62 = vld [vmem:[%s2541_s1 + $0x2b0] ss:$8 sps:$4 sm:$0xff]  }
  0x47   : > { %1190 = vmatprep.subr.bf16.mxu1 %v1873_v63  ;;  %v1960_v63 = vld [vmem:[%s2541_s1 + $0x2a4] ss:$8 sps:$4 sm:$0xff]  }
  0x49   : > { %1118 = vmatpush2.bf16.msra.mxu0 %v1875_v0  ;;  %v1958_v0 = vld [vmem:[%s2541_s1 + $0x2a0] ss:$8 sps:$4 sm:$0xff]  }
  0x4a   : > { %1191 = vmatpush2.bf16.msra.mxu1 %v1876_v1  ;;  %1233 = vmatprep.subr.bf16.mxu0 %v1885_v2  ;;  %v1966_v1 = vld [vmem:[%s2541_s1 + $0x294] ss:$8 sps:$4 sm:$0xff]  }
  0x4b   : > { %1306 = vmatprep.subr.bf16.mxu1 %v1909_v3  ;;  %v1985_v2 = vld [vmem:[%s2181_s21 + $0xc0] ss:$28 sps:$4 sm:$0xff]   ;;  %v1964_v3 = vld [vmem:[%s2541_s1 + $0x290] ss:$8 sps:$4 sm:$0xff]  }
  0x4c   : > { %1120 = vmatmul.mubr.bf16.vlgmr.msra.gmra.mxu0 %v1877_v4  ;;  %v1972_v4 = vld [vmem:[%s2541_s1 + $0x284] ss:$8 sps:$4 sm:$0xff]  }
  0x4d   : > { %1193 = vmatmul.mubr.bf16.vlgmr.msra.gmra.mxu1 %v1880_v5  ;;  %1234 = vmatpush1.bf16.msra.mxu0 %v1883_v6  ;;  %v1970_v5 = vld [vmem:[%s2541_s1 + $0x280] ss:$8 sps:$4 sm:$0xff]   ;;  %v1974_v6 = vld [vmem:[%s2181_s21 + $0x10] ss:$28 sps:$4 sm:$0xff]  }
  0x4e   : > { %1307 = vmatpush1.bf16.msra.mxu1 %v1907_v8  ;;  %1235 = vmatprep.subr.bf16.mxu0 %v1888_v7  ;;  %v1978_v7 = vld [vmem:[%s2181_s21 + $0x4c] ss:$28 sps:$4 sm:$0xff]  }
  0x4f   : > { %1308 = vmatprep.subr.bf16.mxu1 %v1915_v9  ;;  %1129 = vmatprep.mubr.bf16.mxu0 %v1916_v10  ;;  %v1980_v8 = vld [vmem:[%s2181_s21 + $0x48] ss:$28 sps:$4 sm:$0xff]   ;;  %v1984_v10 = vld [vmem:[%s2181_s21 + $0x80] ss:$28 sps:$4 sm:$0xff]  }
  0x50   : > { %1202 = vmatprep.mubr.bf16.mxu1 %v1918_v11  ;;  %v1982_v9 = vld [vmem:[%s2181_s21 + $0x84] ss:$28 sps:$4 sm:$0xff]   ;;  %v1986_v11 = vld [vmem:[%s2181_s21 + $0xbc] ss:$28 sps:$4 sm:$0xff]  }
  0x51   : > { %1236 = vmatpush1.bf16.msra.mxu0 %v1886_v12  ;;  %v1988_v12 = vld [vmem:[%s2181_s21 + $0xb8] ss:$28 sps:$4 sm:$0xff]  }
  0x52   : > { %1309 = vmatpush1.bf16.msra.mxu1 %v1913_v14  ;;  %1237 = vmatprep.subr.bf16.mxu0 %v1891_v13 }
  0x53   : > { %1310 = vmatprep.subr.bf16.mxu1 %v1927_v15 }
  0x54   : > { %1130 = vmatmul.mubr.bf16.gmra.mxu0 %v1920_v18 }
  0x55   : > { %1203 = vmatmul.mubr.bf16.gmra.mxu1 %v1921_v19  ;;  %1238 = vmatpush1.bf16.msra.mxu0 %v1889_v16 }
  0x56   : > { %1311 = vmatpush1.bf16.msra.mxu1 %v1925_v20  ;;  %1239 = vmatprep.subr.bf16.mxu0 %v1894_v17 }
  0x57   : > { %1312 = vmatprep.subr.bf16.mxu1 %v1933_v21  ;;  %1139 = vmatprep.mubr.bf16.mxu0 %v1934_v22 }
  0x58   : > { %1212 = vmatprep.mubr.bf16.mxu1 %v1936_v23 }
  0x59   : > { %1240 = vmatpush1.bf16.msra.mxu0 %v1892_v24 }
  0x5a   : > { %1313 = vmatpush1.bf16.msra.mxu1 %v1931_v26  ;;  %1241 = vmatprep.subr.bf16.mxu0 %v1897_v25 }
  0x5b   : > { %1314 = vmatprep.subr.bf16.mxu1 %v1945_v27 }
  0x5c   : > { %1140 = vmatmul.mubr.bf16.gmra.mxu0 %v1938_v30 }
  0x5d   : > { %1213 = vmatmul.mubr.bf16.gmra.mxu1 %v1939_v31  ;;  %1242 = vmatpush1.bf16.msra.mxu0 %v1895_v28 }
  0x5e   : > { %1315 = vmatpush1.bf16.msra.mxu1 %v1943_v32  ;;  %1243 = vmatprep.subr.bf16.mxu0 %v1900_v29 }
  0x5f   : > { %1316 = vmatprep.subr.bf16.mxu1 %v1951_v33  ;;  %1149 = vmatprep.mubr.bf16.mxu0 %v1952_v34 }
  0x60   : > { %1222 = vmatprep.mubr.bf16.mxu1 %v1954_v35 }
  0x61   : > { %1244 = vmatpush1.bf16.msra.mxu0 %v1898_v36 }
  0x62   : > { %1317 = vmatpush1.bf16.msra.mxu1 %v1949_v38  ;;  %1245 = vmatprep.subr.bf16.mxu0 %v1903_v37 }
  0x63   : > { %1318 = vmatprep.subr.bf16.mxu1 %v1963_v39 }
  0x64   : > { %1150 = vmatmul.mubr.bf16.gmra.mxu0 %v1956_v41 }
  0x65   : > { %1223 = vmatmul.mubr.bf16.gmra.mxu1 %v1957_v42  ;;  %1246 = vmatpush1.bf16.msra.mxu0 %v1901_v40 }
  0x66   : > { %1319 = vmatpush1.bf16.msra.mxu1 %v1961_v43  ;;  %1247 = vmatprep.subr.bf16.mxu0 %v1906_v44 }
  0x67   : > { %1320 = vmatprep.subr.bf16.mxu1 %v1969_v45  ;;  %1338 = vmatprep.mubr.bf16.mxu1 %v1997_v50 }
  0x68   : > { %1265 = vmatprep.mubr.bf16.mxu0 %v1976_v46  ;;  %v1381_v46 = vlaneseq }
  0x69   : > { %1248 = vmatpush1.bf16.msra.mxu0 %v1904_v47 }
  0x6a   : > { %1321 = vmatpush1.bf16.msra.mxu1 %v1967_v48  ;;  %1249 = vmatprep.subr.bf16.mxu0 %v1912_v49  ;;  %v1382_v49 = vshrl.u32 %v1381_v46, 7 }
  0x6d   : > { %1339 = vmatmul.mubr.bf16.vlgmr.msra.gmra.mxu1 %v1973_v51  ;;  %1250 = vmatpush2.bf16.msra.mxu0 %v1910_v52  ;;  %v1383_v52 = vsub.s32 0, %v1382_v49 }
  0x6e   : > { %1348 = vmatprep.mubr.bf16.mxu1 %v1997_v50  ;;  %1251 = vmatprep.subr.bf16.mxu0 %v1924_v53 }
  0x71   : > { %1252 = vmatpush2.bf16.msra.mxu0 %v1922_v54 }
  0x72   : > { %1253 = vmatprep.subr.bf16.mxu0 %v1930_v55  ;;  %v1379_v55 = vld [vmem:[%s2542_s2] sm:$0x3] }
  0x75   : > { %1349 = vmatmul.mubr.bf16.gmra.mxu1 %v1977_v56  ;;  %1254 = vmatpush2.bf16.msra.mxu0 %v1928_v57  ;;  %v1387_v57 = vsub.s32 1, %v1382_v49 }
  0x76   : > { %1358 = vmatprep.mubr.bf16.mxu1 %v1997_v50  ;;  %1255 = vmatprep.subr.bf16.mxu0 %v1942_v58 }
  0x79   : > { %1256 = vmatpush2.bf16.msra.mxu0 %v1940_v59 }
  0x7a   : > { %1257 = vmatprep.subr.bf16.mxu0 %v1948_v60 }
  0x7d   : > { %1359 = vmatmul.mubr.bf16.gmra.mxu1 %v1981_v61  ;;  %1258 = vmatpush2.bf16.msra.mxu0 %v1946_v62  ;;  %v2455_v61 = vrot.slane %v1379_v55, %v1383_v52  ;;  %v1407_v62 = vld [vmem:[%s2543_s3] sm:$0x3] }
  0x7e   : > { %1368 = vmatprep.mubr.bf16.mxu1 %v1997_v50  ;;  %1259 = vmatprep.subr.bf16.mxu0 %v1960_v63 }
  0x81   : > { %1260 = vmatpush2.bf16.msra.mxu0 %v1958_v0 }
  0x82   : > { %1261 = vmatprep.subr.bf16.mxu0 %v1966_v1 }
  0x85   : > { %1369 = vmatmul.mubr.bf16.gmra.mxu1 %v1985_v2  ;;  %1262 = vmatpush2.bf16.msra.mxu0 %v1964_v3 }
  0x86   : > { %1263 = vmatprep.subr.bf16.mxu0 %v1972_v4  ;;  %v2460_v4 = vrot.slane %v1379_v55, %v1387_v57 }
  0x89   : > { %1264 = vmatpush2.bf16.msra.mxu0 %v1970_v5  ;;  %v2462_v5 = vrot.slane %v1407_v62, %v1383_v52 }
  0x8c   : > { %1266 = vmatmul.mubr.bf16.vlgmr.msra.gmra.mxu0 %v1974_v6 }
  0x8d   : > { %1275 = vmatprep.mubr.bf16.mxu0 %v1978_v7 }
  0x94   : > { %1276 = vmatmul.mubr.bf16.gmra.mxu0 %v1980_v8 }
  0x95   : > { %1285 = vmatprep.mubr.bf16.mxu0 %v1982_v9 }
  0x9c   : > { %1286 = vmatmul.mubr.bf16.gmra.mxu0 %v1984_v10 }
  0x9d   : > { %1295 = vmatprep.mubr.bf16.mxu0 %v1986_v11 }
  0xa4   : > { %1296 = vmatmul.mubr.bf16.gmra.mxu0 %v1988_v12  ;;  %v2465_v12 = vrot.slane %v1407_v62, %v1387_v57 }
 0x10c   : > { %v1121_v15 = vpop.f32.mrf.mxu0 }
 0x10d   : > { %v1194_v13 = vpop.f32.mrf.mxu1 }
 0x10e   : > { %v1123_v18 = vpop.f32.mrf.mxu0  ;;  %v1195_v56 = vadd.f32 %v1194_v13, %v1121_v15 }
 0x10f   : > { %v1196_v14 = vpop.f32.mrf.mxu1 }
 0x110   : > { %v1125_v21 = vpop.f32.mrf.mxu0  ;;  %v1197_v59 = vadd.f32 %v1196_v14, %v1123_v18 }
 0x111   : > { %v1198_v16 = vpop.f32.mrf.mxu1 }
 0x112   : > { %v1127_v24 = vpop.f32.mrf.mxu0  ;;  %v1199_v1 = vadd.f32 %v1198_v16, %v1125_v21 }
 0x113   : > { %v1200_v17 = vpop.f32.mrf.mxu1 }
 0x114   : > { %v1131_v26 = vpop.f32.mrf.mxu0  ;;  %v1201_v7 = vadd.f32 %v1200_v17, %v1127_v24 }
 0x115   : > { %v1204_v19 = vpop.f32.mrf.mxu1 }
 0x116   : > { %v1133_v29 = vpop.f32.mrf.mxu0  ;;  %v1205_v18 = vadd.f32 %v1204_v19, %v1131_v26 }
 0x117   : > { %v2412_v20 = vpop.f32.mrf.mxu1 }
 0x118   : > { %v1135_v32 = vpop.f32.mrf.mxu0  ;;  %v1207_v46 = vadd.f32 %v2412_v20, %v1133_v29 }
 0x119   : > { %v2414_v22 = vpop.f32.mrf.mxu1 }
 0x11a   : > { %v2430_v34 = vpop.f32.mrf.mxu0 }
 0x11b   : > { %v2416_v23 = vpop.f32.mrf.mxu1 }
 0x11c   : > { %v2434_v36 = vpop.f32.mrf.mxu0 }
 0x11d   : > { %v2418_v25 = vpop.f32.mrf.mxu1 }
 0x11e   : > { %v2438_v39 = vpop.f32.mrf.mxu0 }
 0x11f   : > { %v2420_v27 = vpop.f32.mrf.mxu1 }
 0x120   : > { %v2440_v41 = vpop.f32.mrf.mxu0 }
 0x121   : > { %v2422_v28 = vpop.f32.mrf.mxu1 }
 0x122   : > { %v2442_v43 = vpop.f32.mrf.mxu0 }
 0x123   : > { %v2424_v30 = vpop.f32.mrf.mxu1 }
 0x124   : > { %v2444_v45 = vpop.f32.mrf.mxu0 }
 0x125   : > { %v2426_v31 = vpop.f32.mrf.mxu1 }
 0x126   : > { %v2446_v48 = vpop.f32.mrf.mxu0 }
 0x127   : > { %v2428_v33 = vpop.f32.mrf.mxu1 }
 0x128   : > { %v2448_v51 = vpop.f32.mrf.mxu0 }
 0x129   : > { %v2432_v35 = vpop.f32.mrf.mxu1 }
 0x12a   : > { %v2450_v54 = vpop.f32.mrf.mxu0 }
 0x12b   : > { %v2436_v37 = vpop.f32.mrf.mxu1 }
 0x12d   : > { %v1340_v38 = vpop.f32.mrf.mxu1 }
 0x12f   : > { %v1342_v40 = vpop.f32.mrf.mxu1 }
 0x131   : > { %v1344_v42 = vpop.f32.mrf.mxu1 }
 0x133   : > { %v1346_v44 = vpop.f32.mrf.mxu1 }
 0x135   : > { %v1350_v47 = vpop.f32.mrf.mxu1 }
 0x137   : > { %v1352_v50 = vpop.f32.mrf.mxu1 }
 0x139   : > { %v1354_v53 = vpop.f32.mrf.mxu1 }
 0x13b   : > { %v1356_v63 = vpop.f32.mrf.mxu1 }
 0x13d   : > { %v1360_v11 = vpop.f32.mrf.mxu1 }
 0x14c   : > { %v1267_v58 = vpop.f32.mrf.mxu0 }
 0x14d   : > { %v1268_v60 = vadd.f32 %v1267_v58, %v1195_v56  ;;  %v1209_v56 = vadd.f32 %v2414_v22, %v1135_v32  ;;  %v1215_v22 = vadd.f32 %v2418_v25, %v2434_v36  ;;  %v1217_v36 = vadd.f32 %v2420_v27, %v2438_v39 }
 0x14e   : > { %v1269_v0 = vpop.f32.mrf.mxu0 }
 0x14f   : > { %v1341_v2 = vadd.f32 %v1340_v38, %v1268_v60  ;;  %v1270_v3 = vadd.f32 %v1269_v0, %v1197_v59  ;;  %v1211_v0 = vadd.f32 %v2416_v23, %v2430_v34 }
 0x150   : > { %v1271_v6 = vpop.f32.mrf.mxu0 }
 0x151   : > { %v1391_v8 = vmul.f32 %v2455_v61, %v1341_v2  ;;  %v1343_v9 = vadd.f32 %v1342_v40, %v1270_v3  ;;  %v1272_v10 = vadd.f32 %v1271_v6, %v1199_v1  ;;  %v1362_v40 = vpop.f32.mrf.mxu1 }
 0x152   : > { %v1273_v13 = vpop.f32.mrf.mxu0 }
 0x153   : > { %v1392_v14 = vmul.f32 %v2460_v4, %v1343_v9  ;;  %v1345_v15 = vadd.f32 %v1344_v42, %v1272_v10  ;;  %v1274_v16 = vadd.f32 %v1273_v13, %v1201_v7  ;;  %v1419_v21 = vadd.f32 %v2462_v5, %v1391_v8  ;;  %v1364_v62 = vpop.f32.mrf.mxu1 }
 0x154   : > { %v1277_v38 = vpop.f32.mrf.mxu0 }
 0x155   : > { %v1393_v17 = vmul.f32 %v2455_v61, %v1345_v15  ;;  %v1347_v24 = vadd.f32 %v1346_v44, %v1274_v16  ;;  %v1420_v49 = vadd.f32 %v2465_v12, %v1392_v14  ;;  %v1278_v52 = vadd.f32 %v1277_v38, %v1205_v18  ;;  %v1366_v10 = vpop.f32.mrf.mxu1 }
 0x156   : > { %v1279_v55 = vpop.f32.mrf.mxu0  ;;  %v1435_v57 = vmax.f32 %v1419_v21, 0.0 }
 0x157   : > { %v1421_v42 = vadd.f32 %v2462_v5, %v1393_v17  ;;  %v1394_v19 = vmul.f32 %v2460_v4, %v1347_v24  ;;  %v1280_v26 = vadd.f32 %v1279_v55, %v1207_v46  ;;  %v1351_v58 = vadd.f32 %v1350_v47, %v1278_v52 }
 0x158   : > { %v1281_v59 = vpop.f32.mrf.mxu0  ;;  %v1436_v32 = vmax.f32 %v1420_v49, 0.0 }
 0x159   : > { %v1437_v20 = vmax.f32 %v1421_v42, 0.0  ;;  %v1422_v29 = vadd.f32 %v2465_v12, %v1394_v19  ;;  %v1353_v44 = vadd.f32 %v1352_v50, %v1280_v26  ;;  %v1282_v60 = vadd.f32 %v1281_v59, %v1209_v56 }
 0x15a   : > { %v1395_v47 = vmul.f32 %v2455_v61, %v1351_v58  ;;  %v1283_v1 = vpop.f32.mrf.mxu0 }
 0x15b   : > { %v1728_v2 = vpack.c.bf16 %v1437_v20, %v1435_v57  ;;  %v1438_v50 = vmax.f32 %v1422_v29, 0.0  ;;  %v1396_v3 = vmul.f32 %v2460_v4, %v1353_v44  ;;  %v1355_v6 = vadd.f32 %v1354_v53, %v1282_v60 }
 0x15c   : > { %v1423_v23 = vadd.f32 %v2462_v5, %v1395_v47  ;;  %v1284_v25 = vadd.f32 %v1283_v1, %v1211_v0  ;;  %v1287_v34 = vpop.f32.mrf.mxu0  ;;  %v1219_v53 = vadd.f32 %v2422_v28, %v2440_v41  ;;  %v1370_v28 = vpop.f32.mrf.mxu1  ;;  %v1221_v41 = vadd.f32 %v2424_v30, %v2442_v43 }
 0x15d   : > { %1729 = vst [vmem:[%s2484_s29] sm:$0xff] %v1728_v2   ;;  %v1748_v7 = vpack.c.bf16 %v1438_v50, %v1436_v32  ;;  %v1397_v8 = vmul.f32 %v2455_v61, %v1355_v6  ;;  %v1288_v9 = vadd.f32 %v1287_v34, %v1215_v22  ;;  %v1424_v15 = vadd.f32 %v2465_v12, %v1396_v3 }
 0x15e   : > { %v1357_v13 = vadd.f32 %v1356_v63, %v1284_v25  ;;  %v1289_v14 = vpop.f32.mrf.mxu0  ;;  %v1439_v38 = vmax.f32 %v1423_v23, 0.0  ;;  %v1227_v30 = vadd.f32 %v2428_v33, %v2446_v48  ;;  %v1372_v59 = vpop.f32.mrf.mxu1  ;;  %v1229_v44 = vadd.f32 %v2432_v35, %v2448_v51 }
 0x15f   : > { %1749 = vst [vmem:[%s2491_s7] sm:$0xff] %v1748_v7   ;;  %v1425_v16 = vadd.f32 %v2462_v5, %v1397_v8  ;;  %v1361_v18 = vadd.f32 %v1360_v11, %v1288_v9  ;;  %v1290_v21 = vadd.f32 %v1289_v14, %v1217_v36  ;;  %v1225_v11 = vadd.f32 %v2426_v31, %v2444_v45 }
 0x160   : > { %v1398_v27 = vmul.f32 %v2460_v4, %v1357_v13  ;;  %v1291_v39 = vpop.f32.mrf.mxu0  ;;  %v1440_v55 = vmax.f32 %v1424_v15, 0.0  ;;  %v1374_v2 = vpop.f32.mrf.mxu1  ;;  %v1231_v35 = vadd.f32 %v2436_v37, %v2450_v54 }
 0x161   : > { %v1441_v46 = vmax.f32 %v1425_v16, 0.0  ;;  %v1399_v17 = vmul.f32 %v2455_v61, %v1361_v18  ;;  %v1363_v24 = vadd.f32 %v1362_v40, %v1290_v21  ;;  %v1292_v49 = vadd.f32 %v1291_v39, %v1219_v53 }
 0x162   : > { %v1426_v63 = vadd.f32 %v2465_v12, %v1398_v27  ;;  %v1293_v52 = vpop.f32.mrf.mxu0 }
 0x163   : > { %v1733_v56 = vpack.c.bf16 %v1441_v46, %v1439_v38  ;;  %v1365_v42 = vadd.f32 %v1364_v62, %v1292_v49  ;;  %v1427_v26 = vadd.f32 %v2462_v5, %v1399_v17  ;;  %v1400_v40 = vmul.f32 %v2460_v4, %v1363_v24 }
 0x164   : > { %v1442_v19 = vmax.f32 %v1426_v63, 0.0  ;;  %v1294_v57 = vadd.f32 %v1293_v52, %v1221_v41  ;;  %v1297_v58 = vpop.f32.mrf.mxu0 }
 0x165   : > { %1765 = vst [vmem:[%s2484_s29 + $0x8] sm:$0xff] %v1733_v56   ;;  %v1401_v43 = vmul.f32 %v2455_v61, %v1365_v42  ;;  %v1298_v20 = vadd.f32 %v1297_v58, %v1225_v11  ;;  %v1443_v22 = vmax.f32 %v1427_v26, 0.0  ;;  %v1428_v32 = vadd.f32 %v2465_v12, %v1400_v40 }
 0x166   : > { %v1753_v31 = vpack.c.bf16 %v1442_v19, %v1440_v55  ;;  %v1367_v45 = vadd.f32 %v1366_v10, %v1294_v57  ;;  %v1299_v29 = vpop.f32.mrf.mxu0  ;;  %v1376_v10 = vpop.f32.mrf.mxu1 }
 0x167   : > { %v1429_v60 = vadd.f32 %v2462_v5, %v1401_v43  ;;  %v1371_v62 = vadd.f32 %v1370_v28, %v1298_v20  ;;  %v1300_v0 = vadd.f32 %v1299_v29, %v1227_v30  ;;  %v1444_v34 = vmax.f32 %v1428_v32, 0.0 }
 0x168   : > { %1768 = vst [vmem:[%s2491_s7 + $0x8] sm:$0xff] %v1753_v31   ;;  %v1402_v33 = vmul.f32 %v2460_v4, %v1367_v45  ;;  %v1301_v48 = vpop.f32.mrf.mxu0 }
 0x169   : > { %v1445_v47 = vmax.f32 %v1429_v60, 0.0  ;;  %v1403_v1 = vmul.f32 %v2455_v61, %v1371_v62  ;;  %v1373_v50 = vadd.f32 %v1372_v59, %v1300_v0  ;;  %v1302_v3 = vadd.f32 %v1301_v48, %v1229_v44 }
 0x16a   : > { %v1430_v51 = vadd.f32 %v2465_v12, %v1402_v33  ;;  %v1303_v6 = vpop.f32.mrf.mxu0 }
 0x16b   : > { %v1738_v23 = vpack.c.bf16 %v1445_v47, %v1443_v22  ;;  %v1375_v25 = vadd.f32 %v1374_v2, %v1302_v3  ;;  %v1404_v7 = vmul.f32 %v2460_v4, %v1373_v50  ;;  %v1304_v8 = vadd.f32 %v1303_v6, %v1231_v35 }
 0x16c   : > { %v1446_v36 = vmax.f32 %v1430_v51, 0.0  ;;  %v1431_v9 = vadd.f32 %v2462_v5, %v1403_v1 }
 0x16d   : > { %1766 = vst [vmem:[%s2484_s29 + $0x10] sm:$0xff] %v1738_v23   ;;  %v1405_v53 = vmul.f32 %v2455_v61, %v1375_v25  ;;  %v1377_v54 = vadd.f32 %v1376_v10, %v1304_v8  ;;  %v1432_v14 = vadd.f32 %v2465_v12, %v1404_v7 }
 0x16e   : > { %v1758_v37 = vpack.c.bf16 %v1446_v36, %v1444_v34  ;;  %v1447_v16 = vmax.f32 %v1431_v9, 0.0 }
 0x16f   : > { %v1433_v13 = vadd.f32 %v2462_v5, %v1405_v53  ;;  %v1406_v15 = vmul.f32 %v2460_v4, %v1377_v54  ;;  %v1448_v27 = vmax.f32 %v1432_v14, 0.0 }
 0x170   : > { %1769 = vst [vmem:[%s2491_s7 + $0x10] sm:$0xff] %v1758_v37  }
 0x171   : > { %v1449_v18 = vmax.f32 %v1433_v13, 0.0  ;;  %v1434_v21 = vadd.f32 %v2465_v12, %v1406_v15 }
 0x173   : > { %v1743_v38 = vpack.c.bf16 %v1449_v18, %v1447_v16  ;;  %v1450_v39 = vmax.f32 %v1434_v21, 0.0 }
 0x175   : > { %1767 = vst [vmem:[%s2484_s29 + $0x18] sm:$0xff] %v1743_v38   ;;  %v1763_v46 = vpack.c.bf16 %v1450_v39, %v1448_v27 }
 0x177   : > { %1770 = vst [vmem:[%s2491_s7 + $0x18] sm:$0xff] %v1763_v46  }
 0x178 PF: > { %s16_s18 = sadd.s32 1, %s1995_s18  }
 0x179   : > { %p13_p4 = scmp.ge.s32.totalorder %s16_s18, 4  }
 0x17b   :  { %15 = sbr.rel (!%p13_p4) target bundleno = 1 (0x1), region = 78 }

// kernel: block17_forward.5
= control target key start
LH: loop header
LB: loop body
LE: loop exit
PB: predicated region body
PF: predicated region fallthrough
CT: control target
= control target key end

     0   :  { %s2157_s15 = smov 0   ;;  %s2756_s0 = inlined_call_operand.vmem [shape: bf16[2,8,14,128], index: 0, kind: input, shape index: {}]   ;;  %s2757_s1 = inlined_call_operand.vmem [shape: bf16[896,128], index: 1, kind: input, shape index: {}]   ;;  %s2758_s2 = inlined_call_operand.vmem [shape: f32[1,128], index: 2, kind: input, shape index: {}]   ;;  %s2759_s3 = inlined_call_operand.vmem [shape: f32[1,128], index: 3, kind: input, shape index: {}]   ;;  %s2760_s4 = inlined_call_operand.vmem [shape: bf16[2,8,8,128], index: 4, kind: output, shape index: {}]  }
   0x1 LB: > { %s1754_s16 = sadd.s32 4294967295, %s2130_s15   ;;  %p1758_p0 = scmp.ge.s32.totalorder %s2130_s15, 1  ;;  %s2130_s15 = sphi %s2157_s15, %s14_s15  }
   0x2   : > { %p162_p1 = scmp.lt.s32.totalorder %s2130_s15, 3 }
   0x4   : > { %p163_p2 = pnand %p1758_p0, %p162_p1 }
   0x5   : > { %p188_p3 = scmp.lt.s32.totalorder (!%p163_p2), %s1754_s16, 1 }
   0x6   : > { %166 = sbr.rel (%p163_p2) target bundleno = 336 (0x150), region = 36 }
   0xb   : > { %v2064_v0 = vld [vmem:[%s2757_s1 + $0x78] sm:$0xff]   ;;  %v2068_v4 = vld [vmem:[%s2757_s1 + $0x70] sm:$0xff]   ;;  %v2072_v8 = vld [vmem:[%s2757_s1 + $0x68] sm:$0xff]   ;;  %s2774_s16 = smov (!%p188_p3, %s1754_s16), 1  ;;  %vm386_vm0 = vcmask 1042432   ;;  %vm387_vm1 = vcmask 1046532  }
   0xc   : > { %v2065_v1 = vld [vmem:[%s2757_s1 + $0xf8] sm:$0xff]   ;;  %1900 = vmatprep.subr.bf16.mxu0 %v2064_v0  ;;  %v2069_v5 = vld [vmem:[%s2757_s1 + $0xf0] sm:$0xff]   ;;  %v2073_v9 = vld [vmem:[%s2757_s1 + $0xe8] sm:$0xff]   ;;  %s1875_s23 = sshll.u32 %s2774_s16, 6  ;;  %vm255_vm2 = vsmask.f32 3328 }
   0xd   : > { %v2066_v2 = vld [vmem:[%s2757_s1 + $0x38] sm:$0xff]   ;;  %1940 = vmatprep.subr.bf16.mxu1 %v2065_v1  ;;  %v2070_v6 = vld [vmem:[%s2757_s1 + $0x30] sm:$0xff]   ;;  %v2074_v10 = vld [vmem:[%s2757_s1 + $0x28] sm:$0xff]   ;;  %s2265_s6 = scalar_lea.vmem %s2756_s0, %s1875_s23  ;;  %vm256_vm3 = vsmask.f32 7440  ;;  %vm584_vm9 = vcmask 1041408  }
   0xe   : > { %v2067_v3 = vld [vmem:[%s2757_s1 + $0xb8] sm:$0xff]   ;;  %1901 = vmatpush3.bf16.msra.mxu0 %v2066_v2  ;;  %v2071_v7 = vld [vmem:[%s2757_s1 + $0xb0] sm:$0xff]   ;;  %v2075_v11 = vld [vmem:[%s2757_s1 + $0xa8] sm:$0xff]   ;;  %vm421_vm4 = vsmask.f32 2304  ;;  %vm585_vm10 = vcmask 1045508  }
   0xf   : > { %1941 = vmatpush3.bf16.msra.mxu1 %v2067_v3  ;;  %1902 = vmatprep.subr.bf16.mxu0 %v2068_v4  ;;  %v2076_v12 = vld [vmem:[%s2757_s1 + $0x60] sm:$0xff]   ;;  %v2080_v16 = vld [vmem:[%s2757_s1 + $0x58] sm:$0xff]   ;;  %v2084_v20 = vld [vmem:[%s2757_s1 + $0x50] sm:$0xff]   ;;  %vm422_vm5 = vsmask.f32 6416  ;;  %vm782_vm11 = vcmask 1040384  }
  0x10   : > { %1942 = vmatprep.subr.bf16.mxu1 %v2069_v5  ;;  %v2077_v13 = vld [vmem:[%s2757_s1 + $0xe0] sm:$0xff]   ;;  %v2081_v17 = vld [vmem:[%s2757_s1 + $0xd8] sm:$0xff]   ;;  %v2085_v21 = vld [vmem:[%s2757_s1 + $0xd0] sm:$0xff]   ;;  %vm783_vm12 = vcmask 1044484   ;;  %vm619_vm13 = vsmask.f32 1280 }
  0x11   : > { %v2078_v14 = vld [vmem:[%s2757_s1 + $0x20] sm:$0xff]   ;;  %v2082_v18 = vld [vmem:[%s2757_s1 + $0x18] sm:$0xff]   ;;  %v2086_v22 = vld [vmem:[%s2757_s1 + $0x10] sm:$0xff]   ;;  %vm620_vm14 = vsmask.f32 5392  ;;  %s1876_s18 = sshll.u32 %s2774_s16, 5 }
  0x12   : > { %1903 = vmatpush3.bf16.msra.mxu0 %v2070_v6  ;;  %v2079_v15 = vld [vmem:[%s2757_s1 + $0xa0] sm:$0xff]   ;;  %v2083_v19 = vld [vmem:[%s2757_s1 + $0x98] sm:$0xff]   ;;  %v2087_v23 = vld [vmem:[%s2757_s1 + $0x90] sm:$0xff]   ;;  %s2724_s21 = scalar_lea.vmem %s2760_s4, %s1876_s18 }
  0x13   : > { %1943 = vmatpush3.bf16.msra.mxu1 %v2071_v7  ;;  %1904 = vmatprep.subr.bf16.mxu0 %v2072_v8  ;;  %v2088_v24 = vld [vmem:[%s2757_s1 + $0x48] sm:$0xff]   ;;  %v2092_v28 = vld [vmem:[%s2757_s1 + $0x40] sm:$0xff]   ;;  %vm2307_vm6 = vmor %vm255_vm2, %vm256_vm3 }
  0x14   : > { %1944 = vmatprep.subr.bf16.mxu1 %v2073_v9  ;;  %v2089_v25 = vld [vmem:[%s2757_s1 + $0xc8] sm:$0xff]   ;;  %v2093_v29 = vld [vmem:[%s2757_s1 + $0xc0] sm:$0xff]   ;;  %v2097_v62 = vld [vmem:[%s2757_s1 + $0x178] sm:$0xff]  }
  0x15   : > { %v2090_v26 = vld [vmem:[%s2757_s1 + $0x8] sm:$0xff]   ;;  %v2094_v30 = vld [vmem:[%s2757_s1] sm:$0xff]   ;;  %vm2318_vm7 = vmor %vm386_vm0, %vm387_vm1 }
  0x16   : > { %1905 = vmatpush3.bf16.msra.mxu0 %v2074_v10  ;;  %v2091_v27 = vld [vmem:[%s2757_s1 + $0x88] sm:$0xff]   ;;  %v2095_v31 = vld [vmem:[%s2757_s1 + $0x80] sm:$0xff]   ;;  %vm2326_vm8 = vmor %vm421_vm4, %vm422_vm5 }
  0x17   : > { %1945 = vmatpush3.bf16.msra.mxu1 %v2075_v11  ;;  %1906 = vmatprep.subr.bf16.mxu0 %v2076_v12  ;;  %v2274_v32 = vld [vmem:[%s2265_s6] sm:$0xf]  ;;  %v2277_v33 = vld [vmem:[%s2265_s6 + $0x8] sm:$0xf]  ;;  %v2280_v34 = vld [vmem:[%s2265_s6 + $0x4] sm:$0x1] }
  0x18   : > { %1946 = vmatprep.subr.bf16.mxu1 %v2077_v13  ;;  %v2283_v35 = vld [vmem:[%s2265_s6 + $0xc] sm:$0x1]  ;;  %v259_v36 = vshrl.u32 %v2274_v32, 16  ;;  %v262_v37 = vshll.u32 %v2274_v32, 16  ;;  %v268_v38 = vshll.u32 %v2280_v34, 16  ;;  %v273_v39 = vshrl.u32 %v2277_v33, 16  ;;  %vm2591_vm15 = vmor %vm584_vm9, %vm585_vm10 }
  0x19   : > { %v2290_v40 = vld [vmem:[%s2265_s6] sm:$0xe]  ;;  %v276_v41 = vshll.u32 %v2277_v33, 16  ;;  %v282_v42 = vshll.u32 %v2283_v35, 16  ;;  %v391_v43 = vrot.slane %v2280_v34, 5  ;;  %v395_v44 = vrot.slane %v2283_v35, 5  ;;  %vm2606_vm0 = vmor %vm782_vm11, %vm783_vm12 }
  0x1a   : > { %1907 = vmatpush3.bf16.msra.mxu0 %v2078_v14  ;;  %v216_v45 = vld [vmem:[%s2265_s6 + $0x8] sm:$0xe]  ;;  %v261_v46 = vrot.slane %v259_v36, 4  ;;  %v264_v47 = vrot.slane %v262_v37, 5  ;;  %v270_v48 = vrot.slane %v268_v38, 5  ;;  %v275_v49 = vrot.slane %v273_v39, 4  ;;  %vm2614_vm1 = vmor %vm619_vm13, %vm620_vm14 }
  0x1b   : > { %1947 = vmatpush3.bf16.msra.mxu1 %v2079_v15  ;;  %1908 = vmatprep.subr.bf16.mxu0 %v2080_v16  ;;  %v2298_v50 = vld [vmem:[%s2265_s6 + $0x4] sm:$0x3]  ;;  %v278_v51 = vrot.slane %v276_v41, 5  ;;  %v284_v52 = vrot.slane %v282_v42, 5  ;;  %v2301_v53 = vld [vmem:[%s2265_s6 + $0xc] sm:$0x3]  ;;  %v1787_v16 = vcombine.low %v2274_v32, %v2277_v33 }
  0x1c   : > { %1948 = vmatprep.subr.bf16.mxu1 %v2081_v17  ;;  %v265_v54 = vor.u32 %v264_v47, %v261_v46  ;;  %v425_v55 = vshrl.u32 %v2290_v40, 16  ;;  %v428_v56 = vshll.u32 %v2290_v40, 16  ;;  %v434_v59 = vshrl.u32 %v2298_v50, 16  ;;  %v2098_v17 = vld [vmem:[%s2757_s1 + $0x138] sm:$0xff]   ;;  %v2363_v36 = vld [vmem:[%s2265_s6 + $0x14] sm:$0x1] }
  0x1d   : > { %v279_v58 = vor.u32 %v278_v51, %v275_v49  ;;  %v437_v60 = vshll.u32 %v2298_v50, 16  ;;  %v443_v61 = vshrl.u32 %v216_v45, 16  ;;  %v446_v2 = vshll.u32 %v216_v45, 16  ;;  %v2360_v35 = vld [vmem:[%s2265_s6 + $0x18] sm:$0xf]  ;;  %v2104_v49 = vld [vmem:[%s2757_s1 + $0x1b0] sm:$0xff]  }
  0x1e   : > { %1909 = vmatpush3.bf16.msra.mxu0 %v2082_v18  ;;  %v266_v63 = vrot.slane %v265_v54, 4  ;;  %v427_v0 = vrot.slane %v425_v55, 5  ;;  %v430_v1 = vrot.slane %v428_v56, 6  ;;  %v436_v4 = vrot.slane %v434_v59, 5  ;;  %v2366_v37 = vld [vmem:[%s2265_s6 + $0x1c] sm:$0x1] }
  0x1f   : > { %1949 = vmatpush3.bf16.msra.mxu1 %v2083_v19  ;;  %1910 = vmatprep.subr.bf16.mxu0 %v2084_v20  ;;  %v280_v3 = vrot.slane %v279_v58, 4  ;;  %v439_v5 = vrot.slane %v437_v60, 6  ;;  %v445_v6 = vrot.slane %v443_v61, 5  ;;  %v448_v11 = vrot.slane %v446_v2, 6  ;;  %v2372_v42 = vld [vmem:[%s2265_s6 + $0x10] sm:$0xe] }
  0x20   : > { %1950 = vmatprep.subr.bf16.mxu1 %v2085_v21  ;;  %v271_v8 = vsel %vm2307_vm6, %v266_v63, %v270_v48  ;;  %v431_v10 = vor.u32 %v430_v1, %v427_v0  ;;  %v452_v12 = vshrl.u32 %v2301_v53, 16  ;;  %v455_v15 = vshll.u32 %v2301_v53, 16  ;;  %v2383_v48 = vld [vmem:[%s2265_s6 + $0x18] sm:$0xe]  ;;  %v2389_v56 = vld [vmem:[%s2265_s6 + $0x14] sm:$0x3] }
  0x21   : > { %v285_v13 = vsel %vm2307_vm6, %v280_v3, %v284_v52  ;;  %v440_v14 = vor.u32 %v439_v5, %v436_v4  ;;  %v449_v20 = vor.u32 %v448_v11, %v445_v6  ;;  %v296_v41 = vshll.u32 %v2363_v36, 16  ;;  %v2105_v58 = vld [vmem:[%s2757_s1 + $0x128] sm:$0xff]   ;;  %v2106_v4 = vld [vmem:[%s2757_s1 + $0x160] sm:$0xff]  }
  0x22   : > { %1911 = vmatpush3.bf16.msra.mxu0 %v2086_v22  ;;  %v1791_v18 = vcombine.low %v271_v8, %v285_v13  ;;  %v432_v19 = vrot.slane %v431_v10, 4  ;;  %v454_v21 = vrot.slane %v452_v12, 5  ;;  %v2099_v22 = vld [vmem:[%s2757_s1 + $0x170] sm:$0xff]   ;;  %v304_v46 = vshll.u32 %v2360_v35, 16  ;;  %v2107_v11 = vld [vmem:[%s2757_s1 + $0x1a8] sm:$0xff]  }
  0x23   : > { %1951 = vmatpush3.bf16.msra.mxu1 %v2087_v23  ;;  %1912 = vmatprep.subr.bf16.mxu0 %v2088_v24  ;;  %v2100_v23 = vld [vmem:[%s2757_s1 + $0x1b8] sm:$0xff]   ;;  %v457_v24 = vrot.slane %v455_v15, 6  ;;  %v310_v47 = vshll.u32 %v2366_v37, 16  ;;  %v298_v55 = vrot.slane %v296_v41, 5  ;;  %v461_v63 = vshrl.u32 %v2372_v42, 16 }
  0x24   : > { %1952 = vmatprep.subr.bf16.mxu1 %v2089_v25  ;;  %v589_v25 = vrot.slane %v2298_v50, 6  ;;  %1417 = vmatprep.mubr.bf16.mxu0 %v1791_v18  ;;  %v306_v60 = vrot.slane %v304_v46, 5  ;;  %v464_v1 = vshll.u32 %v2372_v42, 16  ;;  %v470_v2 = vshrl.u32 %v2389_v56, 16 }
  0x25   : > { %v458_v32 = vor.u32 %v457_v24, %v454_v21  ;;  %v312_v61 = vrot.slane %v310_v47, 5  ;;  %v473_v3 = vshll.u32 %v2389_v56, 16  ;;  %v463_v6 = vrot.slane %v461_v63, 5  ;;  %v2446_v47 = vld [vmem:[%s2265_s6 + $0x24] sm:$0x1] }
  0x26   : > { %1913 = vmatpush3.bf16.msra.mxu0 %v2090_v26  ;;  %v1763_v26 = vrot.slane %v2290_v40, 9  ;;  %v479_v8 = vshrl.u32 %v2383_v48, 16  ;;  %v482_v10 = vshll.u32 %v2383_v48, 16  ;;  %v466_v13 = vrot.slane %v464_v1, 6  ;;  %v2113_v1 = vld [vmem:[%s2757_s1 + $0x150] sm:$0xff]  }
  0x27   : > { %1953 = vmatpush3.bf16.msra.mxu1 %v2091_v27  ;;  %1914 = vmatprep.subr.bf16.mxu0 %v2092_v28  ;;  %v1764_v27 = vrot.slane %v216_v45, 9  ;;  %v450_v28 = vrot.slane %v449_v20, 4  ;;  %v301_v45 = vshrl.u32 %v2360_v35, 16  ;;  %v475_v15 = vrot.slane %v473_v3, 6 }
  0x28   : > { %1954 = vmatprep.subr.bf16.mxu1 %v2093_v29  ;;  %v2101_v29 = vld [vmem:[%s2757_s1 + $0x130] sm:$0xff]   ;;  %v392_v33 = vsel %vm2318_vm7, %v1763_v26, %v391_v43  ;;  %v2103_v43 = vld [vmem:[%s2757_s1 + $0x168] sm:$0xff]   ;;  %v481_v18 = vrot.slane %v479_v8, 5  ;;  %v2110_v26 = vld [vmem:[%s2757_s1 + $0x158] sm:$0xff]   ;;  %v1766_v41 = vrot.slane %v2383_v48, 9  ;;  %v593_v57 = vrot.slane %v2301_v53, 6 }
  0x29   : > { %v396_v34 = vsel %vm2318_vm7, %v1764_v27, %v395_v44  ;;  %v459_v44 = vsel %vm2326_vm8, %v450_v28, %v458_v32  ;;  %v303_v59 = vrot.slane %v301_v45, 4  ;;  %v2111_v32 = vld [vmem:[%s2757_s1 + $0x1a0] sm:$0xff]   ;;  %v2449_v48 = vld [vmem:[%s2265_s6 + $0x2c] sm:$0x1] }
  0x2a   : > { %1915 = vmatpush3.bf16.msra.mxu0 %v2094_v30  ;;  %v2351_v30 = vld [vmem:[%s2265_s6 + $0x10] sm:$0xf]  ;;  %v1795_v38 = vcombine.low %v392_v33, %v396_v34  ;;  %v2436_v45 = vld [vmem:[%s2265_s6 + $0x20] sm:$0xf] }
  0x2b   : > { %1955 = vmatpush3.bf16.msra.mxu1 %v2095_v31  ;;  %1980 = vmatprep.subr.bf16.mxu0 %v2097_v62  ;;  %v441_v31 = vsel %vm2326_vm8, %v432_v19, %v440_v14  ;;  %v287_v39 = vshrl.u32 %v2351_v30, 16  ;;  %v290_v40 = vshll.u32 %v2351_v30, 16  ;;  %v2395_v62 = vld [vmem:[%s2265_s6 + $0x1c] sm:$0x3]  ;;  %v307_v5 = vor.u32 %v306_v60, %v303_v59 }
  0x2c   : > { %2032 = vmatprep.subr.bf16.mxu1 %v2100_v23  ;;  %v1799_v51 = vcombine.low %v441_v31, %v459_v44  ;;  %v472_v14 = vrot.slane %v470_v2, 5  ;;  %v484_v19 = vrot.slane %v482_v10, 6  ;;  %v488_v20 = vshrl.u32 %v2395_v62, 16 }
  0x2d   : > { %1418 = vmatmul.mubr.bf16.vlgmr.msra.gmra.mxu0 %v1787_v16  ;;  %v289_v52 = vrot.slane %v287_v39, 4  ;;  %v292_v54 = vrot.slane %v290_v40, 5  ;;  %v2108_v16 = vld [vmem:[%s2757_s1 + $0x120] sm:$0xff]   ;;  %v1788_v31 = vcombine.low %v2351_v30, %v2360_v35  ;;  %v1765_v39 = vrot.slane %v2372_v42, 9  ;;  %v2112_v40 = vld [vmem:[%s2757_s1 + $0x118] sm:$0xff]  }
  0x2e   : > { %1981 = vmatpush3.bf16.msra.mxu0 %v2098_v17  ;;  %1482 = vmatprep.mubr.bf16.mxu1 %v1799_v51  ;;  %v308_v17 = vrot.slane %v307_v5, 4  ;;  %v476_v24 = vor.u32 %v475_v15, %v472_v14  ;;  %v485_v28 = vor.u32 %v484_v19, %v481_v18  ;;  %v399_v35 = vrot.slane %v2363_v36, 5  ;;  %v2472_v5 = vld [vmem:[%s2265_s6 + $0x2c] sm:$0x3] }
  0x2f   : > { %1982 = vmatprep.subr.bf16.mxu0 %v2099_v22  ;;  %v293_v0 = vor.u32 %v292_v54, %v289_v52  ;;  %1483 = vmatmul.mubr.bf16.vlgmr.msra.gmra.mxu1 %v1795_v38  ;;  %v467_v22 = vor.u32 %v466_v13, %v463_v6  ;;  %v315_v52 = vshrl.u32 %v2436_v45, 16  ;;  %v318_v54 = vshll.u32 %v2436_v45, 16 }
  0x30   : > { %2033 = vmatpush3.bf16.msra.mxu1 %v2100_v23  ;;  %v491_v23 = vshll.u32 %v2395_v62, 16  ;;  %v313_v27 = vsel %vm2307_vm6, %v308_v17, %v312_v61  ;;  %v486_v30 = vrot.slane %v485_v28, 4  ;;  %v400_v46 = vsel %vm2318_vm7, %v1765_v39, %v399_v35  ;;  %v2114_v17 = vld [vmem:[%s2757_s1 + $0x198] sm:$0xff]  }
  0x31   : > { %v294_v12 = vrot.slane %v293_v0, 4  ;;  %2034 = vmatprep.subr.bf16.mxu1 %v2104_v49  ;;  %v468_v34 = vrot.slane %v467_v22, 4  ;;  %v324_v60 = vshll.u32 %v2446_v47, 16  ;;  %v2465_v0 = vld [vmem:[%s2265_s6 + $0x24] sm:$0x3]  ;;  %v317_v2 = vrot.slane %v315_v52, 4 }
  0x32   : > { %1983 = vmatpush3.bf16.msra.mxu0 %v2101_v29  ;;  %v490_v29 = vrot.slane %v488_v20, 5  ;;  %v493_v38 = vrot.slane %v491_v23, 6  ;;  %v320_v3 = vrot.slane %v318_v54, 5  ;;  %v509_v20 = vshll.u32 %v2465_v0, 16  ;;  %v2115_v22 = vld [vmem:[%s2757_s1 + $0x110] sm:$0xff]   ;;  %v2120_v54 = vld [vmem:[%s2757_s1 + $0x140] sm:$0xff]  }
  0x33   : > { %1984 = vmatprep.subr.bf16.mxu0 %v2103_v43  ;;  %v299_v21 = vsel %vm2307_vm6, %v294_v12, %v298_v55  ;;  %v403_v43 = vrot.slane %v2366_v37, 5  ;;  %v477_v42 = vsel %vm2326_vm8, %v468_v34, %v476_v24  ;;  %v2443_v37 = vld [vmem:[%s2265_s6 + $0x28] sm:$0xf]  ;;  %v2456_v55 = vld [vmem:[%s2265_s6 + $0x20] sm:$0xe]  ;;  %v326_v8 = vrot.slane %v324_v60, 5 }
  0x34   : > { %v1792_v33 = vcombine.low %v299_v21, %v313_v27  ;;  %2035 = vmatpush3.bf16.msra.mxu1 %v2104_v49  ;;  %v494_v44 = vor.u32 %v493_v38, %v490_v29  ;;  %v329_v61 = vshrl.u32 %v2443_v37, 16  ;;  %v332_v63 = vshll.u32 %v2443_v37, 16 }
  0x35   : > { %2036 = vmatprep.subr.bf16.mxu1 %v2107_v11  ;;  %v404_v36 = vsel %vm2318_vm7, %v1766_v41, %v403_v43  ;;  %v497_v6 = vshrl.u32 %v2456_v55, 16  ;;  %v500_v12 = vshll.u32 %v2456_v55, 16  ;;  %v321_v13 = vor.u32 %v320_v3, %v317_v2  ;;  %v2529_v2 = vld [vmem:[%s2265_s6 + $0x3c] sm:$0x1] }
  0x36   : > { %1985 = vmatpush3.bf16.msra.mxu0 %v2105_v58  ;;  %1425 = vmatprep.mubr.bf16.mxu0 %v1792_v33  ;;  %v495_v49 = vsel %vm2326_vm8, %v486_v30, %v494_v44  ;;  %v1796_v51 = vcombine.low %v400_v46, %v404_v36  ;;  %v2459_v58 = vld [vmem:[%s2265_s6 + $0x28] sm:$0xe]  ;;  %v331_v10 = vrot.slane %v329_v61, 4  ;;  %v524_v27 = vshrl.u32 %v2472_v5, 16  ;;  %v2118_v30 = vld [vmem:[%s2757_s1 + $0x190] sm:$0xff]  }
  0x37   : > { %1986 = vmatprep.subr.bf16.mxu0 %v2106_v4  ;;  %1426 = vmatmul.mubr.bf16.gmra.mxu0 %v1788_v31  ;;  %v1800_v59 = vcombine.low %v477_v42, %v495_v49  ;;  %v338_v4 = vshll.u32 %v2449_v48, 16  ;;  %v499_v15 = vrot.slane %v497_v6, 5  ;;  %v502_v19 = vrot.slane %v500_v12, 6  ;;  %v2119_v44 = vld [vmem:[%s2757_s1 + $0x108] sm:$0xff]   ;;  %v2513_v61 = vld [vmem:[%s2265_s6 + $0x30] sm:$0xf] }
  0x38   : > { %2037 = vmatpush3.bf16.msra.mxu1 %v2107_v11  ;;  %v334_v11 = vrot.slane %v332_v63, 5  ;;  %v515_v21 = vshrl.u32 %v2459_v58, 16  ;;  %v322_v24 = vrot.slane %v321_v13, 4  ;;  %v511_v31 = vrot.slane %v509_v20, 6  ;;  %v2523_v63 = vld [vmem:[%s2265_s6 + $0x38] sm:$0xf] }
  0x39   : > { %2038 = vmatprep.subr.bf16.mxu1 %v2111_v32  ;;  %1490 = vmatprep.mubr.bf16.mxu1 %v1800_v59  ;;  %v340_v14 = vrot.slane %v338_v4, 5  ;;  %v503_v29 = vor.u32 %v502_v19, %v499_v15  ;;  %v526_v39 = vrot.slane %v524_v27, 5  ;;  %v1789_v42 = vcombine.low %v2436_v45, %v2443_v37 }
  0x3a   : > { %1987 = vmatpush3.bf16.msra.mxu0 %v2108_v16  ;;  %1491 = vmatmul.mubr.bf16.gmra.mxu1 %v1796_v51  ;;  %v506_v16 = vshrl.u32 %v2465_v0, 16  ;;  %v335_v18 = vor.u32 %v334_v11, %v331_v10  ;;  %v517_v33 = vrot.slane %v515_v21, 5  ;;  %v327_v34 = vsel %vm2307_vm6, %v322_v24, %v326_v8  ;;  %v2536_v10 = vld [vmem:[%s2265_s6 + $0x30] sm:$0xe]  ;;  %v2539_v11 = vld [vmem:[%s2265_s6 + $0x38] sm:$0xe] }
  0x3b   : > { %1988 = vmatprep.subr.bf16.mxu0 %v2110_v26  ;;  %v518_v26 = vshll.u32 %v2459_v58, 16  ;;  %v504_v41 = vrot.slane %v503_v29, 4  ;;  %v1767_v51 = vrot.slane %v2456_v55, 9  ;;  %v407_v52 = vrot.slane %v2446_v47, 5  ;;  %v2121_v47 = vld [vmem:[%s2757_s1 + $0x188] sm:$0xff]  }
  0x3c   : > { %2039 = vmatpush3.bf16.msra.mxu1 %v2111_v32  ;;  %v508_v23 = vrot.slane %v506_v16, 5  ;;  %v336_v28 = vrot.slane %v335_v18, 4  ;;  %v2117_v32 = vld [vmem:[%s2757_s1 + $0x148] sm:$0xff]   ;;  %v1768_v45 = vrot.slane %v2459_v58, 9  ;;  %v411_v37 = vrot.slane %v2449_v48, 5 }
  0x3d   : > { %2040 = vmatprep.subr.bf16.mxu1 %v2114_v17  ;;  %v520_v38 = vrot.slane %v518_v26, 6  ;;  %v408_v48 = vsel %vm2318_vm7, %v1767_v51, %v407_v52  ;;  %v343_v6 = vshrl.u32 %v2513_v61, 16  ;;  %v346_v8 = vshll.u32 %v2513_v61, 16  ;;  %v2545_v16 = vld [vmem:[%s2265_s6 + $0x34] sm:$0x3] }
  0x3e   : > { %1989 = vmatpush3.bf16.msra.mxu0 %v2112_v40  ;;  %v527_v40 = vshll.u32 %v2472_v5, 16  ;;  %v341_v35 = vsel %vm2307_vm6, %v336_v28, %v340_v14  ;;  %v512_v43 = vor.u32 %v511_v31, %v508_v23  ;;  %v412_v58 = vsel %vm2318_vm7, %v1768_v45, %v411_v37  ;;  %v2552_v21 = vld [vmem:[%s2265_s6 + $0x3c] sm:$0x3] }
  0x3f   : > { %1990 = vmatprep.subr.bf16.mxu0 %v2113_v1  ;;  %v1793_v46 = vcombine.low %v327_v34, %v341_v35  ;;  %v521_v36 = vor.u32 %v520_v38, %v517_v33  ;;  %v2526_v1 = vld [vmem:[%s2265_s6 + $0x34] sm:$0x1]  ;;  %v1797_v4 = vcombine.low %v408_v48, %v412_v58  ;;  %v357_v14 = vshrl.u32 %v2523_v63, 16 }
  0x40   : > { %2041 = vmatpush3.bf16.msra.mxu1 %v2114_v17  ;;  %v529_v49 = vrot.slane %v527_v40, 6  ;;  %v513_v59 = vsel %vm2326_vm8, %v504_v41, %v512_v43  ;;  %v352_v13 = vshll.u32 %v2526_v1, 16  ;;  %v360_v15 = vshll.u32 %v2523_v63, 16  ;;  %v2122_v17 = vld [vmem:[%s2757_s1 + $0x100] sm:$0xff]  }
  0x41   : > { %2042 = vmatprep.subr.bf16.mxu1 %v2118_v30  ;;  %1433 = vmatprep.mubr.bf16.mxu0 %v1793_v46  ;;  %v522_v55 = vrot.slane %v521_v36, 4  ;;  %v345_v18 = vrot.slane %v343_v6, 4  ;;  %v348_v19 = vrot.slane %v346_v8, 5  ;;  %v366_v20 = vshll.u32 %v2529_v2, 16 }
  0x42   : > { %1991 = vmatpush3.bf16.msra.mxu0 %v2115_v22  ;;  %v530_v60 = vor.u32 %v529_v49, %v526_v39  ;;  %v533_v22 = vshrl.u32 %v2536_v10, 16  ;;  %v354_v24 = vrot.slane %v352_v13, 5  ;;  %v359_v23 = vrot.slane %v357_v14, 4  ;;  %v240_v14 = vld [vmem:[%s2265_s6 + $0xc] sm:$0x7] }
  0x43   : > { %1992 = vmatprep.subr.bf16.mxu0 %v2117_v32  ;;  %1434 = vmatmul.mubr.bf16.gmra.mxu0 %v1789_v42  ;;  %v362_v26 = vrot.slane %v360_v15, 5  ;;  %v536_v27 = vshll.u32 %v2536_v10, 16  ;;  %v349_v28 = vor.u32 %v348_v19, %v345_v18  ;;  %v368_v29 = vrot.slane %v366_v20, 5  ;;  %v2123_v32 = vld [vmem:[%s2757_s1 + $0x180] sm:$0xff]  }
  0x44   : > { %2043 = vmatpush3.bf16.msra.mxu1 %v2118_v30  ;;  %v531_v3 = vsel %vm2326_vm8, %v522_v55, %v530_v60  ;;  %v535_v31 = vrot.slane %v533_v22, 5  ;;  %v542_v33 = vshrl.u32 %v2545_v16, 16  ;;  %v545_v39 = vshll.u32 %v2545_v16, 16 }
  0x45   : > { %2044 = vmatprep.subr.bf16.mxu1 %v2121_v47  ;;  %v1801_v12 = vcombine.low %v513_v59, %v531_v3  ;;  %v363_v34 = vor.u32 %v362_v26, %v359_v23  ;;  %v538_v38 = vrot.slane %v536_v27, 6  ;;  %v551_v40 = vshrl.u32 %v2539_v11, 16 }
  0x46   : > { %1993 = vmatpush3.bf16.msra.mxu0 %v2119_v44  ;;  %v350_v30 = vrot.slane %v349_v28, 4  ;;  %v544_v35 = vrot.slane %v542_v33, 5  ;;  %v554_v41 = vshll.u32 %v2539_v11, 16  ;;  %v560_v43 = vshrl.u32 %v2552_v21, 16 }
  0x47   : > { %1994 = vmatprep.subr.bf16.mxu0 %v2120_v54  ;;  %1498 = vmatprep.mubr.bf16.mxu1 %v1801_v12  ;;  %v364_v42 = vrot.slane %v363_v34, 4  ;;  %v539_v44 = vor.u32 %v538_v38, %v535_v31  ;;  %v547_v46 = vrot.slane %v545_v39, 6  ;;  %v553_v36 = vrot.slane %v551_v40, 5  ;;  %v231_v12 = vld [vmem:[%s2265_s6] sm:$0xc] }
  0x48   : > { %1499 = vmatmul.mubr.bf16.gmra.mxu1 %v1797_v4  ;;  %v355_v49 = vsel %vm2307_vm6, %v350_v30, %v354_v24  ;;  %v556_v51 = vrot.slane %v554_v41, 6  ;;  %v562_v52 = vrot.slane %v560_v43, 5  ;;  %v563_v45 = vshll.u32 %v2552_v21, 16  ;;  %v247_v31 = vld [vmem:[%s2265_s6] sm:$0x8] }
  0x49   : > { %2045 = vmatpush3.bf16.msra.mxu1 %v2121_v47  ;;  %v369_v37 = vsel %vm2307_vm6, %v364_v42, %v368_v29  ;;  %v540_v54 = vrot.slane %v539_v44, 4  ;;  %v548_v59 = vor.u32 %v547_v46, %v544_v35  ;;  %v1790_v55 = vcombine.low %v2513_v61, %v2523_v63  ;;  %v248_v39 = vld [vmem:[%s2265_s6 + $0x8] sm:$0x8]  ;;  %v241_v43 = vld [vmem:[%s2265_s6 + $0x14] sm:$0x7] }
  0x4a   : > { %1995 = vmatpush3.bf16.msra.mxu0 %v2122_v17  ;;  %2046 = vmatprep.subr.bf16.mxu1 %v2123_v32  ;;  %v1794_v60 = vcombine.low %v355_v49, %v369_v37  ;;  %v557_v47 = vor.u32 %v556_v51, %v553_v36  ;;  %v565_v48 = vrot.slane %v563_v45, 6  ;;  %v1769_v58 = vrot.slane %v2536_v10, 9  ;;  %v249_v51 = vld [vmem:[%s2265_s6 + $0x10] sm:$0x8] }
  0x4b   : > { %v415_v3 = vrot.slane %v2526_v1, 5  ;;  %v1770_v4 = vrot.slane %v2539_v11, 9  ;;  %v419_v61 = vrot.slane %v2529_v2, 5  ;;  %v549_v63 = vsel %vm2326_vm8, %v540_v54, %v548_v59  ;;  %v232_v1 = vld [vmem:[%s2265_s6 + $0x8] sm:$0xc] }
  0x4c   : > { %1441 = vmatprep.mubr.bf16.mxu0 %v1794_v60  ;;  %v558_v6 = vrot.slane %v557_v47, 4  ;;  %v566_v8 = vor.u32 %v565_v48, %v562_v52  ;;  %v597_v13 = vrot.slane %v2389_v56, 6  ;;  %v239_v11 = vld [vmem:[%s2265_s6 + $0x4] sm:$0x7]  ;;  %v1771_v17 = vrot.slane %v231_v12, 10 }
  0x4d   : > { %2047 = vmatpush3.bf16.msra.mxu1 %v2123_v32  ;;  %1442 = vmatmul.mubr.bf16.gmra.mxu0 %v1790_v55  ;;  %v416_v10 = vsel %vm2318_vm7, %v1769_v58, %v415_v3  ;;  %v420_v53 = vsel %vm2318_vm7, %v1770_v4, %v419_v61  ;;  %v1772_v18 = vrot.slane %v232_v1, 10  ;;  %v623_v20 = vshrl.u32 %v231_v12, 16  ;;  %v250_v52 = vld [vmem:[%s2265_s6 + $0x18] sm:$0x8]  ;;  %v242_v59 = vld [vmem:[%s2265_s6 + $0x1c] sm:$0x7] }
  0x4e   : > { %v567_v2 = vsel %vm2326_vm8, %v558_v6, %v566_v8  ;;  %v1798_v15 = vcombine.low %v416_v10, %v420_v53  ;;  %v626_v22 = vshll.u32 %v231_v12, 16  ;;  %v632_v24 = vshrl.u32 %v239_v11, 16  ;;  %v233_v55 = vld [vmem:[%s2265_s6 + $0x10] sm:$0xc]  ;;  %v234_v12 = vld [vmem:[%s2265_s6 + $0x18] sm:$0xc] }
  0x4f   : > { %v1802_v19 = vcombine.low %v549_v63, %v567_v2  ;;  %v635_v23 = vshll.u32 %v239_v11, 16  ;;  %v641_v7 = vshrl.u32 %v232_v1, 16  ;;  %v625_v9 = vrot.slane %v623_v20, 6 }
  0x50   : > { %v644_v27 = vshll.u32 %v232_v1, 16  ;;  %v650_v28 = vshrl.u32 %v240_v14, 16  ;;  %v653_v29 = vshll.u32 %v240_v14, 16  ;;  %v628_v33 = vrot.slane %v626_v22, 7 }
  0x51   : > { %1506 = vmatprep.mubr.bf16.mxu1 %v1802_v19  ;;  %v634_v32 = vrot.slane %v632_v24, 6  ;;  %v637_v34 = vrot.slane %v635_v23, 7  ;;  %v643_v38 = vrot.slane %v641_v7, 6  ;;  %v590_v41 = vsel %vm2591_vm15, %v1771_v17, %v589_v25 }
  0x52   : > { %1507 = vmatmul.mubr.bf16.gmra.mxu1 %v1798_v15  ;;  %v646_v40 = vrot.slane %v644_v27, 7  ;;  %v652_v30 = vrot.slane %v650_v28, 6  ;;  %v655_v35 = vrot.slane %v653_v29, 7  ;;  %v629_v42 = vor.u32 %v628_v33, %v625_v9 }
  0x53   : > { %v638_v44 = vor.u32 %v637_v34, %v634_v32  ;;  %v594_v46 = vsel %vm2591_vm15, %v1772_v18, %v593_v57  ;;  %v1779_v49 = vrot.slane %v247_v31, 11  ;;  %v787_v54 = vrot.slane %v239_v11, 7  ;;  %v235_v32 = vld [vmem:[%s2265_s6 + $0x20] sm:$0xc] }
  0x54   : > { %v647_v25 = vor.u32 %v646_v40, %v643_v38  ;;  %v656_v45 = vor.u32 %v655_v35, %v652_v30  ;;  %v1803_v37 = vcombine.low %v590_v41, %v594_v46  ;;  %v630_v60 = vrot.slane %v629_v42, 4  ;;  %v243_v30 = vld [vmem:[%s2265_s6 + $0x24] sm:$0x7] }
  0x55   : > { %v1780_v47 = vrot.slane %v248_v39, 11  ;;  %v791_v48 = vrot.slane %v240_v14, 7  ;;  %v1781_v58 = vrot.slane %v249_v51, 11  ;;  %v788_v3 = vsel %vm2606_vm0, %v1779_v49, %v787_v54  ;;  %v236_v49 = vld [vmem:[%s2265_s6 + $0x28] sm:$0xc] }
  0x56   : > { %v648_v57 = vrot.slane %v647_v25, 4  ;;  %v795_v4 = vrot.slane %v241_v43, 7  ;;  %v1782_v61 = vrot.slane %v250_v52, 11  ;;  %v639_v63 = vsel %vm2614_vm1, %v630_v60, %v638_v44 }
  0x57   : > { %v792_v6 = vsel %vm2606_vm0, %v1780_v47, %v791_v48  ;;  %v799_v8 = vrot.slane %v242_v59, 7  ;;  %v659_v10 = vshrl.u32 %v233_v55, 16  ;;  %v662_v14 = vshll.u32 %v233_v55, 16 }
  0x58   : > { %v657_v53 = vsel %vm2614_vm1, %v648_v57, %v656_v45  ;;  %v1811_v1 = vcombine.low %v788_v3, %v792_v6  ;;  %v796_v11 = vsel %vm2606_vm0, %v1781_v58, %v795_v4  ;;  %v668_v18 = vshrl.u32 %v241_v43, 16 }
  0x59   : > { %v1807_v2 = vcombine.low %v639_v63, %v657_v53  ;;  %v800_v15 = vsel %vm2606_vm0, %v1782_v61, %v799_v8  ;;  %v661_v17 = vrot.slane %v659_v10, 6  ;;  %v664_v20 = vrot.slane %v662_v14, 7  ;;  %v251_v10 = vld [vmem:[%s2265_s6 + $0x20] sm:$0x8]  ;;  %v252_v53 = vld [vmem:[%s2265_s6 + $0x28] sm:$0x8] }
  0x5a   : > { %2048 = vmatprep.mubr.bf16.mxu1 %v1811_v1  ;;  %v1812_v19 = vcombine.low %v796_v11, %v800_v15  ;;  %v671_v22 = vshll.u32 %v241_v43, 16  ;;  %v677_v24 = vshrl.u32 %v234_v12, 16  ;;  %v670_v23 = vrot.slane %v668_v18, 6  ;;  %v245_v15 = vld [vmem:[%s2265_s6 + $0x34] sm:$0x7] }
  0x5b   : > { %1547 = vmatprep.mubr.bf16.mxu0 %v1807_v2  ;;  %v680_v7 = vshll.u32 %v234_v12, 16  ;;  %v686_v9 = vshrl.u32 %v242_v59, 16  ;;  %v689_v27 = vshll.u32 %v242_v59, 16  ;;  %v665_v28 = vor.u32 %v664_v20, %v661_v17 }
  0x5c   : > { %1548 = vmatmul.mubr.bf16.vlgmr.msra.gmra.mxu0 %v1803_v37  ;;  %2049 = vmatmul.mubr.bf16.vlgmr.msra.gmra.mxu1 %v1812_v19  ;;  %v673_v29 = vrot.slane %v671_v22, 7  ;;  %v679_v31 = vrot.slane %v677_v24, 6  ;;  %v1773_v33 = vrot.slane %v233_v55, 10  ;;  %v1774_v40 = vrot.slane %v234_v12, 10  ;;  %v244_v37 = vld [vmem:[%s2265_s6 + $0x2c] sm:$0x7] }
  0x5d   : > { %v682_v34 = vrot.slane %v680_v7, 7  ;;  %v688_v38 = vrot.slane %v686_v9, 6  ;;  %v691_v39 = vrot.slane %v689_v27, 7  ;;  %v666_v35 = vrot.slane %v665_v28, 4  ;;  %v253_v22 = vld [vmem:[%s2265_s6 + $0x30] sm:$0x8] }
  0x5e   : > { %v674_v41 = vor.u32 %v673_v29, %v670_v23  ;;  %v598_v43 = vsel %vm2591_vm15, %v1773_v33, %v597_v13  ;;  %v601_v42 = vrot.slane %v2395_v62, 6  ;;  %v695_v51 = vshrl.u32 %v235_v32, 16  ;;  %v246_v27 = vld [vmem:[%s2265_s6 + $0x3c] sm:$0x7]  ;;  %v254_v28 = vld [vmem:[%s2265_s6 + $0x38] sm:$0x8] }
  0x5f   : > { %v683_v44 = vor.u32 %v682_v34, %v679_v31  ;;  %v692_v46 = vor.u32 %v691_v39, %v688_v38  ;;  %v698_v52 = vshll.u32 %v235_v32, 16  ;;  %v704_v54 = vshrl.u32 %v243_v30, 16 }
  0x60   : > { %v675_v25 = vsel %vm2614_vm1, %v666_v35, %v674_v41  ;;  %v602_v45 = vsel %vm2591_vm15, %v1774_v40, %v601_v42  ;;  %v707_v59 = vshll.u32 %v243_v30, 16  ;;  %v697_v13 = vrot.slane %v695_v51, 6 }
  0x61   : > { %v684_v56 = vrot.slane %v683_v44, 4  ;;  %v1804_v55 = vcombine.low %v598_v43, %v602_v45  ;;  %v700_v62 = vrot.slane %v698_v52, 7  ;;  %v706_v60 = vrot.slane %v704_v54, 6  ;;  %v238_v44 = vld [vmem:[%s2265_s6 + $0x38] sm:$0xc] }
  0x62   : > { %v709_v47 = vrot.slane %v707_v59, 7  ;;  %v713_v48 = vshrl.u32 %v236_v49, 16  ;;  %v716_v58 = vshll.u32 %v236_v49, 16  ;;  %v722_v4 = vshrl.u32 %v244_v37, 16 }
  0x63   : > { %v693_v57 = vsel %vm2614_vm1, %v684_v56, %v692_v46  ;;  %v701_v3 = vor.u32 %v700_v62, %v697_v13  ;;  %v725_v61 = vshll.u32 %v244_v37, 16  ;;  %v1775_v2 = vrot.slane %v235_v32, 10 }
  0x64   : > { %v1808_v63 = vcombine.low %v675_v25, %v693_v57  ;;  %v710_v6 = vor.u32 %v709_v47, %v706_v60  ;;  %v715_v8 = vrot.slane %v713_v48, 6  ;;  %v718_v12 = vrot.slane %v716_v58, 7 }
  0x65   : > { %v702_v1 = vrot.slane %v701_v3, 4  ;;  %v724_v11 = vrot.slane %v722_v4, 6  ;;  %v727_v14 = vrot.slane %v725_v61, 7  ;;  %v605_v18 = vrot.slane %v2465_v0, 6 }
  0x66   : > { %1555 = vmatprep.mubr.bf16.mxu0 %v1808_v63  ;;  %v719_v17 = vor.u32 %v718_v12, %v715_v8  ;;  %v1776_v19 = vrot.slane %v236_v49, 10  ;;  %v609_v20 = vrot.slane %v2472_v5, 6  ;;  %v1783_v7 = vrot.slane %v251_v10, 11  ;;  %v237_v5 = vld [vmem:[%s2265_s6 + $0x30] sm:$0xc] }
  0x67   : > { %1556 = vmatmul.mubr.bf16.gmra.mxu0 %v1804_v55  ;;  %v711_v24 = vsel %vm2614_vm1, %v702_v1, %v710_v6  ;;  %v728_v23 = vor.u32 %v727_v14, %v724_v11  ;;  %v803_v9 = vrot.slane %v243_v30, 7  ;;  %v606_v31 = vsel %vm2591_vm15, %v1775_v2, %v605_v18 }
  0x68   : > { %v720_v29 = vrot.slane %v719_v17, 4  ;;  %v610_v0 = vsel %vm2591_vm15, %v1776_v19, %v609_v20  ;;  %v1784_v33 = vrot.slane %v252_v53, 11  ;;  %v807_v38 = vrot.slane %v244_v37, 7 }
  0x69   : > { %v1805_v32 = vcombine.low %v606_v31, %v610_v0  ;;  %v804_v34 = vsel %vm2606_vm0, %v1783_v7, %v803_v9  ;;  %v1785_v39 = vrot.slane %v253_v22, 11  ;;  %v811_v30 = vrot.slane %v245_v15, 7 }
  0x6a   : > { %v729_v40 = vsel %vm2614_vm1, %v720_v29, %v728_v23  ;;  %v1786_v35 = vrot.slane %v254_v28, 11  ;;  %v815_v41 = vrot.slane %v246_v27, 7  ;;  %v808_v42 = vsel %vm2606_vm0, %v1784_v33, %v807_v38 }
  0x6b   : > { %v1809_v43 = vcombine.low %v711_v24, %v729_v40  ;;  %v731_v46 = vshrl.u32 %v237_v5, 16  ;;  %v734_v49 = vshll.u32 %v237_v5, 16  ;;  %v1813_v51 = vcombine.low %v804_v34, %v808_v42 }
  0x6c   : > { %v812_v52 = vsel %vm2606_vm0, %v1785_v39, %v811_v30  ;;  %v816_v25 = vsel %vm2606_vm0, %v1786_v35, %v815_v41  ;;  %v740_v45 = vshrl.u32 %v245_v15, 16  ;;  %v743_v56 = vshll.u32 %v245_v15, 16 }
  0x6d   : > { %1563 = vmatprep.mubr.bf16.mxu0 %v1809_v43  ;;  %v1814_v37 = vcombine.low %v812_v52, %v816_v25  ;;  %v733_v54 = vrot.slane %v731_v46, 6  ;;  %v736_v59 = vrot.slane %v734_v49, 7  ;;  %2052 = vmatprep.mubr.bf16.mxu1 %v1813_v51  ;;  %v749_v13 = vshrl.u32 %v238_v44, 16 }
  0x6e   : > { %v742_v55 = vrot.slane %v740_v45, 6  ;;  %v752_v62 = vshll.u32 %v238_v44, 16  ;;  %v758_v60 = vshrl.u32 %v246_v27, 16  ;;  %v745_v48 = vrot.slane %v743_v56, 7 }
  0x6f   : > { %1564 = vmatmul.mubr.bf16.gmra.mxu0 %v1805_v32  ;;  %2053 = vmatmul.mubr.bf16.gmra.mxu1 %v1814_v37  ;;  %v737_v47 = vor.u32 %v736_v59, %v733_v54  ;;  %v761_v58 = vshll.u32 %v246_v27, 16  ;;  %v1777_v57 = vrot.slane %v237_v5, 10  ;;  %v751_v3 = vrot.slane %v749_v13, 6 }
  0x70   : > { %v754_v36 = vrot.slane %v752_v62, 7  ;;  %v760_v4 = vrot.slane %v758_v60, 6  ;;  %v613_v61 = vrot.slane %v2545_v16, 6  ;;  %v746_v6 = vor.u32 %v745_v48, %v742_v55 }
  0x71   : > { %v738_v63 = vrot.slane %v737_v47, 4  ;;  %v763_v8 = vrot.slane %v761_v58, 7  ;;  %v1778_v12 = vrot.slane %v238_v44, 10  ;;  %v617_v53 = vrot.slane %v2552_v21, 6 }
  0x72   : > { %v755_v10 = vor.u32 %v754_v36, %v751_v3  ;;  %v614_v11 = vsel %vm2591_vm15, %v1777_v57, %v613_v61  ;;  %v2709_v3 = vld [vmem:[%s2758_s2] ss:$0 sm:$0xff] }
  0x73   : > { %v764_v1 = vor.u32 %v763_v8, %v760_v4  ;;  %v747_v14 = vsel %vm2614_vm1, %v738_v63, %v746_v6  ;;  %v618_v15 = vsel %vm2591_vm15, %v1778_v12, %v617_v53  ;;  %v2715_v53 = vld [vmem:[%s2759_s3] ss:$0 sm:$0xff] }
  0x74   : > { %v756_v2 = vrot.slane %v755_v10, 4  ;;  %v1806_v17 = vcombine.low %v614_v11, %v618_v15 }
  0x76   : > { %v765_v16 = vsel %vm2614_vm1, %v756_v2, %v764_v1 }
  0x77   : > { %v1810_v18 = vcombine.low %v747_v14, %v765_v16 }
  0x79   : > { %1571 = vmatprep.mubr.bf16.mxu0 %v1810_v18 }
  0x7a   : > { %1572 = vmatmul.mubr.bf16.gmra.mxu0 %v1806_v17 }
  0xed   : > { %v1916_v19 = vpop.f32.mrf.mxu0 }
  0xef   : > { %v1917_v21 = vpop.f32.mrf.mxu0  ;;  %v1956_v20 = vpop.f32.mrf.mxu1 }
  0xf0   : > { %v1918_v25 = vadd.f32 %v1917_v21, %v1916_v19 }
  0xf1   : > { %v1919_v22 = vpop.f32.mrf.mxu0  ;;  %v1957_v24 = vpop.f32.mrf.mxu1 }
  0xf2   : > { %v1958_v45 = vadd.f32 %v1957_v24, %v1956_v20 }
  0xf3   : > { %v1920_v23 = vpop.f32.mrf.mxu0  ;;  %v1959_v7 = vpop.f32.mrf.mxu1 }
  0xf4   : > { %v1485_v55 = vadd.f32 %v1958_v45, %v1918_v25  ;;  %v1921_v13 = vadd.f32 %v1920_v23, %v1919_v22 }
  0xf5   : > { %v1960_v27 = vpop.f32.mrf.mxu1 }
  0xf6   : > { %v1961_v62 = vadd.f32 %v1960_v27, %v1959_v7 }
  0xf7   : > { %v1922_v9 = vpop.f32.mrf.mxu0 }
  0xf8   : > { %v1488_v36 = vadd.f32 %v1961_v62, %v1921_v13 }
  0xf9   : > { %v1923_v28 = vpop.f32.mrf.mxu0 }
  0xfa   : > { %v1962_v29 = vpop.f32.mrf.mxu1  ;;  %v1924_v12 = vadd.f32 %v1923_v28, %v1922_v9 }
  0xfb   : > { %v1925_v26 = vpop.f32.mrf.mxu0 }
  0xfc   : > { %v1963_v31 = vpop.f32.mrf.mxu1 }
  0xfd   : > { %v1926_v0 = vpop.f32.mrf.mxu0  ;;  %v1964_v10 = vadd.f32 %v1963_v31, %v1962_v29 }
  0xfe   : > { %v1965_v50 = vpop.f32.mrf.mxu1  ;;  %v1927_v14 = vadd.f32 %v1926_v0, %v1925_v26 }
  0xff   : > { %v1493_v18 = vadd.f32 %v1964_v10, %v1924_v12 }
 0x100   : > { %v1966_v5 = vpop.f32.mrf.mxu1 }
 0x101   : > { %v1967_v2 = vadd.f32 %v1966_v5, %v1965_v50 }
 0x103   : > { %v1928_v33 = vpop.f32.mrf.mxu0  ;;  %v1496_v24 = vadd.f32 %v1967_v2, %v1927_v14 }
 0x105   : > { %v1929_v32 = vpop.f32.mrf.mxu0 }
 0x106   : > { %v1930_v27 = vadd.f32 %v1929_v32, %v1928_v33 }
 0x107   : > { %v2684_v38 = vpop.f32.mrf.mxu0 }
 0x108   : > { %v1968_v34 = vpop.f32.mrf.mxu1 }
 0x109   : > { %v1932_v40 = vpop.f32.mrf.mxu0 }
 0x10a   : > { %v1969_v39 = vpop.f32.mrf.mxu1  ;;  %v1933_v45 = vadd.f32 %v1932_v40, %v2684_v38 }
 0x10b   : > { %v1970_v28 = vadd.f32 %v1969_v39, %v1968_v34 }
 0x10c   : > { %v2686_v30 = vpop.f32.mrf.mxu1 }
 0x10d   : > { %v2688_v35 = vpop.f32.mrf.mxu0  ;;  %v1501_v32 = vadd.f32 %v1970_v28, %v1930_v27 }
 0x10e   : > { %v2690_v41 = vpop.f32.mrf.mxu1 }
 0x10f   : > { %v2692_v43 = vpop.f32.mrf.mxu0  ;;  %v1973_v34 = vadd.f32 %v2690_v41, %v2686_v30 }
 0x111   : > { %v2698_v46 = vpop.f32.mrf.mxu0 }
 0x112   : > { %v2694_v42 = vpop.f32.mrf.mxu1 }
 0x113   : > { %v2702_v51 = vpop.f32.mrf.mxu0 }
 0x114   : > { %v2696_v44 = vpop.f32.mrf.mxu1  ;;  %v1939_v14 = vadd.f32 %v2702_v51, %v2698_v46 }
 0x116   : > { %v2700_v49 = vpop.f32.mrf.mxu1 }
 0x118   : > { %v2704_v52 = vpop.f32.mrf.mxu1 }
 0x11c   : > { %v1996_v37 = vpop.f32.mrf.mxu0  ;;  %v2050_v54 = vpop.f32.mrf.mxu1 }
 0x11e   : > { %v1997_v59 = vpop.f32.mrf.mxu0  ;;  %v1614_v56 = vpop.f32.mrf.mxu1 }
 0x11f   : > { %v1998_v60 = vadd.f32 %v1997_v59, %v1996_v37 }
 0x120   : > { %v1999_v47 = vpop.f32.mrf.mxu0  ;;  %v2051_v48 = vpop.f32.mrf.mxu1 }
 0x121   : > { %v1550_v58 = vadd.f32 %v1998_v60, %v1485_v55 }
 0x122   : > { %v2000_v57 = vpop.f32.mrf.mxu0  ;;  %v1617_v63 = vpop.f32.mrf.mxu1 }
 0x123   : > { %v2001_v4 = vadd.f32 %v2000_v57, %v1999_v47  ;;  %v1615_v61 = vadd.f32 %v1614_v56, %v1550_v58  ;;  %v1504_v47 = vadd.f32 %v1973_v34, %v1933_v45 }
 0x125   : > { %v1652_v6 = vmul.f32 %v2709_v3, %v1615_v61  ;;  %v1553_v8 = vadd.f32 %v2001_v4, %v1488_v36  ;;  %v1976_v61 = vadd.f32 %v2696_v44, %v2694_v42 }
 0x127   : > { %v2002_v1 = vpop.f32.mrf.mxu0  ;;  %v1618_v11 = vadd.f32 %v1617_v63, %v1553_v8  ;;  %v1667_v15 = vadd.f32 %v2715_v53, %v1652_v6 }
 0x129   : > { %v2003_v16 = vpop.f32.mrf.mxu0  ;;  %v1653_v17 = vmul.f32 %v2709_v3, %v1618_v11  ;;  %v1675_v23 = vmax.f32 %v1667_v15, 0.0 }
 0x12a   : > { %v2004_v19 = vadd.f32 %v2003_v16, %v2002_v1 }
 0x12b   : > { %v1668_v21 = vadd.f32 %v2715_v53, %v1653_v17  ;;  %v2005_v20 = vpop.f32.mrf.mxu0 }
 0x12c   : > { %v1558_v22 = vadd.f32 %v2004_v19, %v1493_v18 }
 0x12d   : > { %v1676_v7 = vmax.f32 %v1668_v21, 0.0  ;;  %v2006_v9 = vpop.f32.mrf.mxu0 }
 0x12e   : > { %v1623_v29 = vadd.f32 %v2050_v54, %v1558_v22  ;;  %v2007_v26 = vadd.f32 %v2006_v9, %v2005_v20 }
 0x12f   : > { %v1880_v31 = vpack.c.bf16 %v1676_v7, %v1675_v23  ;;  %v2008_v0 = vpop.f32.mrf.mxu0  ;;  %v2054_v50 = vpop.f32.mrf.mxu1 }
 0x130   : > { %v1654_v5 = vmul.f32 %v2709_v3, %v1623_v29  ;;  %v1561_v25 = vadd.f32 %v2007_v26, %v1496_v24 }
 0x131   : > { %1881 = vst [vmem:[%s2724_s21] sm:$0xff] %v1880_v31   ;;  %v2009_v37 = vpop.f32.mrf.mxu0  ;;  %v1630_v33 = vpop.f32.mrf.mxu1 }
 0x132   : > { %v1626_v39 = vadd.f32 %v2051_v48, %v1561_v25  ;;  %v2010_v54 = vadd.f32 %v2009_v37, %v2008_v0  ;;  %v1669_v55 = vadd.f32 %v2715_v53, %v1654_v5  ;;  %v1936_v48 = vadd.f32 %v2692_v43, %v2688_v35 }
 0x133   : > { %v2011_v59 = vpop.f32.mrf.mxu0  ;;  %v2055_v56 = vpop.f32.mrf.mxu1  ;;  %v1979_v35 = vadd.f32 %v2704_v52, %v2700_v49 }
 0x134   : > { %v1655_v13 = vmul.f32 %v2709_v3, %v1626_v39  ;;  %v1566_v62 = vadd.f32 %v2010_v54, %v1501_v32  ;;  %v1677_v36 = vmax.f32 %v1669_v55, 0.0  ;;  %v1509_v11 = vadd.f32 %v1976_v61, %v1936_v48 }
 0x135   : > { %v2012_v60 = vpop.f32.mrf.mxu0  ;;  %v1633_v57 = vpop.f32.mrf.mxu1  ;;  %v1512_v18 = vadd.f32 %v1979_v35, %v1939_v14 }
 0x136   : > { %v1670_v38 = vadd.f32 %v2715_v53, %v1655_v13  ;;  %v2013_v40 = vadd.f32 %v2012_v60, %v2011_v59  ;;  %v1631_v58 = vadd.f32 %v1630_v33, %v1566_v62 }
 0x138   : > { %v1678_v4 = vmax.f32 %v1670_v38, 0.0  ;;  %v1656_v30 = vmul.f32 %v2709_v3, %v1631_v58  ;;  %v1569_v41 = vadd.f32 %v2013_v40, %v1504_v47 }
 0x13a   : > { %v1885_v63 = vpack.c.bf16 %v1678_v4, %v1677_v36  ;;  %v2014_v6 = vpop.f32.mrf.mxu0  ;;  %v1634_v8 = vadd.f32 %v1633_v57, %v1569_v41  ;;  %v1671_v12 = vadd.f32 %v2715_v53, %v1656_v30 }
 0x13c   : > { %1897 = vst [vmem:[%s2724_s21 + $0x8] sm:$0xff] %v1885_v63   ;;  %v2015_v10 = vpop.f32.mrf.mxu0  ;;  %v1657_v1 = vmul.f32 %v2709_v3, %v1634_v8  ;;  %v1679_v15 = vmax.f32 %v1671_v12, 0.0 }
 0x13d   : > { %v2016_v43 = vadd.f32 %v2015_v10, %v2014_v6 }
 0x13e   : > { %v1672_v42 = vadd.f32 %v2715_v53, %v1657_v1  ;;  %v2017_v44 = vpop.f32.mrf.mxu0 }
 0x13f   : > { %v1574_v2 = vadd.f32 %v2016_v43, %v1509_v11 }
 0x140   : > { %v1680_v16 = vmax.f32 %v1672_v42, 0.0  ;;  %v2018_v17 = vpop.f32.mrf.mxu0 }
 0x141   : > { %v1639_v19 = vadd.f32 %v2054_v50, %v1574_v2  ;;  %v2019_v21 = vadd.f32 %v2018_v17, %v2017_v44 }
 0x142   : > { %v1890_v20 = vpack.c.bf16 %v1680_v16, %v1679_v15 }
 0x143   : > { %v1658_v22 = vmul.f32 %v2709_v3, %v1639_v19  ;;  %v1577_v24 = vadd.f32 %v2019_v21, %v1512_v18 }
 0x144   : > { %1898 = vst [vmem:[%s2724_s21 + $0x10] sm:$0xff] %v1890_v20  }
 0x145   : > { %v1642_v46 = vadd.f32 %v2055_v56, %v1577_v24  ;;  %v1673_v49 = vadd.f32 %v2715_v53, %v1658_v22 }
 0x147   : > { %v1659_v51 = vmul.f32 %v2709_v3, %v1642_v46  ;;  %v1681_v23 = vmax.f32 %v1673_v49, 0.0 }
 0x149   : > { %v1674_v52 = vadd.f32 %v2715_v53, %v1659_v51 }
 0x14b   : > { %v1682_v7 = vmax.f32 %v1674_v52, 0.0 }
 0x14d   : > { %v1895_v9 = vpack.c.bf16 %v1682_v7, %v1681_v23 }
 0x14f   : > { %1899 = vst [vmem:[%s2724_s21 + $0x18] sm:$0xff] %v1895_v9  }
 0x150 PF: > { %s14_s15 = sadd.s32 1, %s2130_s15  }
 0x151   : > { %p11_p4 = scmp.ge.s32.totalorder %s14_s15, 4  }
 0x153   :  { %13 = sbr.rel (!%p11_p4) target bundleno = 1 (0x1), region = 66 }

// kernel: block17_forward.6
= control target key start
LH: loop header
LB: loop body
LE: loop exit
PB: predicated region body
PF: predicated region fallthrough
CT: control target
= control target key end

     0   :  { %s1696_s15 = smov 0   ;;  %s1984_s0 = inlined_call_operand.vmem [shape: bf16[2,14,8,128], index: 0, kind: input, shape index: {}]   ;;  %s1985_s1 = inlined_call_operand.vmem [shape: bf16[896,128], index: 1, kind: input, shape index: {}]   ;;  %s1986_s2 = inlined_call_operand.vmem [shape: f32[1,128], index: 2, kind: input, shape index: {}]   ;;  %s1987_s3 = inlined_call_operand.vmem [shape: f32[1,128], index: 3, kind: input, shape index: {}]   ;;  %s1988_s4 = inlined_call_operand.vmem [shape: bf16[2,8,8,128], index: 4, kind: output, shape index: {}]  }
   0x1 LB: > { %s1246_s16 = sadd.s32 4294967295, %s1669_s15   ;;  %p1250_p0 = scmp.ge.s32.totalorder %s1669_s15, 1  ;;  %s1669_s15 = sphi %s1696_s15, %s14_s15  }
   0x2   : > { %p162_p1 = scmp.lt.s32.totalorder %s1669_s15, 3 }
   0x4   : > { %p163_p2 = pnand %p1250_p0, %p162_p1 }
   0x5   : > { %p188_p3 = scmp.lt.s32.totalorder (!%p163_p2), %s1246_s16, 1 }
   0x6   : > { %166 = sbr.rel (%p163_p2) target bundleno = 315 (0x13b), region = 36 }
   0xb   : > { %v1579_v0 = vld [vmem:[%s1985_s1 + $0x78] sm:$0xff]   ;;  %v1583_v4 = vld [vmem:[%s1985_s1 + $0x70] sm:$0xff]   ;;  %v1587_v8 = vld [vmem:[%s1985_s1 + $0x68] sm:$0xff]   ;;  %s1990_s16 = smov (!%p188_p3, %s1246_s16), 1 }
   0xc   : > { %v1580_v1 = vld [vmem:[%s1985_s1 + $0xf8] sm:$0xff]   ;;  %1414 = vmatprep.subr.bf16.mxu0 %v1579_v0  ;;  %v1584_v5 = vld [vmem:[%s1985_s1 + $0xf0] sm:$0xff]   ;;  %v1588_v9 = vld [vmem:[%s1985_s1 + $0xe8] sm:$0xff]   ;;  %s1570_s21 = smul.u32 56, %s1990_s16  ;;  %s1390_s18 = sshll.u32 %s1990_s16, 5 }
   0xd   : > { %v1581_v2 = vld [vmem:[%s1985_s1 + $0x38] sm:$0xff]   ;;  %1454 = vmatprep.subr.bf16.mxu1 %v1580_v1  ;;  %v1585_v6 = vld [vmem:[%s1985_s1 + $0x30] sm:$0xff]   ;;  %v1589_v10 = vld [vmem:[%s1985_s1 + $0x28] sm:$0xff]  }
   0xe   : > { %v1582_v3 = vld [vmem:[%s1985_s1 + $0xb8] sm:$0xff]   ;;  %1415 = vmatpush3.bf16.msra.mxu0 %v1581_v2  ;;  %v1586_v7 = vld [vmem:[%s1985_s1 + $0xb0] sm:$0xff]   ;;  %v1590_v11 = vld [vmem:[%s1985_s1 + $0xa8] sm:$0xff]   ;;  %s1804_s6 = scalar_lea.vmem %s1984_s0, %s1570_s21  ;;  %s1954_s21 = scalar_lea.vmem %s1988_s4, %s1390_s18 }
   0xf   : > { %1455 = vmatpush3.bf16.msra.mxu1 %v1582_v3  ;;  %1416 = vmatprep.subr.bf16.mxu0 %v1583_v4  ;;  %v1591_v12 = vld [vmem:[%s1985_s1 + $0x60] sm:$0xff]   ;;  %v1595_v16 = vld [vmem:[%s1985_s1 + $0x58] sm:$0xff]   ;;  %v1599_v20 = vld [vmem:[%s1985_s1 + $0x50] sm:$0xff]  }
  0x10   : > { %1456 = vmatprep.subr.bf16.mxu1 %v1584_v5  ;;  %v1592_v13 = vld [vmem:[%s1985_s1 + $0xe0] sm:$0xff]   ;;  %v1596_v17 = vld [vmem:[%s1985_s1 + $0xd8] sm:$0xff]   ;;  %v1600_v21 = vld [vmem:[%s1985_s1 + $0xd0] sm:$0xff]  }
  0x11   : > { %v1593_v14 = vld [vmem:[%s1985_s1 + $0x20] sm:$0xff]   ;;  %v1597_v18 = vld [vmem:[%s1985_s1 + $0x18] sm:$0xff]   ;;  %v1601_v22 = vld [vmem:[%s1985_s1 + $0x10] sm:$0xff]  }
  0x12   : > { %1417 = vmatpush3.bf16.msra.mxu0 %v1585_v6  ;;  %v1594_v15 = vld [vmem:[%s1985_s1 + $0xa0] sm:$0xff]   ;;  %v1598_v19 = vld [vmem:[%s1985_s1 + $0x98] sm:$0xff]   ;;  %v1602_v23 = vld [vmem:[%s1985_s1 + $0x90] sm:$0xff]  }
  0x13   : > { %1457 = vmatpush3.bf16.msra.mxu1 %v1586_v7  ;;  %1418 = vmatprep.subr.bf16.mxu0 %v1587_v8  ;;  %v1603_v24 = vld [vmem:[%s1985_s1 + $0x48] sm:$0xff]   ;;  %v1607_v28 = vld [vmem:[%s1985_s1 + $0x40] sm:$0xff]   ;;  %v1615_v36 = vld [vmem:[%s1985_s1 + $0x178] sm:$0xff]  }
  0x14   : > { %1458 = vmatprep.subr.bf16.mxu1 %v1588_v9  ;;  %v1604_v25 = vld [vmem:[%s1985_s1 + $0xc8] sm:$0xff]   ;;  %v1608_v29 = vld [vmem:[%s1985_s1 + $0xc0] sm:$0xff]   ;;  %v1616_v37 = vld [vmem:[%s1985_s1 + $0x138] sm:$0xff]  }
  0x15   : > { %v1605_v26 = vld [vmem:[%s1985_s1 + $0x8] sm:$0xff]   ;;  %v1609_v30 = vld [vmem:[%s1985_s1] sm:$0xff]   ;;  %v1617_v38 = vld [vmem:[%s1985_s1 + $0x170] sm:$0xff]  }
  0x16   : > { %1419 = vmatpush3.bf16.msra.mxu0 %v1589_v10  ;;  %v1606_v27 = vld [vmem:[%s1985_s1 + $0x88] sm:$0xff]   ;;  %v1610_v31 = vld [vmem:[%s1985_s1 + $0x80] sm:$0xff]   ;;  %v1618_v39 = vld [vmem:[%s1985_s1 + $0x1b8] sm:$0xff]  }
  0x17   : > { %1459 = vmatpush3.bf16.msra.mxu1 %v1590_v11  ;;  %1420 = vmatprep.subr.bf16.mxu0 %v1591_v12  ;;  %v1611_v32 = vld [vmem:[%s1804_s6 + $0x4] sm:$0xff]   ;;  %v1612_v33 = vld [vmem:[%s1804_s6 + $0xc] sm:$0xff]   ;;  %v1621_v42 = vld [vmem:[%s1804_s6 + $0x14] sm:$0xff]  }
  0x18   : > { %1460 = vmatprep.subr.bf16.mxu1 %v1592_v13  ;;  %909 = vmatprep.mubr.bf16.mxu0 %v1611_v32  ;;  %v1613_v34 = vld [vmem:[%s1804_s6] sm:$0xff]   ;;  %v1614_v35 = vld [vmem:[%s1804_s6 + $0x8] sm:$0xff]   ;;  %v1619_v40 = vld [vmem:[%s1985_s1 + $0x130] sm:$0xff]  }
  0x19   : > { %974 = vmatprep.mubr.bf16.mxu1 %v1612_v33  ;;  %v1620_v41 = vld [vmem:[%s1804_s6 + $0xc] sm:$0xff]   ;;  %v1627_v48 = vld [vmem:[%s1985_s1 + $0x160] sm:$0xff]   ;;  %v1630_v51 = vld [vmem:[%s1804_s6 + $0x14] sm:$0xff]  }
  0x1a   : > { %1421 = vmatpush3.bf16.msra.mxu0 %v1593_v14  ;;  %v1622_v43 = vld [vmem:[%s1804_s6 + $0x8] sm:$0xff]   ;;  %v1623_v44 = vld [vmem:[%s1804_s6 + $0x10] sm:$0xff]   ;;  %v1629_v50 = vld [vmem:[%s1985_s1 + $0x120] sm:$0xff]  }
  0x1b   : > { %1461 = vmatpush3.bf16.msra.mxu1 %v1594_v15  ;;  %1422 = vmatprep.subr.bf16.mxu0 %v1595_v16  ;;  %v1624_v45 = vld [vmem:[%s1985_s1 + $0x168] sm:$0xff]   ;;  %v1625_v46 = vld [vmem:[%s1985_s1 + $0x1b0] sm:$0xff]   ;;  %v1631_v52 = vld [vmem:[%s1804_s6 + $0x1c] sm:$0xff]  }
  0x1c   : > { %1462 = vmatprep.subr.bf16.mxu1 %v1596_v17  ;;  %v1626_v47 = vld [vmem:[%s1985_s1 + $0x128] sm:$0xff]   ;;  %v1632_v53 = vld [vmem:[%s1804_s6 + $0x10] sm:$0xff]   ;;  %v1633_v54 = vld [vmem:[%s1804_s6 + $0x18] sm:$0xff]  }
  0x1d   : > { %v1628_v49 = vld [vmem:[%s1985_s1 + $0x1a8] sm:$0xff]   ;;  %v1634_v55 = vld [vmem:[%s1985_s1 + $0x158] sm:$0xff]   ;;  %v1635_v56 = vld [vmem:[%s1985_s1 + $0x1a0] sm:$0xff]  }
  0x1e   : > { %1423 = vmatpush3.bf16.msra.mxu0 %v1597_v18  ;;  %v1636_v57 = vld [vmem:[%s1985_s1 + $0x118] sm:$0xff]   ;;  %v1637_v58 = vld [vmem:[%s1985_s1 + $0x150] sm:$0xff]   ;;  %v1641_v62 = vld [vmem:[%s1804_s6 + $0x24] sm:$0xff]  }
  0x1f   : > { %1463 = vmatpush3.bf16.msra.mxu1 %v1598_v19  ;;  %1424 = vmatprep.subr.bf16.mxu0 %v1599_v20  ;;  %v1638_v59 = vld [vmem:[%s1985_s1 + $0x198] sm:$0xff]   ;;  %v1639_v60 = vld [vmem:[%s1985_s1 + $0x110] sm:$0xff]   ;;  %v1643_v0 = vld [vmem:[%s1804_s6 + $0x20] sm:$0xff]  }
  0x20   : > { %1464 = vmatprep.subr.bf16.mxu1 %v1600_v21  ;;  %v1640_v61 = vld [vmem:[%s1804_s6 + $0x1c] sm:$0xff]   ;;  %v1644_v1 = vld [vmem:[%s1985_s1 + $0x148] sm:$0xff]   ;;  %v1645_v2 = vld [vmem:[%s1985_s1 + $0x190] sm:$0xff]  }
  0x21   : > { %v1642_v63 = vld [vmem:[%s1804_s6 + $0x18] sm:$0xff]   ;;  %v1646_v3 = vld [vmem:[%s1985_s1 + $0x108] sm:$0xff]   ;;  %v1647_v4 = vld [vmem:[%s1985_s1 + $0x140] sm:$0xff]  }
  0x22   : > { %1425 = vmatpush3.bf16.msra.mxu0 %v1601_v22  ;;  %v1648_v5 = vld [vmem:[%s1985_s1 + $0x188] sm:$0xff]   ;;  %v1649_v6 = vld [vmem:[%s1985_s1 + $0x100] sm:$0xff]   ;;  %v1650_v7 = vld [vmem:[%s1804_s6 + $0x14] sm:$0xff]  }
  0x23   : > { %1465 = vmatpush3.bf16.msra.mxu1 %v1602_v23  ;;  %1426 = vmatprep.subr.bf16.mxu0 %v1603_v24  ;;  %v1651_v8 = vld [vmem:[%s1804_s6 + $0x10] sm:$0xff]   ;;  %v1652_v9 = vld [vmem:[%s1985_s1 + $0x180] sm:$0xff]   ;;  %v1653_v10 = vld [vmem:[%s1804_s6 + $0x18] sm:$0xff]  }
  0x24   : > { %1466 = vmatprep.subr.bf16.mxu1 %v1604_v25  ;;  %v1654_v11 = vld [vmem:[%s1804_s6 + $0x20] sm:$0xff]   ;;  %v1656_v13 = vld [vmem:[%s1804_s6 + $0x18] sm:$0xff]   ;;  %v1659_v14 = vld [vmem:[%s1804_s6 + $0x28] sm:$0xff]  }
  0x25   : > { %v1655_v12 = vld [vmem:[%s1804_s6 + $0x1c] sm:$0xff]   ;;  %v1657_v15 = vld [vmem:[%s1804_s6 + $0x24] sm:$0xff]   ;;  %v1660_v16 = vld [vmem:[%s1804_s6 + $0x30] sm:$0xff]  }
  0x26   : > { %1427 = vmatpush3.bf16.msra.mxu0 %v1605_v26  ;;  %v1658_v17 = vld [vmem:[%s1804_s6 + $0x20] sm:$0xff]   ;;  %v1661_v18 = vld [vmem:[%s1804_s6 + $0x2c] sm:$0xff]  }
  0x27   : > { %1467 = vmatpush3.bf16.msra.mxu1 %v1606_v27  ;;  %1428 = vmatprep.subr.bf16.mxu0 %v1607_v28  ;;  %v1662_v19 = vld [vmem:[%s1804_s6 + $0x28] sm:$0xff]  }
  0x28   : > { %1468 = vmatprep.subr.bf16.mxu1 %v1608_v29 }
  0x2a   : > { %1429 = vmatpush3.bf16.msra.mxu0 %v1609_v30 }
  0x2b   : > { %1469 = vmatpush3.bf16.msra.mxu1 %v1610_v31  ;;  %1494 = vmatprep.subr.bf16.mxu0 %v1615_v36 }
  0x2c   : > { %1546 = vmatprep.subr.bf16.mxu1 %v1618_v39 }
  0x2d   : > { %910 = vmatmul.mubr.bf16.vlgmr.msra.gmra.mxu0 %v1613_v34 }
  0x2e   : > { %975 = vmatmul.mubr.bf16.vlgmr.msra.gmra.mxu1 %v1614_v35  ;;  %1495 = vmatpush3.bf16.msra.mxu0 %v1616_v37 }
  0x2f   : > { %1496 = vmatprep.subr.bf16.mxu0 %v1617_v38  ;;  %1547 = vmatpush3.bf16.msra.mxu1 %v1618_v39 }
  0x30   : > { %917 = vmatprep.mubr.bf16.mxu0 %v1620_v41  ;;  %982 = vmatprep.mubr.bf16.mxu1 %v1621_v42 }
  0x31   : > { %1548 = vmatprep.subr.bf16.mxu1 %v1625_v46 }
  0x32   : > { %1497 = vmatpush3.bf16.msra.mxu0 %v1619_v40 }
  0x33   : > { %1498 = vmatprep.subr.bf16.mxu0 %v1624_v45  ;;  %1549 = vmatpush3.bf16.msra.mxu1 %v1625_v46 }
  0x34   : > { %1550 = vmatprep.subr.bf16.mxu1 %v1628_v49 }
  0x35   : > { %918 = vmatmul.mubr.bf16.gmra.mxu0 %v1622_v43 }
  0x36   : > { %983 = vmatmul.mubr.bf16.gmra.mxu1 %v1623_v44  ;;  %1499 = vmatpush3.bf16.msra.mxu0 %v1626_v47 }
  0x37   : > { %1500 = vmatprep.subr.bf16.mxu0 %v1627_v48  ;;  %1551 = vmatpush3.bf16.msra.mxu1 %v1628_v49 }
  0x38   : > { %925 = vmatprep.mubr.bf16.mxu0 %v1630_v51  ;;  %990 = vmatprep.mubr.bf16.mxu1 %v1631_v52 }
  0x39   : > { %1552 = vmatprep.subr.bf16.mxu1 %v1635_v56 }
  0x3a   : > { %1501 = vmatpush3.bf16.msra.mxu0 %v1629_v50 }
  0x3b   : > { %1502 = vmatprep.subr.bf16.mxu0 %v1634_v55  ;;  %1553 = vmatpush3.bf16.msra.mxu1 %v1635_v56 }
  0x3c   : > { %1554 = vmatprep.subr.bf16.mxu1 %v1638_v59 }
  0x3d   : > { %926 = vmatmul.mubr.bf16.gmra.mxu0 %v1632_v53 }
  0x3e   : > { %991 = vmatmul.mubr.bf16.gmra.mxu1 %v1633_v54  ;;  %1503 = vmatpush3.bf16.msra.mxu0 %v1636_v57 }
  0x3f   : > { %1504 = vmatprep.subr.bf16.mxu0 %v1637_v58  ;;  %1555 = vmatpush3.bf16.msra.mxu1 %v1638_v59 }
  0x40   : > { %933 = vmatprep.mubr.bf16.mxu0 %v1640_v61  ;;  %998 = vmatprep.mubr.bf16.mxu1 %v1641_v62 }
  0x41   : > { %1556 = vmatprep.subr.bf16.mxu1 %v1645_v2 }
  0x42   : > { %1505 = vmatpush3.bf16.msra.mxu0 %v1639_v60 }
  0x43   : > { %1506 = vmatprep.subr.bf16.mxu0 %v1644_v1  ;;  %1557 = vmatpush3.bf16.msra.mxu1 %v1645_v2 }
  0x44   : > { %1558 = vmatprep.subr.bf16.mxu1 %v1648_v5 }
  0x45   : > { %934 = vmatmul.mubr.bf16.gmra.mxu0 %v1642_v63 }
  0x46   : > { %999 = vmatmul.mubr.bf16.gmra.mxu1 %v1643_v0  ;;  %1507 = vmatpush3.bf16.msra.mxu0 %v1646_v3  ;;  %v1937_v3 = vld [vmem:[%s1986_s2] ss:$0 sm:$0xff] }
  0x47   : > { %1508 = vmatprep.subr.bf16.mxu0 %v1647_v4  ;;  %1559 = vmatpush3.bf16.msra.mxu1 %v1648_v5 }
  0x48   : > { %1039 = vmatprep.mubr.bf16.mxu0 %v1650_v7  ;;  %1560 = vmatprep.subr.bf16.mxu1 %v1652_v9 }
  0x49   : > { %1562 = vmatprep.mubr.bf16.mxu1 %v1653_v10 }
  0x4a   : > { %1509 = vmatpush3.bf16.msra.mxu0 %v1649_v6 }
  0x4b   : > { %1561 = vmatpush3.bf16.msra.mxu1 %v1652_v9 }
  0x4d   : > { %1040 = vmatmul.mubr.bf16.vlgmr.msra.gmra.mxu0 %v1651_v8 }
  0x4e   : > { %1047 = vmatprep.mubr.bf16.mxu0 %v1655_v12  ;;  %1563 = vmatmul.mubr.bf16.vlgmr.msra.gmra.mxu1 %v1654_v11  ;;  %v1943_v12 = vld [vmem:[%s1987_s3] ss:$0 sm:$0xff] }
  0x4f   : > { %1566 = vmatprep.mubr.bf16.mxu1 %v1659_v14 }
  0x55   : > { %1048 = vmatmul.mubr.bf16.gmra.mxu0 %v1656_v13 }
  0x56   : > { %1055 = vmatprep.mubr.bf16.mxu0 %v1657_v15  ;;  %1567 = vmatmul.mubr.bf16.gmra.mxu1 %v1660_v16 }
  0x5d   : > { %1056 = vmatmul.mubr.bf16.gmra.mxu0 %v1658_v17 }
  0x5e   : > { %1063 = vmatprep.mubr.bf16.mxu0 %v1661_v18 }
  0x65   : > { %1064 = vmatmul.mubr.bf16.gmra.mxu0 %v1662_v19 }
  0xed   : > { %v1430_v20 = vpop.f32.mrf.mxu0 }
  0xee   : > { %v1470_v21 = vpop.f32.mrf.mxu1 }
  0xef   : > { %v1431_v22 = vpop.f32.mrf.mxu0 }
  0xf0   : > { %v1471_v23 = vpop.f32.mrf.mxu1  ;;  %v1432_v51 = vadd.f32 %v1431_v22, %v1430_v20 }
  0xf1   : > { %v1433_v24 = vpop.f32.mrf.mxu0  ;;  %v1472_v52 = vadd.f32 %v1471_v23, %v1470_v21 }
  0xf2   : > { %v1473_v25 = vpop.f32.mrf.mxu1 }
  0xf3   : > { %v1434_v26 = vpop.f32.mrf.mxu0  ;;  %v977_v56 = vadd.f32 %v1472_v52, %v1432_v51 }
  0xf4   : > { %v1474_v27 = vpop.f32.mrf.mxu1  ;;  %v1435_v57 = vadd.f32 %v1434_v26, %v1433_v24 }
  0xf5   : > { %v1436_v28 = vpop.f32.mrf.mxu0  ;;  %v1475_v58 = vadd.f32 %v1474_v27, %v1473_v25 }
  0xf6   : > { %v1476_v29 = vpop.f32.mrf.mxu1 }
  0xf7   : > { %v1437_v30 = vpop.f32.mrf.mxu0  ;;  %v980_v4 = vadd.f32 %v1475_v58, %v1435_v57 }
  0xf8   : > { %v1477_v31 = vpop.f32.mrf.mxu1  ;;  %v1438_v63 = vadd.f32 %v1437_v30, %v1436_v28 }
  0xf9   : > { %v1439_v32 = vpop.f32.mrf.mxu0  ;;  %v1478_v0 = vadd.f32 %v1477_v31, %v1476_v29 }
  0xfa   : > { %v1479_v33 = vpop.f32.mrf.mxu1 }
  0xfb   : > { %v1440_v34 = vpop.f32.mrf.mxu0  ;;  %v985_v11 = vadd.f32 %v1478_v0, %v1438_v63 }
  0xfc   : > { %v1480_v35 = vpop.f32.mrf.mxu1  ;;  %v1441_v15 = vadd.f32 %v1440_v34, %v1439_v32 }
  0xfd   : > { %v1442_v36 = vpop.f32.mrf.mxu0  ;;  %v1481_v16 = vadd.f32 %v1480_v35, %v1479_v33 }
  0xfe   : > { %v1482_v37 = vpop.f32.mrf.mxu1 }
  0xff   : > { %v1443_v38 = vpop.f32.mrf.mxu0  ;;  %v988_v27 = vadd.f32 %v1481_v16, %v1441_v15 }
 0x100   : > { %v1483_v39 = vpop.f32.mrf.mxu1  ;;  %v1444_v24 = vadd.f32 %v1443_v38, %v1442_v36 }
 0x101   : > { %v1912_v40 = vpop.f32.mrf.mxu0  ;;  %v1484_v25 = vadd.f32 %v1483_v39, %v1482_v37 }
 0x102   : > { %v1914_v41 = vpop.f32.mrf.mxu1 }
 0x103   : > { %v1446_v42 = vpop.f32.mrf.mxu0  ;;  %v993_v52 = vadd.f32 %v1484_v25, %v1444_v24 }
 0x104   : > { %v1916_v43 = vpop.f32.mrf.mxu1 }
 0x105   : > { %v1918_v44 = vpop.f32.mrf.mxu0  ;;  %v1487_v37 = vadd.f32 %v1916_v43, %v1914_v41 }
 0x106   : > { %v1920_v45 = vpop.f32.mrf.mxu1 }
 0x107   : > { %v1922_v46 = vpop.f32.mrf.mxu0 }
 0x108   : > { %v1926_v48 = vpop.f32.mrf.mxu1 }
 0x109   : > { %v1924_v47 = vpop.f32.mrf.mxu0 }
 0x10a   : > { %v1930_v50 = vpop.f32.mrf.mxu1 }
 0x10b   : > { %v1928_v49 = vpop.f32.mrf.mxu0 }
 0x10c   : > { %v1932_v54 = vpop.f32.mrf.mxu1 }
 0x10d   : > { %v1510_v53 = vpop.f32.mrf.mxu0 }
 0x10e   : > { %v1564_v61 = vpop.f32.mrf.mxu1 }
 0x10f   : > { %v1511_v55 = vpop.f32.mrf.mxu0 }
 0x110   : > { %v1512_v59 = vadd.f32 %v1511_v55, %v1510_v53  ;;  %v1106_v2 = vpop.f32.mrf.mxu1  ;;  %v1447_v53 = vadd.f32 %v1446_v42, %v1912_v40 }
 0x111   : > { %v1513_v60 = vpop.f32.mrf.mxu0 }
 0x112   : > { %v1042_v62 = vadd.f32 %v1512_v59, %v977_v56  ;;  %v1565_v8 = vpop.f32.mrf.mxu1  ;;  %v1450_v59 = vadd.f32 %v1922_v46, %v1918_v44  ;;  %v1453_v44 = vadd.f32 %v1928_v49, %v1924_v47 }
 0x113   : > { %v1514_v1 = vpop.f32.mrf.mxu0 }
 0x114   : > { %v1515_v5 = vadd.f32 %v1514_v1, %v1513_v60  ;;  %v1107_v6 = vadd.f32 %v1106_v2, %v1042_v62  ;;  %v1109_v14 = vpop.f32.mrf.mxu1  ;;  %v1490_v60 = vadd.f32 %v1926_v48, %v1920_v45  ;;  %v996_v62 = vadd.f32 %v1487_v37, %v1447_v53 }
 0x115   : > { %v1516_v7 = vpop.f32.mrf.mxu0  ;;  %v1493_v45 = vadd.f32 %v1932_v54, %v1930_v50 }
 0x116   : > { %v1144_v9 = vmul.f32 %v1937_v3, %v1107_v6  ;;  %v1045_v10 = vadd.f32 %v1515_v5, %v980_v4  ;;  %v1568_v20 = vpop.f32.mrf.mxu1 }
 0x117   : > { %v1517_v13 = vpop.f32.mrf.mxu0  ;;  %v1004_v16 = vadd.f32 %v1493_v45, %v1453_v44 }
 0x118   : > { %v1518_v17 = vadd.f32 %v1517_v13, %v1516_v7  ;;  %v1110_v18 = vadd.f32 %v1109_v14, %v1045_v10  ;;  %v1159_v21 = vadd.f32 %v1943_v12, %v1144_v9  ;;  %v1122_v32 = vpop.f32.mrf.mxu1  ;;  %v1001_v7 = vadd.f32 %v1490_v60, %v1450_v59 }
 0x119   : > { %v1519_v19 = vpop.f32.mrf.mxu0 }
 0x11a   : > { %v1050_v22 = vadd.f32 %v1518_v17, %v985_v11  ;;  %v1145_v23 = vmul.f32 %v1937_v3, %v1110_v18  ;;  %v1167_v33 = vmax.f32 %v1159_v21, 0.0  ;;  %v1569_v57 = vpop.f32.mrf.mxu1 }
 0x11b   : > { %v1520_v26 = vpop.f32.mrf.mxu0 }
 0x11c   : > { %v1115_v28 = vadd.f32 %v1564_v61, %v1050_v22  ;;  %v1160_v29 = vadd.f32 %v1943_v12, %v1145_v23  ;;  %v1521_v30 = vadd.f32 %v1520_v26, %v1519_v19  ;;  %v1125_v1 = vpop.f32.mrf.mxu1 }
 0x11d   : > { %v1522_v31 = vpop.f32.mrf.mxu0 }
 0x11e   : > { %v1146_v34 = vmul.f32 %v1937_v3, %v1115_v28  ;;  %v1168_v35 = vmax.f32 %v1160_v29, 0.0  ;;  %v1053_v51 = vadd.f32 %v1521_v30, %v988_v27 }
 0x11f   : > { %v1523_v36 = vpop.f32.mrf.mxu0 }
 0x120   : > { %v1394_v38 = vpack.c.bf16 %v1168_v35, %v1167_v33  ;;  %v1118_v39 = vadd.f32 %v1565_v8, %v1053_v51  ;;  %v1524_v55 = vadd.f32 %v1523_v36, %v1522_v31  ;;  %v1161_v58 = vadd.f32 %v1943_v12, %v1146_v34 }
 0x121   : > { %v1525_v56 = vpop.f32.mrf.mxu0 }
 0x122   : > { %1395 = vst [vmem:[%s1954_s21] sm:$0xff] %v1394_v38   ;;  %v1147_v40 = vmul.f32 %v1937_v3, %v1118_v39  ;;  %v1058_v42 = vadd.f32 %v1524_v55, %v993_v52  ;;  %v1169_v2 = vmax.f32 %v1161_v58, 0.0 }
 0x123   : > { %v1526_v61 = vpop.f32.mrf.mxu0 }
 0x124   : > { %v1162_v41 = vadd.f32 %v1943_v12, %v1147_v40  ;;  %v1527_v43 = vadd.f32 %v1526_v61, %v1525_v56  ;;  %v1123_v63 = vadd.f32 %v1122_v32, %v1058_v42 }
 0x125   : > { %v1528_v0 = vpop.f32.mrf.mxu0 }
 0x126   : > { %v1170_v4 = vmax.f32 %v1162_v41, 0.0  ;;  %v1148_v5 = vmul.f32 %v1937_v3, %v1123_v63  ;;  %v1061_v6 = vadd.f32 %v1527_v43, %v996_v62 }
 0x127   : > { %v1529_v46 = vpop.f32.mrf.mxu0 }
 0x128   : > { %v1399_v48 = vpack.c.bf16 %v1170_v4, %v1169_v2  ;;  %v1530_v8 = vadd.f32 %v1529_v46, %v1528_v0  ;;  %v1126_v9 = vadd.f32 %v1125_v1, %v1061_v6  ;;  %v1163_v11 = vadd.f32 %v1943_v12, %v1148_v5 }
 0x129   : > { %v1531_v10 = vpop.f32.mrf.mxu0 }
 0x12a   : > { %1411 = vst [vmem:[%s1954_s21 + $0x8] sm:$0xff] %v1399_v48   ;;  %v1066_v13 = vadd.f32 %v1530_v8, %v1001_v7  ;;  %v1149_v14 = vmul.f32 %v1937_v3, %v1126_v9  ;;  %v1171_v18 = vmax.f32 %v1163_v11, 0.0 }
 0x12b   : > { %v1532_v15 = vpop.f32.mrf.mxu0 }
 0x12c   : > { %v1131_v17 = vadd.f32 %v1568_v20, %v1066_v13  ;;  %v1164_v47 = vadd.f32 %v1943_v12, %v1149_v14  ;;  %v1533_v49 = vadd.f32 %v1532_v15, %v1531_v10 }
 0x12e   : > { %v1150_v50 = vmul.f32 %v1937_v3, %v1131_v17  ;;  %v1172_v54 = vmax.f32 %v1164_v47, 0.0  ;;  %v1069_v19 = vadd.f32 %v1533_v49, %v1004_v16 }
 0x130   : > { %v1404_v21 = vpack.c.bf16 %v1172_v54, %v1171_v18  ;;  %v1134_v22 = vadd.f32 %v1569_v57, %v1069_v19  ;;  %v1165_v23 = vadd.f32 %v1943_v12, %v1150_v50 }
 0x132   : > { %1412 = vst [vmem:[%s1954_s21 + $0x10] sm:$0xff] %v1404_v21   ;;  %v1151_v24 = vmul.f32 %v1937_v3, %v1134_v22  ;;  %v1173_v26 = vmax.f32 %v1165_v23, 0.0 }
 0x134   : > { %v1166_v25 = vadd.f32 %v1943_v12, %v1151_v24 }
 0x136   : > { %v1174_v20 = vmax.f32 %v1166_v25, 0.0 }
 0x138   : > { %v1409_v27 = vpack.c.bf16 %v1174_v20, %v1173_v26 }
 0x13a   : > { %1413 = vst [vmem:[%s1954_s21 + $0x18] sm:$0xff] %v1409_v27  }
 0x13b PF: > { %s14_s15 = sadd.s32 1, %s1669_s15  }
 0x13c   : > { %p11_p4 = scmp.ge.s32.totalorder %s14_s15, 4  }
 0x13e   :  { %13 = sbr.rel (!%p11_p4) target bundleno = 1 (0x1), region = 72 }

// kernel: block17_forward.7
= control target key start
LH: loop header
LB: loop body
LE: loop exit
PB: predicated region body
PF: predicated region fallthrough
CT: control target
= control target key end

     0   :  { %10 = vsyncpa [#allocation3], 0  ;;  %s3415_s0 = inlined_call_operand.vmem [shape: bf16[2,8,8,128], index: 0, kind: input, shape index: {}]   ;;  %s3416_s1 = inlined_call_operand.vmem [shape: bf16[2,8,8,128], index: 1, kind: input, shape index: {}]   ;;  %s3417_s2 = inlined_call_operand.vmem [shape: f32[2,8,8,896], index: 2, kind: input, shape index: {}]   ;;  %s3418_s3 = inlined_call_operand.vmem [shape: bf16[256,896], index: 3, kind: input, shape index: {}]   ;;  %s3419_s4 = inlined_call_operand.vmem [shape: f32[1,896], index: 4, kind: input, shape index: {}]   ;;  %s3420_s5 = inlined_call_operand.hbm [shape: f32[2,8,8,896], index: 5, kind: output, shape index: {}]  }
   0x1   :  { %12 = vsyncpa [#allocation3 + $0x1], 0  ;;  %s2532_s18 = smov 0   ;;  %s2534_s19 = smov 0  }
   0x2   :  { %s2536_s20 = smov 0   ;;  %s2538_s21 = smov 0  }
   0x3 LB: > { %s2553_s22 = sadd.s32 4294967295, %s2496_s21   ;;  %s2017_s23 = sadd.s32 4294967294, %s2496_s21   ;;  %s2496_s21 = sphi %s2538_s21, %s3462_s21   ;;  %s2492_s20 = sphi %s2536_s20, %s3461_s20   ;;  %s2488_s19 = sphi %s2534_s19, %s3460_s19   ;;  %s2484_s18 = sphi %s2532_s18, %s3459_s18  }
   0x4   : > { %s2557_s24 = sadd.s32 1, %s2496_s21   ;;  %s145_s25 = sadd.s32 1, %s2492_s20 }
   0x5   : > { %s142_s26 = ssub.s32 %s2496_s21, %s2557_s24  ;;  %p155_p0 = scmp.ne.s32.totalorder %s2492_s20, %s2488_s19 }
   0x6   : > { %p143_p1 = scmp.eq.s32.totalorder %s142_s26, 0  ;;  %p156_p2 = scmp.eq.s32.totalorder %s2553_s22, 1 }
   0x7   : > { %p161_p3 = scmp.ne.s32.totalorder %s2488_s19, %s2484_s18  ;;  %p162_p4 = scmp.eq.s32.totalorder %s2017_s23, 1 }
   0x8   : > { %s2568_s27 = scalar_select %p143_p1, %s2492_s20, %s145_s25  }
   0x9   : > { %p2570_p5 = por %p156_p2, %p155_p0  ;;  %p2574_p6 = por %p162_p4, %p161_p3 }
   0xa   : > { %p2020_p7 = scmp.ge.s32.totalorder %s2496_s21, 1  ;;  %p210_p8 = scmp.lt.s32.totalorder %s2496_s21, 3 }
   0xc   : > { %p211_p9 = pnand %p2020_p7, %p210_p8 }
   0xe   : > { %214 = sbr.rel (%p211_p9) target bundleno = 394 (0x18a), region = 40 }
  0x13   : > { %v2268_v0 = vld [vmem:[%s3418_s3 + $0x34c] ss:$28 sps:$4 sm:$0xff]   ;;  %v2270_v1 = vld [vmem:[%s3418_s3 + $0x354] ss:$28 sps:$4 sm:$0xff]   ;;  %v2498_v2 = vmov 0   ;;  %p248_p10 = scmp.lt.s32.totalorder %s2553_s22, 1 }
  0x14   : > { %752 = vmatprep.mubr.bf16.mxu0 %v2498_v2  ;;  %825 = vmatprep.mubr.bf16.mxu1 %v2498_v2  ;;  %v2272_v3 = vld [vmem:[%s3418_s3 + $0x348] ss:$28 sps:$4 sm:$0xff]   ;;  %v2273_v4 = vld [vmem:[%s3418_s3 + $0x350] ss:$28 sps:$4 sm:$0xff]   ;;  %v2276_v6 = vld [vmem:[%s3418_s3 + $0x31c] ss:$28 sps:$4 sm:$0xff]  }
  0x15   : > { %720 = vmatprep.subr.bf16.mxu0 %v2268_v0  ;;  %793 = vmatprep.subr.bf16.mxu1 %v2270_v1  ;;  %v2274_v5 = vld [vmem:[%s3418_s3 + $0x314] ss:$28 sps:$4 sm:$0xff]   ;;  %v2280_v9 = vld [vmem:[%s3418_s3 + $0x2dc] ss:$28 sps:$4 sm:$0xff]   ;;  %v2282_v10 = vld [vmem:[%s3418_s3 + $0x2e4] ss:$28 sps:$4 sm:$0xff]  }
  0x16   : > { %721 = vmatpush1.bf16.msra.mxu0 %v2272_v3  ;;  %794 = vmatpush1.bf16.msra.mxu1 %v2273_v4  ;;  %v2278_v7 = vld [vmem:[%s3418_s3 + $0x310] ss:$28 sps:$4 sm:$0xff]   ;;  %v2279_v8 = vld [vmem:[%s3418_s3 + $0x318] ss:$28 sps:$4 sm:$0xff]   ;;  %v2285_v12 = vld [vmem:[%s3418_s3 + $0x2e0] ss:$28 sps:$4 sm:$0xff]  }
  0x17   : > { %722 = vmatprep.subr.bf16.mxu0 %v2274_v5  ;;  %795 = vmatprep.subr.bf16.mxu1 %v2276_v6  ;;  %v2284_v11 = vld [vmem:[%s3418_s3 + $0x2d8] ss:$28 sps:$4 sm:$0xff]   ;;  %v2286_v13 = vld [vmem:[%s3418_s3 + $0x2a4] ss:$28 sps:$4 sm:$0xff]   ;;  %v2288_v14 = vld [vmem:[%s3418_s3 + $0x2ac] ss:$28 sps:$4 sm:$0xff]  }
  0x18   : > { %v2290_v15 = vld [vmem:[%s3418_s3 + $0x2a0] ss:$28 sps:$4 sm:$0xff]   ;;  %v2291_v16 = vld [vmem:[%s3418_s3 + $0x2a8] ss:$28 sps:$4 sm:$0xff]   ;;  %v2294_v18 = vld [vmem:[%s3418_s3 + $0x274] ss:$28 sps:$4 sm:$0xff]  }
  0x19   : > { %v2292_v17 = vld [vmem:[%s3418_s3 + $0x26c] ss:$28 sps:$4 sm:$0xff]   ;;  %s2638_s9 = scalar_select %p248_p10, %s2553_s22, 1  ;;  %v2298_v21 = vld [vmem:[%s3418_s3 + $0x234] ss:$28 sps:$4 sm:$0xff]  }
  0x1a   : > { %723 = vmatpush1.bf16.msra.mxu0 %v2278_v7  ;;  %796 = vmatpush1.bf16.msra.mxu1 %v2279_v8  ;;  %v2296_v19 = vld [vmem:[%s3418_s3 + $0x268] ss:$28 sps:$4 sm:$0xff]   ;;  %v2297_v20 = vld [vmem:[%s3418_s3 + $0x270] ss:$28 sps:$4 sm:$0xff]   ;;  %v2300_v22 = vld [vmem:[%s3418_s3 + $0x23c] ss:$28 sps:$4 sm:$0xff]  }
  0x1b   : > { %724 = vmatprep.subr.bf16.mxu0 %v2280_v9  ;;  %797 = vmatprep.subr.bf16.mxu1 %v2282_v10  ;;  %s2149_s23 = sshll.u32 %s2638_s9, 5  ;;  %v2302_v23 = vld [vmem:[%s3418_s3 + $0x230] ss:$28 sps:$4 sm:$0xff]   ;;  %v2303_v24 = vld [vmem:[%s3418_s3 + $0x238] ss:$28 sps:$4 sm:$0xff]   ;;  %s2224_s10 = smul.u32 448, %s2638_s9 }
  0x1c   : > { %v2304_v25 = vld [vmem:[%s3418_s3 + $0x1fc] ss:$28 sps:$4 sm:$0xff]   ;;  %s2667_s12 = scalar_lea.vmem %s3416_s1, %s2149_s23  ;;  %v2306_v26 = vld [vmem:[%s3418_s3 + $0x204] ss:$28 sps:$4 sm:$0xff]   ;;  %v2312_v30 = vld [vmem:[%s3418_s3 + $0x1cc] ss:$28 sps:$4 sm:$0xff]   ;;  %s2807_s26 = scalar_lea.vmem %s3415_s0, %s2149_s23 }
  0x1d   : > { %v2308_v27 = vld [vmem:[%s3418_s3 + $0x1f8] ss:$28 sps:$4 sm:$0xff]   ;;  %v2309_v28 = vld [vmem:[%s3418_s3 + $0x200] ss:$28 sps:$4 sm:$0xff]   ;;  %v2315_v32 = vld [vmem:[%s3418_s3 + $0x1c8] ss:$28 sps:$4 sm:$0xff]   ;;  %s3116_s15 = scalar_lea.vmem %s3417_s2, %s2224_s10 }
  0x1e   : > { %725 = vmatpush1.bf16.msra.mxu0 %v2284_v11  ;;  %798 = vmatpush1.bf16.msra.mxu1 %v2285_v12  ;;  %v2310_v29 = vld [vmem:[%s3418_s3 + $0x1c4] ss:$28 sps:$4 sm:$0xff]   ;;  %v2319_v33 = vld [vmem:[%s3418_s3 + $0x35c] ss:$28 sps:$4 sm:$0xff]   ;;  %v2328_v40 = vld [vmem:[%s3418_s3 + $0x2ec] ss:$28 sps:$4 sm:$0xff]  }
  0x1f   : > { %726 = vmatprep.subr.bf16.mxu0 %v2286_v13  ;;  %799 = vmatprep.subr.bf16.mxu1 %v2288_v14  ;;  %v2314_v31 = vld [vmem:[%s3418_s3 + $0x1c0] ss:$28 sps:$4 sm:$0xff]   ;;  %v2317_v36 = vld [vmem:[%s3418_s3 + $0x358] ss:$28 sps:$4 sm:$0xff]   ;;  %v2324_v38 = vld [vmem:[%s3418_s3 + $0x328] ss:$28 sps:$4 sm:$0xff]  }
  0x20   : > { %v2320_v34 = vld [vmem:[%s3418_s3 + $0x360] ss:$28 sps:$4 sm:$0xff]   ;;  %v2329_v41 = vld [vmem:[%s3418_s3 + $0x2f0] ss:$28 sps:$4 sm:$0xff]   ;;  %v2326_v43 = vld [vmem:[%s3418_s3 + $0x2e8] ss:$28 sps:$4 sm:$0xff]  }
  0x21   : > { %v2697_v35 = vld [vmem:[%s2667_s12] sm:$0xff]   ;;  %v2722_v42 = vld [vmem:[%s2667_s12 + $0x8] sm:$0xff]   ;;  %v2332_v44 = vld [vmem:[%s3418_s3 + $0x2b4] ss:$28 sps:$4 sm:$0xff]   ;;  %s245_s9 = sand.u32 1, %s2488_s19   ;;  %s2225_s25 = smul.u32 7168, %s2553_s22 }
  0x22   : > { %727 = vmatpush1.bf16.msra.mxu0 %v2290_v15  ;;  %800 = vmatpush1.bf16.msra.mxu1 %v2291_v16  ;;  %v2323_v37 = vld [vmem:[%s3418_s3 + $0x324] ss:$28 sps:$4 sm:$0xff]   ;;  %v2333_v45 = vld [vmem:[%s3418_s3 + $0x2b8] ss:$28 sps:$4 sm:$0xff]   ;;  %v2330_v46 = vld [vmem:[%s3418_s3 + $0x2b0] ss:$28 sps:$4 sm:$0xff]  }
  0x23   : > { %728 = vmatprep.subr.bf16.mxu0 %v2292_v17  ;;  %801 = vmatprep.subr.bf16.mxu1 %v2294_v18  ;;  %v2321_v39 = vld [vmem:[%s3418_s3 + $0x320] ss:$28 sps:$4 sm:$0xff]   ;;  %v2747_v49 = vld [vmem:[%s2667_s12 + $0x10] sm:$0xff]   ;;  %v2342_v52 = vld [vmem:[%s3418_s3 + $0x248] ss:$28 sps:$4 sm:$0xff]   ;;  %s3131_s16 = smul.u32 448, %s245_s9  ;;  %s3367_s7 = scalar_lea.hbm %s3420_s5, %s2225_s25 }
  0x24   : > { %v2337_v47 = vld [vmem:[%s3418_s3 + $0x27c] ss:$28 sps:$4 sm:$0xff]   ;;  %v2341_v51 = vld [vmem:[%s3418_s3 + $0x244] ss:$28 sps:$4 sm:$0xff]   ;;  %v2346_v54 = vld [vmem:[%s3418_s3 + $0x20c] ss:$28 sps:$4 sm:$0xff]  }
  0x25   : > { %v2338_v48 = vld [vmem:[%s3418_s3 + $0x280] ss:$28 sps:$4 sm:$0xff]   ;;  %v2335_v50 = vld [vmem:[%s3418_s3 + $0x278] ss:$28 sps:$4 sm:$0xff]   ;;  %v2347_v55 = vld [vmem:[%s3418_s3 + $0x210] ss:$28 sps:$4 sm:$0xff]  }
  0x26   : > { %729 = vmatpush1.bf16.msra.mxu0 %v2296_v19  ;;  %802 = vmatpush1.bf16.msra.mxu1 %v2297_v20  ;;  %v2339_v53 = vld [vmem:[%s3418_s3 + $0x240] ss:$28 sps:$4 sm:$0xff]   ;;  %v2344_v57 = vld [vmem:[%s3418_s3 + $0x208] ss:$28 sps:$4 sm:$0xff]   ;;  %v2350_v58 = vld [vmem:[%s3418_s3 + $0x1d4] ss:$28 sps:$4 sm:$0xff]  }
  0x27   : > { %730 = vmatprep.subr.bf16.mxu0 %v2298_v21  ;;  %803 = vmatprep.subr.bf16.mxu1 %v2300_v22  ;;  %v2772_v56 = vld [vmem:[%s2667_s12 + $0x18] sm:$0xff]   ;;  %v2348_v60 = vld [vmem:[%s3418_s3 + $0x1d0] ss:$28 sps:$4 sm:$0xff]   ;;  %v2352_v63 = vld [vmem:[%s3418_s3 + $0x188] ss:$28 sps:$4 sm:$0xff]   ;;  %s3158_s17 = scalar_lea.vmem [#allocation2], %s3131_s16 }
  0x28   : > { %v2351_v59 = vld [vmem:[%s3418_s3 + $0x1d8] ss:$28 sps:$4 sm:$0xff]   ;;  %v2354_v61 = vld [vmem:[%s3418_s3 + $0x18c] ss:$28 sps:$4 sm:$0xff]   ;;  %v2369_v7 = vld [vmem:[%s3418_s3 + $0x124] ss:$28 sps:$4 sm:$0xff]  }
  0x29   : > { %v2357_v62 = vld [vmem:[%s3418_s3 + $0x194] ss:$28 sps:$4 sm:$0xff]   ;;  %v2363_v3 = vld [vmem:[%s3418_s3 + $0x15c] ss:$28 sps:$4 sm:$0xff]   ;;  %v2372_v10 = vld [vmem:[%s3418_s3 + $0xe4] ss:$28 sps:$4 sm:$0xff]  }
  0x2a   : > { %731 = vmatpush1.bf16.msra.mxu0 %v2302_v23  ;;  %804 = vmatpush1.bf16.msra.mxu1 %v2303_v24  ;;  %v2355_v0 = vld [vmem:[%s3418_s3 + $0x190] ss:$28 sps:$4 sm:$0xff]   ;;  %v2361_v5 = vld [vmem:[%s3418_s3 + $0x158] ss:$28 sps:$4 sm:$0xff]   ;;  %v2367_v9 = vld [vmem:[%s3418_s3 + $0x120] ss:$28 sps:$4 sm:$0xff]  }
  0x2b   : > { %732 = vmatprep.subr.bf16.mxu0 %v2304_v25  ;;  %805 = vmatprep.subr.bf16.mxu1 %v2306_v26  ;;  %v2360_v1 = vld [vmem:[%s3418_s3 + $0x154] ss:$28 sps:$4 sm:$0xff]   ;;  %v2366_v6 = vld [vmem:[%s3418_s3 + $0x11c] ss:$28 sps:$4 sm:$0xff]   ;;  %v2375_v11 = vld [vmem:[%s3418_s3 + $0xec] ss:$28 sps:$4 sm:$0xff]  }
  0x2c   : > { %v2358_v4 = vld [vmem:[%s3418_s3 + $0x150] ss:$28 sps:$4 sm:$0xff]   ;;  %v2364_v8 = vld [vmem:[%s3418_s3 + $0x118] ss:$28 sps:$4 sm:$0xff]   ;;  %v2370_v12 = vld [vmem:[%s3418_s3 + $0xe0] ss:$28 sps:$4 sm:$0xff]  }
  0x2d   : > { %v2373_v13 = vld [vmem:[%s3418_s3 + $0xe8] ss:$28 sps:$4 sm:$0xff]   ;;  %v2381_v15 = vld [vmem:[%s3418_s3 + $0xb4] ss:$28 sps:$4 sm:$0xff]   ;;  %v2387_v19 = vld [vmem:[%s3418_s3 + $0x7c] ss:$28 sps:$4 sm:$0xff]  }
  0x2e   : > { %733 = vmatpush1.bf16.msra.mxu0 %v2308_v27  ;;  %806 = vmatpush1.bf16.msra.mxu1 %v2309_v28  ;;  %v2378_v14 = vld [vmem:[%s3418_s3 + $0xac] ss:$28 sps:$4 sm:$0xff]   ;;  %v2384_v18 = vld [vmem:[%s3418_s3 + $0x74] ss:$28 sps:$4 sm:$0xff]   ;;  %v2390_v22 = vld [vmem:[%s3418_s3 + $0x3c] ss:$28 sps:$4 sm:$0xff]  }
  0x2f   : > { %734 = vmatprep.subr.bf16.mxu0 %v2310_v29  ;;  %807 = vmatprep.subr.bf16.mxu1 %v2312_v30  ;;  %v2376_v16 = vld [vmem:[%s3418_s3 + $0xa8] ss:$28 sps:$4 sm:$0xff]   ;;  %v2379_v17 = vld [vmem:[%s3418_s3 + $0xb0] ss:$28 sps:$4 sm:$0xff]   ;;  %v2385_v21 = vld [vmem:[%s3418_s3 + $0x78] ss:$28 sps:$4 sm:$0xff]  }
  0x30   : > { %v2382_v20 = vld [vmem:[%s3418_s3 + $0x70] ss:$28 sps:$4 sm:$0xff]   ;;  %v2393_v23 = vld [vmem:[%s3418_s3 + $0x44] ss:$28 sps:$4 sm:$0xff]   ;;  %v2388_v24 = vld [vmem:[%s3418_s3 + $0x38] ss:$28 sps:$4 sm:$0xff]  }
  0x31   : > { %v2391_v25 = vld [vmem:[%s3418_s3 + $0x40] ss:$28 sps:$4 sm:$0xff]   ;;  %v2399_v27 = vld [vmem:[%s3418_s3 + $0xc] ss:$28 sps:$4 sm:$0xff]   ;;  %s1931_s30 = sshll.u32 %s3158_s17, 4  ;;  %s3375_s22 = scalar_lea.sflag [#allocation3], %s245_s9  ;;  %s3369_s30 = int_to_ptr.vmem [resolvable:$true] %s1931_s30 }
  0x32   : > { %735 = vmatpush1.bf16.msra.mxu0 %v2314_v31  ;;  %808 = vmatpush1.bf16.msra.mxu1 %v2315_v32  ;;  %v2396_v26 = vld [vmem:[%s3418_s3 + $0x4] ss:$28 sps:$4 sm:$0xff]   ;;  %v2403_v30 = vld [vmem:[%s3418_s3 + $0x19c] ss:$28 sps:$4 sm:$0xff]   ;;  %s2499_s8 = smov [#allocation2]  }
  0x33   : > { %866 = vmatprep.subr.bf16.mxu0 %v2319_v33  ;;  %2175 = vmatprep.subr.bf16.mxu1 %v2320_v34  ;;  %v2394_v28 = vld [vmem:[%s3418_s3] ss:$28 sps:$4 sm:$0xff]   ;;  %v2397_v29 = vld [vmem:[%s3418_s3 + $0x8] ss:$28 sps:$4 sm:$0xff]   ;;  %v2401_v33 = vld [vmem:[%s3418_s3 + $0x198] ss:$28 sps:$4 sm:$0xff]  }
  0x34   : > { %v2404_v31 = vld [vmem:[%s3418_s3 + $0x1a0] ss:$28 sps:$4 sm:$0xff]   ;;  %s2440_s10 = sshll.u32 %s2499_s8, 4  ;;  %s2441_s10 = int_to_ptr.vmem [resolvable:$false] %s2440_s10 }
  0x35   : > { %753 = vmatmul.mubr.bf16.vlgmr.msra.gmra.mxu0 %v2697_v35  ;;  %826 = vmatmul.mubr.bf16.vlgmr.msra.gmra.mxu1 %v2697_v35  ;;  %v2912_v32 = vld [vmem:[%s2807_s26] sm:$0xff]   ;;  %s2442_s23 = scalar_lea.vmem %s2441_s10, 14336  ;;  %p2443_p0 = scmp.lt.s32.totalorder %s3369_s30, %s2441_s10 }
  0x36   : > { %867 = vmatpush1.bf16.msra.mxu0 %v2317_v36  ;;  %2176 = vmatpush3.bf16.msra.mxu1 %v2320_v34  ;;  %v2407_v34 = vld [vmem:[%s3418_s3 + $0x164] ss:$28 sps:$4 sm:$0xff]  }
  0x37   : > { %868 = vmatprep.subr.bf16.mxu0 %v2323_v37  ;;  %2177 = vmatprep.subr.bf16.mxu1 %v2324_v38  ;;  %v2405_v36 = vld [vmem:[%s3418_s3 + $0x160] ss:$28 sps:$4 sm:$0xff]   ;;  %v2412_v37 = vld [vmem:[%s3418_s3 + $0x12c] ss:$28 sps:$4 sm:$0xff]  }
  0x38   : > { %762 = vmatprep.mubr.bf16.mxu0 %v2498_v2  ;;  %835 = vmatprep.mubr.bf16.mxu1 %v2498_v2 }
  0x3a   : > { %869 = vmatpush1.bf16.msra.mxu0 %v2321_v39  ;;  %2178 = vmatpush3.bf16.msra.mxu1 %v2324_v38  ;;  %v2413_v38 = vld [vmem:[%s3418_s3 + $0x130] ss:$28 sps:$4 sm:$0xff]  }
  0x3b   : > { %870 = vmatprep.subr.bf16.mxu0 %v2328_v40  ;;  %2179 = vmatprep.subr.bf16.mxu1 %v2329_v41  ;;  %v2409_v39 = vld [vmem:[%s2807_s26 + $0x8] sm:$0xff]  }
  0x3c   : > { %v2410_v40 = vld [vmem:[%s3418_s3 + $0x128] ss:$28 sps:$4 sm:$0xff]  }
  0x3d   : > { %763 = vmatmul.mubr.bf16.gmra.mxu0 %v2722_v42  ;;  %836 = vmatmul.mubr.bf16.gmra.mxu1 %v2722_v42 }
  0x3e   : > { %871 = vmatpush1.bf16.msra.mxu0 %v2326_v43  ;;  %2180 = vmatpush3.bf16.msra.mxu1 %v2329_v41  ;;  %v2416_v41 = vld [vmem:[%s3418_s3 + $0xf4] ss:$28 sps:$4 sm:$0xff]  }
  0x3f   : > { %872 = vmatprep.subr.bf16.mxu0 %v2332_v44  ;;  %2181 = vmatprep.subr.bf16.mxu1 %v2333_v45  ;;  %v2414_v43 = vld [vmem:[%s3418_s3 + $0xf0] ss:$28 sps:$4 sm:$0xff]   ;;  %v2421_v44 = vld [vmem:[%s3418_s3 + $0xbc] ss:$28 sps:$4 sm:$0xff]  }
  0x40   : > { %772 = vmatprep.mubr.bf16.mxu0 %v2498_v2  ;;  %845 = vmatprep.mubr.bf16.mxu1 %v2498_v2 }
  0x42   : > { %873 = vmatpush1.bf16.msra.mxu0 %v2330_v46  ;;  %2182 = vmatpush3.bf16.msra.mxu1 %v2333_v45  ;;  %v2422_v45 = vld [vmem:[%s3418_s3 + $0xc0] ss:$28 sps:$4 sm:$0xff]   ;;  %v2418_v46 = vld [vmem:[%s2807_s26 + $0x10] sm:$0xff]  }
  0x43   : > { %874 = vmatprep.subr.bf16.mxu0 %v2337_v47  ;;  %2183 = vmatprep.subr.bf16.mxu1 %v2338_v48  ;;  %v2419_v47 = vld [vmem:[%s3418_s3 + $0xb8] ss:$28 sps:$4 sm:$0xff]  }
  0x45   : > { %773 = vmatmul.mubr.bf16.gmra.mxu0 %v2747_v49  ;;  %846 = vmatmul.mubr.bf16.gmra.mxu1 %v2747_v49 }
  0x46   : > { %875 = vmatpush1.bf16.msra.mxu0 %v2335_v50  ;;  %2184 = vmatpush3.bf16.msra.mxu1 %v2338_v48  ;;  %v2425_v48 = vld [vmem:[%s3418_s3 + $0x84] ss:$28 sps:$4 sm:$0xff]  }
  0x47   : > { %876 = vmatprep.subr.bf16.mxu0 %v2341_v51  ;;  %2185 = vmatprep.subr.bf16.mxu1 %v2342_v52  ;;  %v2423_v50 = vld [vmem:[%s3418_s3 + $0x80] ss:$28 sps:$4 sm:$0xff]   ;;  %v2430_v51 = vld [vmem:[%s3418_s3 + $0x4c] ss:$28 sps:$4 sm:$0xff]  }
  0x48   : > { %782 = vmatprep.mubr.bf16.mxu0 %v2498_v2  ;;  %855 = vmatprep.mubr.bf16.mxu1 %v2498_v2 }
  0x4a   : > { %877 = vmatpush1.bf16.msra.mxu0 %v2339_v53  ;;  %2186 = vmatpush3.bf16.msra.mxu1 %v2342_v52  ;;  %v2431_v52 = vld [vmem:[%s3418_s3 + $0x50] ss:$28 sps:$4 sm:$0xff]   ;;  %v2427_v53 = vld [vmem:[%s2807_s26 + $0x18] sm:$0xff]   ;;  %s2436_s26 = scalar_lea.vmem %s3369_s30, 7168 }
  0x4b   : > { %878 = vmatprep.subr.bf16.mxu0 %v2346_v54  ;;  %2187 = vmatprep.subr.bf16.mxu1 %v2347_v55  ;;  %v2428_v54 = vld [vmem:[%s3418_s3 + $0x48] ss:$28 sps:$4 sm:$0xff]   ;;  %p2437_p11 = scmp.ne.s32.totalorder %s3369_s30, %s2436_s26  ;;  %p2444_p1 = scmp.lt.s32.totalorder %s2442_s23, %s2436_s26 }
  0x4d   : > { %783 = vmatmul.mubr.bf16.gmra.mxu0 %v2772_v56  ;;  %856 = vmatmul.mubr.bf16.gmra.mxu1 %v2772_v56  ;;  %p2438_p12 = pnand %p2437_p11, %p2570_p5  ;;  %p2445_p2 = por %p2444_p1, %p2443_p0 }
  0x4e   : > { %879 = vmatpush1.bf16.msra.mxu0 %v2344_v57  ;;  %2188 = vmatpush3.bf16.msra.mxu1 %v2347_v55  ;;  %v2434_v55 = vld [vmem:[%s3418_s3 + $0x14] ss:$28 sps:$4 sm:$0xff]  }
  0x4f   : > { %880 = vmatprep.subr.bf16.mxu0 %v2350_v58  ;;  %2189 = vmatprep.subr.bf16.mxu1 %v2351_v59  ;;  %v2432_v57 = vld [vmem:[%s3418_s3 + $0x10] ss:$28 sps:$4 sm:$0xff]   ;;  %p2439_p13 = pneg %p2438_p12 }
  0x50   : > { %898 = vmatprep.mubr.bf16.mxu0 %v2498_v2  ;;  %2191 = vmatprep.mubr.bf16.mxu1 %v2697_v35 }
  0x51   : > { %p2446_p3 = pnand %p2445_p2, %p2439_p13 }
  0x52   : > { %881 = vmatpush1.bf16.msra.mxu0 %v2348_v60  ;;  %2190 = vmatpush3.bf16.msra.mxu1 %v2351_v59 }
  0x53   : > { %1316 = vmatprep.subr.bf16.mxu0 %v2354_v61  ;;  %1389 = vmatprep.subr.bf16.mxu1 %v2357_v62 }
  0x55   : > { %899 = vmatmul.mubr.bf16.vlgmr.msra.gmra.mxu0 %v2697_v35  ;;  %2192 = vmatmul.mubr.bf16.vlgmr.msra.gmra.mxu1 %v2722_v42  ;;  %v2408_v35 = vld [vmem:[%s3418_s3 + $0x168] ss:$28 sps:$4 sm:$0xff]  }
  0x56   : > { %1317 = vmatpush1.bf16.msra.mxu0 %v2352_v63  ;;  %1390 = vmatpush1.bf16.msra.mxu1 %v2355_v0 }
  0x57   : > { %1318 = vmatprep.subr.bf16.mxu0 %v2360_v1  ;;  %1391 = vmatprep.subr.bf16.mxu1 %v2363_v3 }
  0x58   : > { %908 = vmatprep.mubr.bf16.mxu0 %v2498_v2  ;;  %2195 = vmatprep.mubr.bf16.mxu1 %v2747_v49 }
  0x5a   : > { %1319 = vmatpush1.bf16.msra.mxu0 %v2358_v4  ;;  %1392 = vmatpush1.bf16.msra.mxu1 %v2361_v5 }
  0x5b   : > { %1320 = vmatprep.subr.bf16.mxu0 %v2366_v6  ;;  %1393 = vmatprep.subr.bf16.mxu1 %v2369_v7 }
  0x5d   : > { %909 = vmatmul.mubr.bf16.gmra.mxu0 %v2722_v42  ;;  %2196 = vmatmul.mubr.bf16.gmra.mxu1 %v2772_v56  ;;  %v2417_v42 = vld [vmem:[%s3418_s3 + $0xf8] ss:$28 sps:$4 sm:$0xff]  }
  0x5e   : > { %1321 = vmatpush1.bf16.msra.mxu0 %v2364_v8  ;;  %1394 = vmatpush1.bf16.msra.mxu1 %v2367_v9 }
  0x5f   : > { %1322 = vmatprep.subr.bf16.mxu0 %v2372_v10  ;;  %1395 = vmatprep.subr.bf16.mxu1 %v2375_v11 }
  0x60   : > { %918 = vmatprep.mubr.bf16.mxu0 %v2498_v2  ;;  %1421 = vmatprep.mubr.bf16.mxu1 %v2498_v2 }
  0x62   : > { %1323 = vmatpush1.bf16.msra.mxu0 %v2370_v12  ;;  %1396 = vmatpush1.bf16.msra.mxu1 %v2373_v13 }
  0x63   : > { %1324 = vmatprep.subr.bf16.mxu0 %v2378_v14  ;;  %1397 = vmatprep.subr.bf16.mxu1 %v2381_v15 }
  0x65   : > { %919 = vmatmul.mubr.bf16.gmra.mxu0 %v2747_v49  ;;  %v2426_v49 = vld [vmem:[%s3418_s3 + $0x88] ss:$28 sps:$4 sm:$0xff]  }
  0x66   : > { %1325 = vmatpush1.bf16.msra.mxu0 %v2376_v16  ;;  %1398 = vmatpush1.bf16.msra.mxu1 %v2379_v17 }
  0x67   : > { %1326 = vmatprep.subr.bf16.mxu0 %v2384_v18  ;;  %1399 = vmatprep.subr.bf16.mxu1 %v2387_v19 }
  0x68   : > { %928 = vmatprep.mubr.bf16.mxu0 %v2498_v2 }
  0x6a   : > { %1327 = vmatpush1.bf16.msra.mxu0 %v2382_v20  ;;  %1400 = vmatpush1.bf16.msra.mxu1 %v2385_v21 }
  0x6b   : > { %1328 = vmatprep.subr.bf16.mxu0 %v2390_v22  ;;  %1401 = vmatprep.subr.bf16.mxu1 %v2393_v23 }
  0x6d   : > { %929 = vmatmul.mubr.bf16.gmra.mxu0 %v2772_v56  ;;  %v2435_v56 = vld [vmem:[%s3418_s3 + $0x18] ss:$28 sps:$4 sm:$0xff]  }
  0x6e   : > { %1329 = vmatpush1.bf16.msra.mxu0 %v2388_v24  ;;  %1402 = vmatpush1.bf16.msra.mxu1 %v2391_v25 }
  0x6f   : > { %1330 = vmatprep.subr.bf16.mxu0 %v2396_v26  ;;  %1403 = vmatprep.subr.bf16.mxu1 %v2399_v27 }
  0x70   : > { %1348 = vmatprep.mubr.bf16.mxu0 %v2498_v2 }
  0x72   : > { %1331 = vmatpush1.bf16.msra.mxu0 %v2394_v28  ;;  %1404 = vmatpush1.bf16.msra.mxu1 %v2397_v29 }
  0x73   : > { %1462 = vmatprep.subr.bf16.mxu0 %v2403_v30  ;;  %2199 = vmatprep.subr.bf16.mxu1 %v2404_v31 }
  0x75   : > { %1349 = vmatmul.mubr.bf16.vlgmr.msra.gmra.mxu0 %v2912_v32  ;;  %1422 = vmatmul.mubr.bf16.vlgmr.msra.gmra.mxu1 %v2912_v32 }
  0x76   : > { %1463 = vmatpush1.bf16.msra.mxu0 %v2401_v33  ;;  %2200 = vmatpush3.bf16.msra.mxu1 %v2404_v31 }
  0x77   : > { %1464 = vmatprep.subr.bf16.mxu0 %v2407_v34  ;;  %2201 = vmatprep.subr.bf16.mxu1 %v2408_v35 }
  0x78   : > { %1358 = vmatprep.mubr.bf16.mxu0 %v2498_v2  ;;  %1431 = vmatprep.mubr.bf16.mxu1 %v2498_v2 }
  0x7a   : > { %1465 = vmatpush1.bf16.msra.mxu0 %v2405_v36  ;;  %2202 = vmatpush3.bf16.msra.mxu1 %v2408_v35 }
  0x7b   : > { %1466 = vmatprep.subr.bf16.mxu0 %v2412_v37  ;;  %2203 = vmatprep.subr.bf16.mxu1 %v2413_v38 }
  0x7d   : > { %1359 = vmatmul.mubr.bf16.gmra.mxu0 %v2409_v39  ;;  %1432 = vmatmul.mubr.bf16.gmra.mxu1 %v2409_v39 }
  0x7e   : > { %1467 = vmatpush1.bf16.msra.mxu0 %v2410_v40  ;;  %2204 = vmatpush3.bf16.msra.mxu1 %v2413_v38 }
  0x7f   : > { %1468 = vmatprep.subr.bf16.mxu0 %v2416_v41  ;;  %2205 = vmatprep.subr.bf16.mxu1 %v2417_v42  ;;  %v1602_v41 = vlaneseq }
  0x80   : > { %1368 = vmatprep.mubr.bf16.mxu0 %v2498_v2  ;;  %1441 = vmatprep.mubr.bf16.mxu1 %v2498_v2 }
  0x82   : > { %1469 = vmatpush1.bf16.msra.mxu0 %v2414_v43  ;;  %2206 = vmatpush3.bf16.msra.mxu1 %v2417_v42 }
  0x83   : > { %1470 = vmatprep.subr.bf16.mxu0 %v2421_v44  ;;  %2207 = vmatprep.subr.bf16.mxu1 %v2422_v45 }
  0x85   : > { %1369 = vmatmul.mubr.bf16.gmra.mxu0 %v2418_v46  ;;  %1442 = vmatmul.mubr.bf16.gmra.mxu1 %v2418_v46 }
  0x86   : > { %1471 = vmatpush1.bf16.msra.mxu0 %v2419_v47  ;;  %2208 = vmatpush3.bf16.msra.mxu1 %v2422_v45  ;;  %v1603_v45 = vshrl.u32 %v1602_v41, 7 }
  0x87   : > { %1472 = vmatprep.subr.bf16.mxu0 %v2425_v48  ;;  %2209 = vmatprep.subr.bf16.mxu1 %v2426_v49 }
  0x88   : > { %1378 = vmatprep.mubr.bf16.mxu0 %v2498_v2  ;;  %1451 = vmatprep.mubr.bf16.mxu1 %v2498_v2 }
  0x8a   : > { %1473 = vmatpush1.bf16.msra.mxu0 %v2423_v50  ;;  %2210 = vmatpush3.bf16.msra.mxu1 %v2426_v49  ;;  %v1604_v49 = vsub.s32 0, %v1603_v45  ;;  %v1612_v50 = vsub.s32 2, %v1603_v45 }
  0x8b   : > { %1474 = vmatprep.subr.bf16.mxu0 %v2430_v51  ;;  %2211 = vmatprep.subr.bf16.mxu1 %v2431_v52 }
  0x8d   : > { %1379 = vmatmul.mubr.bf16.gmra.mxu0 %v2427_v53  ;;  %1452 = vmatmul.mubr.bf16.gmra.mxu1 %v2427_v53 }
  0x8e   : > { %1475 = vmatpush1.bf16.msra.mxu0 %v2428_v54  ;;  %2212 = vmatpush3.bf16.msra.mxu1 %v2431_v52  ;;  %v1608_v54 = vsub.s32 1, %v1603_v45 }
  0x8f   : > { %1476 = vmatprep.subr.bf16.mxu0 %v2434_v55  ;;  %2213 = vmatprep.subr.bf16.mxu1 %v2435_v56  ;;  %v1616_v55 = vsub.s32 3, %v1603_v45 }
  0x90   : > { %1494 = vmatprep.mubr.bf16.mxu0 %v2498_v2  ;;  %2215 = vmatprep.mubr.bf16.mxu1 %v2912_v32 }
  0x92   : > { %1477 = vmatpush1.bf16.msra.mxu0 %v2432_v57  ;;  %2214 = vmatpush3.bf16.msra.mxu1 %v2435_v56 }
  0x95   : > { %1495 = vmatmul.mubr.bf16.vlgmr.msra.gmra.mxu0 %v2912_v32  ;;  %2216 = vmatmul.mubr.bf16.vlgmr.msra.gmra.mxu1 %v2409_v39 }
  0x96   : > { %1504 = vmatprep.mubr.bf16.mxu0 %v2498_v2  ;;  %2219 = vmatprep.mubr.bf16.mxu1 %v2418_v46 }
  0x9d   : > { %1505 = vmatmul.mubr.bf16.gmra.mxu0 %v2409_v39  ;;  %2220 = vmatmul.mubr.bf16.gmra.mxu1 %v2427_v53 }
  0x9e   : > { %1514 = vmatprep.mubr.bf16.mxu0 %v2498_v2 }
  0xa5   : > { %1515 = vmatmul.mubr.bf16.gmra.mxu0 %v2418_v46 }
  0xa6   : > { %1524 = vmatprep.mubr.bf16.mxu0 %v2498_v2 }
  0xad   : > { %1525 = vmatmul.mubr.bf16.gmra.mxu0 %v2427_v53  ;;  %v1600_v53 = vld [vmem:[%s3419_s4] sm:$0xff] }
  0xae   : > { %v3119_v57 = vrot.slane %v1600_v53, %v1604_v49  ;;  %v3121_v41 = vrot.slane %v1600_v53, %v1612_v50  ;;  %v1693_v49 = vld [vmem:[%s3116_s15] sm:$0xff] }
  0xf5   : > { %v2997_v58 = vpop.f32.mrf.mxu0  ;;  %v2999_v59 = vpop.f32.mrf.mxu1 }
  0xf7   : > { %v3001_v60 = vpop.f32.mrf.mxu0  ;;  %v3003_v61 = vpop.f32.mrf.mxu1 }
  0xf9   : > { %v3005_v62 = vpop.f32.mrf.mxu0  ;;  %v3007_v63 = vpop.f32.mrf.mxu1 }
  0xfb   : > { %v3009_v0 = vpop.f32.mrf.mxu0  ;;  %v3011_v1 = vpop.f32.mrf.mxu1 }
  0xfd   : > { %v3013_v3 = vpop.f32.mrf.mxu0  ;;  %v3015_v2 = vpop.f32.mrf.mxu1 }
  0xff   : > { %v3017_v4 = vpop.f32.mrf.mxu0  ;;  %v3019_v5 = vpop.f32.mrf.mxu1 }
 0x101   : > { %v3021_v6 = vpop.f32.mrf.mxu0  ;;  %v3023_v7 = vpop.f32.mrf.mxu1 }
 0x103   : > { %v3025_v8 = vpop.f32.mrf.mxu0  ;;  %v3027_v9 = vpop.f32.mrf.mxu1 }
 0x105   : > { %v3029_v10 = vpop.f32.mrf.mxu0  ;;  %v3031_v11 = vpop.f32.mrf.mxu1 }
 0x107   : > { %v3033_v12 = vpop.f32.mrf.mxu0  ;;  %v3035_v13 = vpop.f32.mrf.mxu1 }
 0x109   : > { %v3037_v14 = vpop.f32.mrf.mxu0  ;;  %v3039_v15 = vpop.f32.mrf.mxu1 }
 0x10b   : > { %v3041_v16 = vpop.f32.mrf.mxu0  ;;  %v3043_v17 = vpop.f32.mrf.mxu1 }
 0x10d   : > { %v3045_v18 = vpop.f32.mrf.mxu0  ;;  %v3047_v19 = vpop.f32.mrf.mxu1 }
 0x10f   : > { %v3049_v20 = vpop.f32.mrf.mxu0  ;;  %v3051_v21 = vpop.f32.mrf.mxu1 }
 0x111   : > { %v3053_v22 = vpop.f32.mrf.mxu0  ;;  %v3055_v23 = vpop.f32.mrf.mxu1 }
 0x113   : > { %v3057_v24 = vpop.f32.mrf.mxu0  ;;  %v3059_v25 = vpop.f32.mrf.mxu1 }
 0x115   : > { %v3061_v26 = vpop.f32.mrf.mxu0  ;;  %v3065_v28 = vpop.f32.mrf.mxu1 }
 0x117   : > { %v3063_v27 = vpop.f32.mrf.mxu0  ;;  %v3071_v31 = vpop.f32.mrf.mxu1 }
 0x119   : > { %v3067_v29 = vpop.f32.mrf.mxu0  ;;  %v3077_v34 = vpop.f32.mrf.mxu1 }
 0x11b   : > { %v3069_v30 = vpop.f32.mrf.mxu0  ;;  %v3083_v37 = vpop.f32.mrf.mxu1 }
 0x11c   : > { %3423 = vst [vmem:[#allocation5_spill] sm:$0xff] %v3069_v30  ;;  %3428 = vst [vmem:[#allocation10_spill] sm:$0xff] %v3083_v37 }
 0x11d   : > { %v3073_v32 = vpop.f32.mrf.mxu0  ;;  %v3087_v39 = vpop.f32.mrf.mxu1 }
 0x11e   : > { %3424 = vst [vmem:[#allocation6_spill] sm:$0xff] %v3073_v32  ;;  %3430 = vst [vmem:[#allocation12_spill] sm:$0xff] %v3087_v39 }
 0x11f   : > { %v3075_v33 = vpop.f32.mrf.mxu0  ;;  %v3093_v43 = vpop.f32.mrf.mxu1 }
 0x120   : > { %3425 = vst [vmem:[#allocation7_spill] sm:$0xff] %v3075_v33  ;;  %3433 = vst [vmem:[#allocation15_spill] sm:$0xff] %v3093_v43 }
 0x121   : > { %v3079_v35 = vpop.f32.mrf.mxu0  ;;  %v3099_v47 = vpop.f32.mrf.mxu1 }
 0x122   : > { %3426 = vst [vmem:[#allocation8_spill] sm:$0xff] %v3079_v35  ;;  %3436 = vst [vmem:[#allocation18_spill] sm:$0xff] %v3099_v47  ;;  %v1624_v47 = vsub.s32 5, %v1603_v45 }
 0x123   : > { %v3081_v36 = vpop.f32.mrf.mxu0  ;;  %v3106_v52 = vpop.f32.mrf.mxu1 }
 0x124   : > { %3427 = vst [vmem:[#allocation9_spill] sm:$0xff] %v3081_v36  ;;  %3439 = vst [vmem:[#allocation21_spill] sm:$0xff] %v3106_v52  ;;  %v1628_v36 = vsub.s32 6, %v1603_v45  ;;  %v3149_v37 = vrot.slane %v1600_v53, %v1624_v47 }
 0x125   : > { %v3085_v38 = vpop.f32.mrf.mxu0 }
 0x126   : > { %3429 = vst [vmem:[#allocation11_spill] sm:$0xff] %v3085_v38  ;;  %v1695_v38 = vld [vmem:[%s3116_s15 + $0x10] sm:$0xff] }
 0x127   : > { %v3089_v40 = vpop.f32.mrf.mxu0 }
 0x128   : > { %3431 = vst [vmem:[#allocation13_spill] sm:$0xff] %v3089_v40  ;;  %v3127_v40 = vrot.slane %v1600_v53, %v1616_v55 }
 0x129   : > { %v3091_v42 = vpop.f32.mrf.mxu0 }
 0x12a   : > { %3432 = vst [vmem:[#allocation14_spill] sm:$0xff] %v3091_v42  ;;  %v3125_v42 = vrot.slane %v1600_v53, %v1608_v54  ;;  %v1696_v54 = vld [vmem:[%s3116_s15 + $0x18] sm:$0xff] }
 0x12b   : > { %v3095_v44 = vpop.f32.mrf.mxu0 }
 0x12c   : > { %3434 = vst [vmem:[#allocation16_spill] sm:$0xff] %v3095_v44 }
 0x12d   : > { %v3097_v46 = vpop.f32.mrf.mxu0 }
 0x12e   : > { %3435 = vst [vmem:[#allocation17_spill] sm:$0xff] %v3097_v46  ;;  %v1620_v46 = vsub.s32 4, %v1603_v45 }
 0x12f   : > { %v3101_v48 = vpop.f32.mrf.mxu0 }
 0x130   : > { %3437 = vst [vmem:[#allocation19_spill] sm:$0xff] %v3101_v48  ;;  %v3141_v33 = vrot.slane %v1600_v53, %v1620_v46 }
 0x131   : > { %v3104_v51 = vpop.f32.mrf.mxu0 }
 0x132   : > { %3438 = vst [vmem:[#allocation20_spill] sm:$0xff] %v3104_v51 }
 0x133   : > { %v3111_v56 = vpop.f32.mrf.mxu0 }
 0x134   : > { %3440 = vst [vmem:[#allocation22_spill] sm:$0xff] %v3111_v56 }
 0x135   : > { %v1350_v51 = vpop.f32.mrf.mxu0  ;;  %v1423_v48 = vpop.f32.mrf.mxu1 }
 0x136   : > { %v1351_v44 = vadd.f32 %v1350_v51, %v2997_v58  ;;  %v1424_v56 = vadd.f32 %v1423_v48, %v2999_v59  ;;  %v1694_v48 = vld [vmem:[%s3116_s15 + $0x8] sm:$0xff] }
 0x137   : > { %v1352_v50 = vpop.f32.mrf.mxu0  ;;  %v1425_v52 = vpop.f32.mrf.mxu1 }
 0x138   : > { %v1637_v35 = vadd.f32 %v3119_v57, %v1351_v44  ;;  %v1639_v58 = vadd.f32 %v3121_v41, %v1424_v56  ;;  %v1353_v51 = vadd.f32 %v1352_v50, %v3001_v60  ;;  %v1426_v59 = vadd.f32 %v1425_v52, %v3003_v61 }
 0x139   : > { %v1354_v55 = vpop.f32.mrf.mxu0  ;;  %v1427_v43 = vpop.f32.mrf.mxu1  ;;  %v3147_v52 = vrot.slane %v1600_v53, %v1628_v36  ;;  %v1701_v53 = vld [vmem:[%s3116_s15 + $0x40] sm:$0xff] }
 0x13a   : > { %v1749_v39 = vadd.f32 %v1693_v49, %v1637_v35  ;;  %v1751_v32 = vadd.f32 %v1695_v38, %v1639_v58  ;;  %v1638_v45 = vadd.f32 %v3125_v42, %v1353_v51  ;;  %v1640_v44 = vadd.f32 %v3127_v40, %v1426_v59  ;;  %v1700_v49 = vld [vmem:[%s3116_s15 + $0x38] sm:$0xff]  ;;  %v1702_v58 = vld [vmem:[%s3116_s15 + $0x48] sm:$0xff]  ;;  %v1703_v59 = vld [vmem:[%s3116_s15 + $0x50] sm:$0xff] }
 0x13b   : > { %v1355_v56 = vadd.f32 %v1354_v55, %v3005_v62  ;;  %v1428_v60 = vadd.f32 %v1427_v43, %v3007_v63  ;;  %v1356_v50 = vpop.f32.mrf.mxu0  ;;  %v1429_v61 = vpop.f32.mrf.mxu1 }
 0x13c   : > { %v1805_v46 = vmax.f32 %v1749_v39, 0.0  ;;  %v1807_v30 = vmax.f32 %v1751_v32, 0.0  ;;  %v1750_v35 = vadd.f32 %v1694_v48, %v1638_v45  ;;  %v1752_v38 = vadd.f32 %v1696_v54, %v1640_v44  ;;  %v1707_v44 = vld [vmem:[%s3116_s15 + $0x70] sm:$0xff] }
 0x13d   : > { %v1644_v51 = vadd.f32 %v3119_v57, %v1355_v56  ;;  %v1646_v62 = vadd.f32 %v3121_v41, %v1428_v60  ;;  %v1357_v63 = vadd.f32 %v1356_v50, %v3009_v0  ;;  %v1430_v43 = vadd.f32 %v1429_v61, %v3011_v1  ;;  %v1360_v36 = vpop.f32.mrf.mxu0  ;;  %v1433_v47 = vpop.f32.mrf.mxu1  ;;  %v1709_v56 = vld [vmem:[%s3116_s15 + $0x80] sm:$0xff] }
 0x13e   : > { %1861 = vst [vmem:[%s3158_s17] sm:$0xff] %v1805_v46  ;;  %1863 = vst [vmem:[%s3158_s17 + $0x10] sm:$0xff] %v1807_v30  ;;  %v1806_v32 = vmax.f32 %v1750_v35, 0.0  ;;  %v1808_v39 = vmax.f32 %v1752_v38, 0.0  ;;  %v1361_v0 = vadd.f32 %v1360_v36, %v3013_v3  ;;  %v1434_v1 = vadd.f32 %v1433_v47, %v3015_v2 }
 0x13f   : > { %v1756_v48 = vadd.f32 %v1700_v49, %v1644_v51  ;;  %v1758_v54 = vadd.f32 %v1702_v58, %v1646_v62  ;;  %v1645_v55 = vadd.f32 %v3125_v42, %v1357_v63  ;;  %v1647_v45 = vadd.f32 %v3127_v40, %v1430_v43  ;;  %v1362_v30 = vpop.f32.mrf.mxu0  ;;  %v1435_v60 = vpop.f32.mrf.mxu1  ;;  %v1708_v58 = vld [vmem:[%s3116_s15 + $0x78] sm:$0xff]  ;;  %v1710_v51 = vld [vmem:[%s3116_s15 + $0x88] sm:$0xff] }
 0x140   : > { %1862 = vst [vmem:[%s3158_s17 + $0x8] sm:$0xff] %v1806_v32  ;;  %1864 = vst [vmem:[%s3158_s17 + $0x18] sm:$0xff] %v1808_v39  ;;  %v1651_v50 = vadd.f32 %v3119_v57, %v1361_v0  ;;  %v1653_v3 = vadd.f32 %v3121_v41, %v1434_v1  ;;  %v1363_v2 = vadd.f32 %v1362_v30, %v3017_v4 }
 0x141   : > { %v1436_v61 = vadd.f32 %v1435_v60, %v3019_v5  ;;  %v1812_v46 = vmax.f32 %v1756_v48, 0.0  ;;  %v1814_v35 = vmax.f32 %v1758_v54, 0.0  ;;  %v1757_v38 = vadd.f32 %v1701_v53, %v1645_v55  ;;  %v1364_v62 = vpop.f32.mrf.mxu0  ;;  %v1437_v63 = vpop.f32.mrf.mxu1 }
 0x142   : > { %v1759_v49 = vadd.f32 %v1703_v59, %v1647_v45  ;;  %v1763_v43 = vadd.f32 %v1707_v44, %v1651_v50  ;;  %v1765_v36 = vadd.f32 %v1709_v56, %v1653_v3  ;;  %v1652_v47 = vadd.f32 %v3125_v42, %v1363_v2  ;;  %v1714_v45 = vld [vmem:[%s3116_s15 + $0xa8] sm:$0xff]  ;;  %v1716_v44 = vld [vmem:[%s3116_s15 + $0xb8] sm:$0xff] }
 0x143   : > { %v1654_v32 = vadd.f32 %v3127_v40, %v1436_v61  ;;  %1868 = vst [vmem:[%s3158_s17 + $0x38] sm:$0xff] %v1812_v46  ;;  %1870 = vst [vmem:[%s3158_s17 + $0x48] sm:$0xff] %v1814_v35  ;;  %v1813_v4 = vmax.f32 %v1757_v38, 0.0  ;;  %v1365_v39 = vadd.f32 %v1364_v62, %v3021_v6  ;;  %v1438_v53 = vadd.f32 %v1437_v63, %v3023_v7  ;;  %v1366_v59 = vpop.f32.mrf.mxu0  ;;  %v1439_v0 = vpop.f32.mrf.mxu1  ;;  %v1715_v61 = vld [vmem:[%s3116_s15 + $0xb0] sm:$0xff]  ;;  %v1717_v46 = vld [vmem:[%s3116_s15 + $0xc0] sm:$0xff] }
 0x144   : > { %v1815_v5 = vmax.f32 %v1759_v49, 0.0  ;;  %v1819_v1 = vmax.f32 %v1763_v43, 0.0  ;;  %v1821_v48 = vmax.f32 %v1765_v36, 0.0  ;;  %v1764_v54 = vadd.f32 %v1708_v58, %v1652_v47  ;;  %v1723_v62 = vld [vmem:[%s3116_s15 + $0xf0] sm:$0xff] }
 0x145   : > { %v1766_v55 = vadd.f32 %v1710_v51, %v1654_v32  ;;  %1869 = vst [vmem:[%s3158_s17 + $0x40] sm:$0xff] %v1813_v4  ;;  %v1658_v56 = vadd.f32 %v3119_v57, %v1365_v39  ;;  %v1660_v6 = vadd.f32 %v3121_v41, %v1438_v53  ;;  %v1367_v7 = vadd.f32 %v1366_v59, %v3025_v8  ;;  %v1370_v60 = vpop.f32.mrf.mxu0  ;;  %v1443_v50 = vpop.f32.mrf.mxu1  ;;  %v1721_v51 = vld [vmem:[%s3116_s15 + $0xe0] sm:$0xff]  ;;  %v1722_v53 = vld [vmem:[%s3116_s15 + $0xe8] sm:$0xff]  ;;  %v1724_v59 = vld [vmem:[%s3116_s15 + $0xf8] sm:$0xff] }
 0x146   : > { %1871 = vst [vmem:[%s3158_s17 + $0x50] sm:$0xff] %v1815_v5  ;;  %v1440_v30 = vadd.f32 %v1439_v0, %v3027_v9  ;;  %1875 = vst [vmem:[%s3158_s17 + $0x70] sm:$0xff] %v1819_v1  ;;  %v1820_v3 = vmax.f32 %v1764_v54, 0.0  ;;  %v1371_v35 = vadd.f32 %v1370_v60, %v3029_v10  ;;  %v1444_v38 = vadd.f32 %v1443_v50, %v3031_v11 }
 0x147   : > { %1877 = vst [vmem:[%s3158_s17 + $0x80] sm:$0xff] %v1821_v48  ;;  %v1822_v2 = vmax.f32 %v1766_v55, 0.0  ;;  %v1770_v49 = vadd.f32 %v1714_v45, %v1658_v56  ;;  %v1772_v8 = vadd.f32 %v1716_v44, %v1660_v6  ;;  %v1659_v58 = vadd.f32 %v3125_v42, %v1367_v7  ;;  %v1372_v63 = vpop.f32.mrf.mxu0  ;;  %v1445_v43 = vpop.f32.mrf.mxu1 }
 0x148   : > { %v1661_v9 = vadd.f32 %v3127_v40, %v1440_v30  ;;  %1876 = vst [vmem:[%s3158_s17 + $0x78] sm:$0xff] %v1820_v3  ;;  %v1665_v36 = vadd.f32 %v3119_v57, %v1371_v35  ;;  %v1667_v10 = vadd.f32 %v3121_v41, %v1444_v38  ;;  %v1373_v11 = vadd.f32 %v1372_v63, %v3033_v12 }
 0x149   : > { %1878 = vst [vmem:[%s3158_s17 + $0x88] sm:$0xff] %v1822_v2  ;;  %v1446_v47 = vadd.f32 %v1445_v43, %v3035_v13  ;;  %v1826_v32 = vmax.f32 %v1770_v49, 0.0  ;;  %v1828_v4 = vmax.f32 %v1772_v8, 0.0  ;;  %v1771_v5 = vadd.f32 %v1715_v61, %v1659_v58  ;;  %v1374_v0 = vpop.f32.mrf.mxu0  ;;  %v1447_v1 = vpop.f32.mrf.mxu1  ;;  %v1728_v2 = vld [vmem:[%s3116_s15 + $0x118] sm:$0xff]  ;;  %v1730_v61 = vld [vmem:[%s3116_s15 + $0x128] sm:$0xff] }
 0x14a   : > { %v1773_v39 = vadd.f32 %v1717_v46, %v1661_v9  ;;  %v1777_v48 = vadd.f32 %v1721_v51, %v1665_v36  ;;  %v1779_v54 = vadd.f32 %v1723_v62, %v1667_v10  ;;  %v1666_v55 = vadd.f32 %v3125_v42, %v1373_v11  ;;  %v1729_v9 = vld [vmem:[%s3116_s15 + $0x120] sm:$0xff]  ;;  %v1731_v51 = vld [vmem:[%s3116_s15 + $0x130] sm:$0xff] }
 0x14b   : > { %v1668_v45 = vadd.f32 %v3127_v40, %v1446_v47  ;;  %1882 = vst [vmem:[%s3158_s17 + $0xa8] sm:$0xff] %v1826_v32  ;;  %1884 = vst [vmem:[%s3158_s17 + $0xb8] sm:$0xff] %v1828_v4  ;;  %v1827_v12 = vmax.f32 %v1771_v5, 0.0  ;;  %v1375_v44 = vadd.f32 %v1374_v0, %v3037_v14  ;;  %v1448_v56 = vadd.f32 %v1447_v1, %v3039_v15  ;;  %v1376_v6 = vpop.f32.mrf.mxu0  ;;  %v1449_v7 = vpop.f32.mrf.mxu1  ;;  %v1735_v10 = vld [vmem:[%s3116_s15 + $0x150] sm:$0xff]  ;;  %v1737_v11 = vld [vmem:[%s3116_s15 + $0x160] sm:$0xff] }
 0x14c   : > { %v1829_v13 = vmax.f32 %v1773_v39, 0.0  ;;  %v1833_v30 = vmax.f32 %v1777_v48, 0.0  ;;  %v1835_v60 = vmax.f32 %v1779_v54, 0.0  ;;  %v1778_v50 = vadd.f32 %v1722_v53, %v1666_v55  ;;  %v1736_v1 = vld [vmem:[%s3116_s15 + $0x158] sm:$0xff]  ;;  %v1738_v48 = vld [vmem:[%s3116_s15 + $0x168] sm:$0xff] }
 0x14d   : > { %v1780_v3 = vadd.f32 %v1724_v59, %v1668_v45  ;;  %1883 = vst [vmem:[%s3158_s17 + $0xb0] sm:$0xff] %v1827_v12  ;;  %v1672_v46 = vadd.f32 %v3119_v57, %v1375_v44  ;;  %v1674_v14 = vadd.f32 %v3121_v41, %v1448_v56  ;;  %v1377_v15 = vadd.f32 %v1376_v6, %v3041_v16  ;;  %v1380_v38 = vpop.f32.mrf.mxu0  ;;  %v1453_v49 = vpop.f32.mrf.mxu1 }
 0x14e   : > { %1885 = vst [vmem:[%s3158_s17 + $0xc0] sm:$0xff] %v1829_v13  ;;  %v1450_v35 = vadd.f32 %v1449_v7, %v3043_v17  ;;  %1889 = vst [vmem:[%s3158_s17 + $0xe0] sm:$0xff] %v1833_v30  ;;  %v1834_v8 = vmax.f32 %v1778_v50, 0.0  ;;  %v1381_v62 = vadd.f32 %v1380_v38, %v3045_v18  ;;  %v1454_v63 = vadd.f32 %v1453_v49, %v3047_v19 }
 0x14f   : > { %1891 = vst [vmem:[%s3158_s17 + $0xf0] sm:$0xff] %v1835_v60  ;;  %v1836_v58 = vmax.f32 %v1780_v3, 0.0  ;;  %v1784_v43 = vadd.f32 %v1728_v2, %v1672_v46  ;;  %v1786_v16 = vadd.f32 %v1730_v61, %v1674_v14  ;;  %v1673_v36 = vadd.f32 %v3125_v42, %v1377_v15  ;;  %v1382_v47 = vpop.f32.mrf.mxu0  ;;  %v1455_v32 = vpop.f32.mrf.mxu1  ;;  %v1742_v61 = vld [vmem:[%s3116_s15 + $0x188] sm:$0xff]  ;;  %v1744_v46 = vld [vmem:[%s3116_s15 + $0x198] sm:$0xff] }
 0x150   : > { %v1675_v17 = vadd.f32 %v3127_v40, %v1450_v35  ;;  %1890 = vst [vmem:[%s3158_s17 + $0xe8] sm:$0xff] %v1834_v8  ;;  %v1679_v4 = vadd.f32 %v3119_v57, %v1381_v62  ;;  %v1681_v18 = vadd.f32 %v3121_v41, %v1454_v63  ;;  %v1383_v19 = vadd.f32 %v1382_v47, %v3049_v20  ;;  %v1697_v63 = vld [vmem:[%s3116_s15 + $0x20] sm:$0xff] }
 0x151   : > { %1892 = vst [vmem:[%s3158_s17 + $0xf8] sm:$0xff] %v1836_v58  ;;  %v1456_v5 = vadd.f32 %v1455_v32, %v3051_v21  ;;  %v1840_v39 = vmax.f32 %v1784_v43, 0.0  ;;  %v1842_v53 = vmax.f32 %v1786_v16, 0.0  ;;  %v1785_v59 = vadd.f32 %v1729_v9, %v1673_v36  ;;  %v1384_v54 = vpop.f32.mrf.mxu0  ;;  %v1457_v55 = vpop.f32.mrf.mxu1  ;;  %v1743_v58 = vld [vmem:[%s3116_s15 + $0x190] sm:$0xff]  ;;  %v1745_v9 = vld [vmem:[%s3116_s15 + $0x1a0] sm:$0xff]  ;;  %v1698_v32 = vld [vmem:[%s3116_s15 + $0x28] sm:$0xff] }
 0x152   : > { %v1787_v0 = vadd.f32 %v1731_v51, %v1675_v17  ;;  %v1791_v45 = vadd.f32 %v1735_v10, %v1679_v4  ;;  %v1793_v12 = vadd.f32 %v1737_v11, %v1681_v18  ;;  %v1680_v13 = vadd.f32 %v3125_v42, %v1383_v19  ;;  %v1713_v43 = vld [vmem:[%s3116_s15 + $0xa0] sm:$0xff]  ;;  %v1699_v4 = vld [vmem:[%s3116_s15 + $0x30] sm:$0xff] }
 0x153   : > { %v1682_v44 = vadd.f32 %v3127_v40, %v1456_v5  ;;  %1896 = vst [vmem:[%s3158_s17 + $0x118] sm:$0xff] %v1840_v39  ;;  %1898 = vst [vmem:[%s3158_s17 + $0x128] sm:$0xff] %v1842_v53  ;;  %v1841_v20 = vmax.f32 %v1785_v59, 0.0  ;;  %v1385_v56 = vadd.f32 %v1384_v54, %v3053_v22  ;;  %v1458_v6 = vadd.f32 %v1457_v55, %v3055_v23  ;;  %v1386_v7 = vpop.f32.mrf.mxu0  ;;  %v1459_v30 = vpop.f32.mrf.mxu1 }
 0x154   : > { %v1843_v21 = vmax.f32 %v1787_v0, 0.0  ;;  %v1847_v60 = vmax.f32 %v1791_v45, 0.0  ;;  %v1849_v50 = vmax.f32 %v1793_v12, 0.0  ;;  %v1792_v3 = vadd.f32 %v1736_v1, %v1680_v13 }
 0x155   : > { %v1794_v2 = vadd.f32 %v1738_v48, %v1682_v44  ;;  %1897 = vst [vmem:[%s3158_s17 + $0x120] sm:$0xff] %v1841_v20  ;;  %v1686_v14 = vadd.f32 %v3119_v57, %v1385_v56  ;;  %v1688_v22 = vadd.f32 %v3121_v41, %v1458_v6  ;;  %v1387_v23 = vadd.f32 %v1386_v7, %v3057_v24  ;;  %v1496_v35 = vpop.f32.mrf.mxu0  ;;  %v2217_v38 = vpop.f32.mrf.mxu1  ;;  %v1704_v44 = vld [vmem:[%s3116_s15 + $0x58] sm:$0xff]  ;;  %v3441_v56 = vld [vmem:[#allocation5_spill] sm:$0xff]  ;;  %v3442_v6 = vld [vmem:[#allocation10_spill] sm:$0xff] }
 0x156   : > { %1899 = vst [vmem:[%s3158_s17 + $0x130] sm:$0xff] %v1843_v21  ;;  %v1460_v15 = vadd.f32 %v1459_v30, %v3059_v25  ;;  %1903 = vst [vmem:[%s3158_s17 + $0x150] sm:$0xff] %v1847_v60  ;;  %v1848_v49 = vmax.f32 %v1792_v3, 0.0  ;;  %v1497_v57 = vadd.f32 %v1496_v35, %v3061_v26  ;;  %v1578_v41 = vadd.f32 %v2217_v38, %v3065_v28  ;;  %v1720_v20 = vld [vmem:[%s3116_s15 + $0xd8] sm:$0xff] }
 0x157   : > { %1905 = vst [vmem:[%s3158_s17 + $0x160] sm:$0xff] %v1849_v50  ;;  %v1850_v8 = vmax.f32 %v1794_v2, 0.0  ;;  %v1798_v51 = vadd.f32 %v1742_v61, %v1686_v14  ;;  %v1800_v24 = vadd.f32 %v1744_v46, %v1688_v22  ;;  %v1687_v62 = vadd.f32 %v3125_v42, %v1387_v23  ;;  %v1498_v16 = vpop.f32.mrf.mxu0  ;;  %v1569_v36 = vpop.f32.mrf.mxu1  ;;  %v1705_v2 = vld [vmem:[%s3116_s15 + $0x60] sm:$0xff]  ;;  %v1706_v61 = vld [vmem:[%s3116_s15 + $0x68] sm:$0xff]  ;;  %v3444_v22 = vld [vmem:[#allocation12_spill] sm:$0xff] }
 0x158   : > { %v1689_v25 = vadd.f32 %v3127_v40, %v1460_v15  ;;  %1904 = vst [vmem:[%s3158_s17 + $0x158] sm:$0xff] %v1848_v49  ;;  %v1641_v17 = vadd.f32 %v3141_v33, %v1497_v57  ;;  %v1657_v26 = vadd.f32 %v3147_v52, %v1578_v41  ;;  %v1499_v28 = vadd.f32 %v1498_v16, %v3063_v27  ;;  %v3443_v46 = vld [vmem:[#allocation6_spill] sm:$0xff] }
 0x159   : > { %1906 = vst [vmem:[%s3158_s17 + $0x168] sm:$0xff] %v1850_v8  ;;  %v1570_v42 = vadd.f32 %v1569_v36, %v3071_v31  ;;  %v1854_v10 = vmax.f32 %v1798_v51, 0.0  ;;  %v1856_v11 = vmax.f32 %v1800_v24, 0.0  ;;  %v1799_v40 = vadd.f32 %v1743_v58, %v1687_v62  ;;  %v1500_v18 = vpop.f32.mrf.mxu0  ;;  %v2218_v19 = vpop.f32.mrf.mxu1  ;;  %v1711_v8 = vld [vmem:[%s3116_s15 + $0x90] sm:$0xff]  ;;  %v1741_v58 = vld [vmem:[%s3116_s15 + $0x180] sm:$0xff] }
 0x15a   : > { %v1801_v47 = vadd.f32 %v1745_v9, %v1689_v25  ;;  %v1753_v5 = vadd.f32 %v1697_v63, %v1641_v17  ;;  %v1769_v39 = vadd.f32 %v1713_v43, %v1657_v26  ;;  %v1642_v53 = vadd.f32 %v3149_v37, %v1499_v28  ;;  %v3445_v24 = vld [vmem:[#allocation7_spill] sm:$0xff]  ;;  %v1712_v26 = vld [vmem:[%s3116_s15 + $0x98] sm:$0xff] }
 0x15b   : > { %v1643_v59 = vadd.f32 %v3147_v52, %v1570_v42  ;;  %1910 = vst [vmem:[%s3158_s17 + $0x188] sm:$0xff] %v1854_v10  ;;  %1912 = vst [vmem:[%s3158_s17 + $0x198] sm:$0xff] %v1856_v11  ;;  %v1855_v27 = vmax.f32 %v1799_v40, 0.0  ;;  %v1501_v0 = vadd.f32 %v1500_v18, %v3067_v29  ;;  %v1581_v1 = vadd.f32 %v2218_v19, %v3077_v34  ;;  %v1502_v48 = vpop.f32.mrf.mxu0  ;;  %v1572_v54 = vpop.f32.mrf.mxu1  ;;  %v3446_v25 = vld [vmem:[#allocation15_spill] sm:$0xff]  ;;  %v3447_v19 = vld [vmem:[#allocation8_spill] sm:$0xff] }
 0x15c   : > { %v1857_v31 = vmax.f32 %v1801_v47, 0.0  ;;  %v1809_v55 = vmax.f32 %v1753_v5, 0.0  ;;  %v1825_v45 = vmax.f32 %v1769_v39, 0.0  ;;  %v1754_v12 = vadd.f32 %v1698_v32, %v1642_v53  ;;  %v1727_v28 = vld [vmem:[%s3116_s15 + $0x110] sm:$0xff]  ;;  %v3448_v39 = vld [vmem:[#allocation18_spill] sm:$0xff] }
 0x15d   : > { %v1755_v13 = vadd.f32 %v1699_v4, %v1643_v59  ;;  %1911 = vst [vmem:[%s3158_s17 + $0x190] sm:$0xff] %v1855_v27  ;;  %v1648_v21 = vadd.f32 %v3141_v33, %v1501_v0  ;;  %v1664_v29 = vadd.f32 %v3147_v52, %v1581_v1  ;;  %v1503_v34 = vadd.f32 %v1502_v48, %v3441_v56  ;;  %v1506_v30 = vpop.f32.mrf.mxu0  ;;  %v2221_v60 = vpop.f32.mrf.mxu1 }
 0x15e   : > { %1913 = vst [vmem:[%s3158_s17 + $0x1a0] sm:$0xff] %v1857_v31  ;;  %v1573_v7 = vadd.f32 %v1572_v54, %v3442_v6  ;;  %1865 = vst [vmem:[%s3158_s17 + $0x20] sm:$0xff] %v1809_v55  ;;  %v1810_v50 = vmax.f32 %v1754_v12, 0.0  ;;  %v1507_v14 = vadd.f32 %v1506_v30, %v3443_v46  ;;  %v1594_v23 = vadd.f32 %v2221_v60, %v3444_v22  ;;  %v1718_v54 = vld [vmem:[%s3116_s15 + $0xc8] sm:$0xff]  ;;  %v1748_v55 = vld [vmem:[%s3116_s15 + $0x1b8] sm:$0xff] }
 0x15f   : > { %1881 = vst [vmem:[%s3158_s17 + $0xa0] sm:$0xff] %v1825_v45  ;;  %v1811_v3 = vmax.f32 %v1755_v13, 0.0  ;;  %v1760_v15 = vadd.f32 %v1704_v44, %v1648_v21  ;;  %v1776_v35 = vadd.f32 %v1720_v20, %v1664_v29  ;;  %v1649_v38 = vadd.f32 %v3149_v37, %v1503_v34  ;;  %v1508_v9 = vpop.f32.mrf.mxu0  ;;  %v1585_v57 = vpop.f32.mrf.mxu1  ;;  %v3449_v13 = vld [vmem:[#allocation9_spill] sm:$0xff]  ;;  %v1719_v6 = vld [vmem:[%s3116_s15 + $0xd0] sm:$0xff] }
 0x160   : > { %v1650_v49 = vadd.f32 %v3147_v52, %v1573_v7  ;;  %1866 = vst [vmem:[%s3158_s17 + $0x28] sm:$0xff] %v1810_v50  ;;  %v1655_v41 = vadd.f32 %v3141_v33, %v1507_v14  ;;  %v1685_v51 = vadd.f32 %v3147_v52, %v1594_v23  ;;  %v1509_v62 = vadd.f32 %v1508_v9, %v3445_v24  ;;  %v3450_v20 = vld [vmem:[#allocation21_spill] sm:$0xff]  ;;  %v1734_v7 = vld [vmem:[%s3116_s15 + $0x148] sm:$0xff]  ;;  %v3451_v30 = vld [vmem:[#allocation11_spill] sm:$0xff] }
 0x161   : > { %1867 = vst [vmem:[%s3158_s17 + $0x30] sm:$0xff] %v1811_v3  ;;  %v1586_v63 = vadd.f32 %v1585_v57, %v3446_v25  ;;  %v1816_v43 = vmax.f32 %v1760_v15, 0.0  ;;  %v1832_v16 = vmax.f32 %v1776_v35, 0.0  ;;  %v1761_v36 = vadd.f32 %v1705_v2, %v1649_v38  ;;  %v1510_v42 = vpop.f32.mrf.mxu0  ;;  %v2222_v10 = vpop.f32.mrf.mxu1  ;;  %v1725_v46 = vld [vmem:[%s3116_s15 + $0x100] sm:$0xff]  ;;  %v1732_v25 = vld [vmem:[%s3116_s15 + $0x138] sm:$0xff] }
 0x162   : > { %v1762_v17 = vadd.f32 %v1706_v61, %v1650_v49  ;;  %v1767_v11 = vadd.f32 %v1711_v8, %v1655_v41  ;;  %v1797_v40 = vadd.f32 %v1741_v58, %v1685_v51  ;;  %v1656_v47 = vadd.f32 %v3149_v37, %v1509_v62  ;;  %v3452_v23 = vld [vmem:[#allocation13_spill] sm:$0xff]  ;;  %v1726_v58 = vld [vmem:[%s3116_s15 + $0x108] sm:$0xff] }
 0x163   : > { %v1671_v32 = vadd.f32 %v3147_v52, %v1586_v63  ;;  %1872 = vst [vmem:[%s3158_s17 + $0x58] sm:$0xff] %v1816_v43  ;;  %1888 = vst [vmem:[%s3158_s17 + $0xd8] sm:$0xff] %v1832_v16  ;;  %v1817_v4 = vmax.f32 %v1761_v36, 0.0  ;;  %v1511_v5 = vadd.f32 %v1510_v42, %v3447_v19  ;;  %v1597_v53 = vadd.f32 %v2222_v10, %v3448_v39  ;;  %v1512_v59 = vpop.f32.mrf.mxu0  ;;  %v1588_v27 = vpop.f32.mrf.mxu1  ;;  %v3453_v41 = vld [vmem:[#allocation14_spill] sm:$0xff] }
 0x164   : > { %v1818_v18 = vmax.f32 %v1762_v17, 0.0  ;;  %v1823_v31 = vmax.f32 %v1767_v11, 0.0  ;;  %v1853_v0 = vmax.f32 %v1797_v40, 0.0  ;;  %v1768_v1 = vadd.f32 %v1712_v26, %v1656_v47  ;;  %v3454_v17 = vld [vmem:[#allocation16_spill] sm:$0xff]  ;;  %v3455_v47 = vld [vmem:[#allocation17_spill] sm:$0xff] }
 0x165   : > { %v1783_v48 = vadd.f32 %v1727_v28, %v1671_v32  ;;  %1873 = vst [vmem:[%s3158_s17 + $0x60] sm:$0xff] %v1817_v4  ;;  %v1662_v45 = vadd.f32 %v3141_v33, %v1511_v5  ;;  %v1692_v12 = vadd.f32 %v3147_v52, %v1597_v53  ;;  %v1513_v44 = vadd.f32 %v1512_v59, %v3449_v13  ;;  %v1516_v29 = vpop.f32.mrf.mxu0  ;;  %v1733_v28 = vld [vmem:[%s3116_s15 + $0x140] sm:$0xff]  ;;  %v1739_v4 = vld [vmem:[%s3116_s15 + $0x170] sm:$0xff] }
 0x166   : > { %1874 = vst [vmem:[%s3158_s17 + $0x68] sm:$0xff] %v1818_v18  ;;  %v1589_v21 = vadd.f32 %v1588_v27, %v3450_v20  ;;  %1879 = vst [vmem:[%s3158_s17 + $0x90] sm:$0xff] %v1823_v31  ;;  %v1824_v56 = vmax.f32 %v1768_v1, 0.0  ;;  %v1517_v60 = vadd.f32 %v1516_v29, %v3451_v30  ;;  %v3456_v53 = vld [vmem:[#allocation19_spill] sm:$0xff]  ;;  %v1740_v27 = vld [vmem:[%s3116_s15 + $0x178] sm:$0xff] }
 0x167   : > { %1909 = vst [vmem:[%s3158_s17 + $0x180] sm:$0xff] %v1853_v0  ;;  %v1839_v34 = vmax.f32 %v1783_v48, 0.0  ;;  %v1774_v50 = vadd.f32 %v1718_v54, %v1662_v45  ;;  %v1804_v3 = vadd.f32 %v1748_v55, %v1692_v12  ;;  %v1663_v2 = vadd.f32 %v3149_v37, %v1513_v44  ;;  %v1518_v14 = vpop.f32.mrf.mxu0  ;;  %v3457_v54 = vld [vmem:[#allocation20_spill] sm:$0xff]  ;;  %v1746_v45 = vld [vmem:[%s3116_s15 + $0x1a8] sm:$0xff] }
 0x168   : > { %v1678_v61 = vadd.f32 %v3147_v52, %v1589_v21  ;;  %1880 = vst [vmem:[%s3158_s17 + $0x98] sm:$0xff] %v1824_v56  ;;  %v1669_v22 = vadd.f32 %v3141_v33, %v1517_v60  ;;  %v1519_v15 = vadd.f32 %v1518_v14, %v3452_v23  ;;  %v3458_v21 = vld [vmem:[#allocation22_spill] sm:$0xff]  ;;  %v1747_v56 = vld [vmem:[%s3116_s15 + $0x1b0] sm:$0xff] }
 0x169   : > { %1895 = vst [vmem:[%s3158_s17 + $0x110] sm:$0xff] %v1839_v34  ;;  %v1830_v35 = vmax.f32 %v1774_v50, 0.0  ;;  %v1860_v38 = vmax.f32 %v1804_v3, 0.0  ;;  %v1775_v49 = vadd.f32 %v1719_v6, %v1663_v2  ;;  %v1520_v9 = vpop.f32.mrf.mxu0 }
 0x16a   : > { %v1790_v8 = vadd.f32 %v1734_v7, %v1678_v61  ;;  %v1781_v52 = vadd.f32 %v1725_v46, %v1669_v22  ;;  %v1670_v57 = vadd.f32 %v3149_v37, %v1519_v15  ;;  %v1521_v51 = vadd.f32 %v1520_v9, %v3453_v41 }
 0x16b   : > { %1886 = vst [vmem:[%s3158_s17 + $0xc8] sm:$0xff] %v1830_v35  ;;  %1916 = vst [vmem:[%s3158_s17 + $0x1b8] sm:$0xff] %v1860_v38  ;;  %v1831_v24 = vmax.f32 %v1775_v49, 0.0  ;;  %v1522_v63 = vpop.f32.mrf.mxu0 }
 0x16c   : > { %v1846_v62 = vmax.f32 %v1790_v8, 0.0  ;;  %v1837_v43 = vmax.f32 %v1781_v52, 0.0  ;;  %v1782_v16 = vadd.f32 %v1726_v58, %v1670_v57  ;;  %v1676_v36 = vadd.f32 %v3141_v33, %v1521_v51 }
 0x16d   : > { %v1523_v26 = vadd.f32 %v1522_v63, %v3454_v17  ;;  %1887 = vst [vmem:[%s3158_s17 + $0xd0] sm:$0xff] %v1831_v24  ;;  %v1526_v42 = vpop.f32.mrf.mxu0 }
 0x16e   : > { %1902 = vst [vmem:[%s3158_s17 + $0x148] sm:$0xff] %v1846_v62  ;;  %1893 = vst [vmem:[%s3158_s17 + $0x100] sm:$0xff] %v1837_v43  ;;  %v1838_v10 = vmax.f32 %v1782_v16, 0.0  ;;  %v1788_v11 = vadd.f32 %v1732_v25, %v1676_v36  ;;  %v1527_v32 = vadd.f32 %v1526_v42, %v3455_v47 }
 0x16f   : > { %v1677_v40 = vadd.f32 %v3149_v37, %v1523_v26  ;;  %v1528_v18 = vpop.f32.mrf.mxu0 }
 0x170   : > { %1894 = vst [vmem:[%s3158_s17 + $0x108] sm:$0xff] %v1838_v10  ;;  %v1844_v19 = vmax.f32 %v1788_v11, 0.0  ;;  %v1683_v39 = vadd.f32 %v3141_v33, %v1527_v32  ;;  %v1529_v59 = vadd.f32 %v1528_v18, %v3456_v53 }
 0x171   : > { %v1789_v5 = vadd.f32 %v1733_v28, %v1677_v40  ;;  %v1530_v31 = vpop.f32.mrf.mxu0 }
 0x172   : > { %1900 = vst [vmem:[%s3158_s17 + $0x138] sm:$0xff] %v1844_v19  ;;  %v1795_v1 = vadd.f32 %v1739_v4, %v1683_v39  ;;  %v1684_v48 = vadd.f32 %v3149_v37, %v1529_v59  ;;  %v1531_v55 = vadd.f32 %v1530_v31, %v3457_v54 }
 0x173   : > { %v1845_v0 = vmax.f32 %v1789_v5, 0.0  ;;  %v1532_v12 = vpop.f32.mrf.mxu0 }
 0x174   : > { %v1851_v13 = vmax.f32 %v1795_v1, 0.0  ;;  %v1796_v44 = vadd.f32 %v1740_v27, %v1684_v48  ;;  %v1690_v20 = vadd.f32 %v3141_v33, %v1531_v55  ;;  %v1533_v29 = vadd.f32 %v1532_v12, %v3458_v21 }
 0x175   : > { %1901 = vst [vmem:[%s3158_s17 + $0x140] sm:$0xff] %v1845_v0 }
 0x176   : > { %1907 = vst [vmem:[%s3158_s17 + $0x170] sm:$0xff] %v1851_v13  ;;  %v1852_v34 = vmax.f32 %v1796_v44, 0.0  ;;  %v1802_v6 = vadd.f32 %v1746_v45, %v1690_v20  ;;  %v1691_v7 = vadd.f32 %v3149_v37, %v1533_v29 }
 0x178   : > { %1908 = vst [vmem:[%s3158_s17 + $0x178] sm:$0xff] %v1852_v34  ;;  %v1858_v30 = vmax.f32 %v1802_v6, 0.0  ;;  %v1803_v60 = vadd.f32 %v1747_v56, %v1691_v7 }
 0x17a   : > { %1914 = vst [vmem:[%s3158_s17 + $0x1a8] sm:$0xff] %v1858_v30  ;;  %v1859_v33 = vmax.f32 %v1803_v60, 0.0 }
 0x17c   : > { %1915 = vst [vmem:[%s3158_s17 + $0x1b0] sm:$0xff] %v1859_v33 }
 0x17d   : > { %2449 = shalt.err (!%p2446_p3)
}
 0x17e   : > { %s2450_s11 = scalar_lea.hbm %s3367_s7, 7168  ;;  %s2454_s15 = scalar_lea.hbm %s3420_s5, 14336 }
 0x17f   : > { %p2451_p4 = scmp.ne.s32.totalorder %s3367_s7, %s2450_s11  ;;  %p2455_p9 = scmp.lt.s32.totalorder %s3367_s7, %s3420_s5 }
 0x180   : > { %p2456_p10 = scmp.lt.s32.totalorder %s2454_s15, %s2450_s11 }
 0x181   : > { %p2452_p7 = pnand %p2451_p4, %p2570_p5 }
 0x182   : > { %p2457_p11 = por %p2456_p10, %p2455_p9 }
 0x183   : > { %p2453_p8 = pneg %p2452_p7 }
 0x185   : > { %p2458_p12 = pnand %p2457_p11, %p2453_p8 }
 0x187   : > { %2461 = shalt.err (!%p2458_p12)
}
 0x188   : > { %s2500_s17 = smov 896   ;;  %s2501_s25 = smov 56  }
 0x189   : > { %2226 = dma.vmem_to_hbm [thread:$0]  (%p2570_p5), %s3369_s30, 7168, %s3367_s7, %s3375_s22, %s2500_s17, %s2500_s17, %s2501_s25  }
 0x18a PF: > { %p2232_p13 = scmp.ge.s32.totalorder %s2496_s21, 2  ;;  %s1946_s12 = sand.u32 1, %s2484_s18  }
 0x18b   : > { %s1947_s6 = scalar_lea.sflag [#allocation3], %s1946_s12 }
 0x18c   : > { %p2229_p0 = pnand %p2232_p13, %p2574_p6 }
 0x18e   : > { %p2230_p1 = pneg %p2229_p0 }
 0x190   : > { %2479 = dma.done.wait (%p2230_p1), %s1947_s6, 7168  }
 0x191   : > { %2481 = vsyncadd (%p2230_p1), %s1947_s6, 4294960128  ;;  %p15_p2 = scmp.ge.s32.totalorder %s2557_s24, 4   ;;  %s3459_s18 = smov %s2488_s19 }
 0x192   : > { %s3460_s19 = smov %s2492_s20  ;;  %s3461_s20 = smov %s2568_s27 }
 0x193   : > { %s3462_s21 = smov %s2557_s24  ;;  %17 = sbr.rel (!%p15_p2) target bundleno = 3 (0x3), region = 81 }
 0x198   :  { %1952 = vsyncpa [#allocation3], 1 }
 0x199   :  { %1954 = vsyncpa [#allocation3 + $0x1], 1 }

</bundles_post_ra>
